<compile_context>
chip_gen: v7x
topology: tpu7x:2x2x1
jax: 0.10.0
libtpu: 0.0.40
codegen_flags: <defaults>
</compile_context>

<pallas_src>
import functools

import numpy as np

import jax
import jax.numpy as jnp
from jax.experimental import pallas as pl
from jax.experimental.pallas import tpu as pltpu


_VMEM = pl.BlockSpec(memory_space=pltpu.MemorySpace.VMEM)
_BN_EPS = 1e-5


# ----------------------------------------------------------------------------
# Fused kernel (single invocation, everything resident in VMEM / vregs)
# ----------------------------------------------------------------------------
def _mfe_fused_kernel(
    # inputs -------------------------------------------------------------
    f_ref,               # (Cin, M)         input activation, (b,h,w)-major lanes
    masks_ref,           # (9, 1, M)        per-tap spatial validity masks
    w1_ref,              # (9, 5y+2hc, Cin) merged stage-1 per-tap weights
    b1_ref,              # (5y+2hc, 1)
    bn1g_ref, bn1b_ref,  # (4y, 1)          BN gamma/beta for [sq|ver|hor|sc]
    wq_ref, bq_ref,      # (y, hc), (y, 1)
    wk_ref, bk_ref,      # (y, hc), (y, 1)
    wvp_ref, bv_ref,     # (y, hc), (y, 1)
    wat_ref,             # (9, y, y)        attention 3x3 kernel taps
    bnag_ref, bnab_ref,  # (y, 1)
    gamma_ref,           # (1, 1)
    w3o_ref, w3s_ref,    # (9, y, y) each   conv3 taps for [out | shortcut]
    b3_ref,              # (y, 1)
    wf1_ref, wf2_ref, wf3_ref,  # (9, y, y) fuse-conv taps for [p1 | p2 | p3]
    bf_ref,              # (y, 1)
    bnfg_ref, bnfb_ref,  # (y, 1)
    # outputs ------------------------------------------------------------
    o_ref,               # (y, M)
    *, B, HW, y, hc, shifts, eps, scale):
  f32 = jnp.float32
  M = B * HW

  def shift_lanes(x, s):
    # shifted[:, m] = x[:, m + s] (cyclic).  Lanes that wrapped around or left
    # the image are zeroed by the caller's per-tap mask.
    return x if s == 0 else pltpu.roll(x, shift=(-s) % M, axis=1)

  def conv3x3(sources):
    """3x3 'same' conv as 9 per-tap matmuls on lane-rotated activations.

    sources: list of (activation (Ci, M) f32, tap-weight ref (9, Co, Ci)).
    Returns sum_t mask_t * (sum_src W_src[t] @ roll(act_src, shift_t)).
    (mask_t is per-lane, so masking after the matmul == zero padding.)
    """
    acc = None
    for t in range(9):
      tap = None
      for act, wr in sources:
        c = jnp.dot(wr[t], shift_lanes(act, shifts[t]),
                    preferred_element_type=f32)
        tap = c if tap is None else tap + c
      if shifts[t] != 0:                       # center tap needs no mask
        tap = masks_ref[t] * tap
      acc = tap if acc is None else acc + tap
    return acc

  def batch_norm(xm, g, b):
    # Training-mode BatchNorm2d: biased batch statistics over the M lanes
    # (= all of N,H,W for each channel row).
    # TODO(synk): convert to two-pass sum/sumsq before M-tiling this kernel.
    mean = jnp.mean(xm, axis=1, keepdims=True)
    d = xm - mean
    var = jnp.mean(d * d, axis=1, keepdims=True)
    return d * jax.lax.rsqrt(var + eps) * g + b

  # ---------------- Stage 1: every conv that reads `f`, one merged weight ---
  # Merged row layout: [ori(y) | sq(y) | ver(y) | hor(y) | sc(y) | c1(hc) | c2(hc)]
  f = f_ref[...].astype(f32)
  acc1 = conv3x3([(f, w1_ref)]) + b1_ref[...]

  p1 = acc1[0:y]                                           # oriConv(f)
  nb = batch_norm(acc1[y:5 * y], bn1g_ref[...], bn1b_ref[...])
  p2 = nb[0:y] + nb[y:2 * y] + nb[2 * y:3 * y]             # asyConv(f)
  sc = nb[3 * y:4 * y]                                     # shortcut(f)
  x12 = jnp.maximum(acc1[5 * y:5 * y + 2 * hc], 0.0)
  x1 = x12[0:hc]                                           # relu(conv1(f))
  x2 = x12[hc:2 * hc]                                      # relu(conv2(f))

  # ---------------- Stage 2: q/k/v + attention (softmax over the batch dim) -
  q = jnp.dot(wq_ref[...], x1, preferred_element_type=f32) + bq_ref[...]
  k = jnp.dot(wk_ref[...], x2, preferred_element_type=f32) + bk_ref[...]
  v = jnp.dot(wvp_ref[...], x2, preferred_element_type=f32) + bv_ref[...]

  logits = []
  for b in range(B):
    qb = q[:, b * HW:(b + 1) * HW]
    kb = k[:, b * HW:(b + 1) * HW]
    logits.append(jax.lax.dot_general(
        qb, kb, (((1,), (1,)), ((), ())),
        preferred_element_type=f32) * scale)                # (y, y) per batch

  mx = logits[0]
  for a in logits[1:]:
    mx = jnp.maximum(mx, a)
  exps = [jnp.exp(a - mx) for a in logits]
  denom = exps[0]
  for e in exps[1:]:
    denom = denom + e

  wv_parts = []
  for b in range(B):
    prob = exps[b] / denom                                  # exact divide
    wv_parts.append(jnp.dot(prob, v[:, b * HW:(b + 1) * HW],
                            preferred_element_type=f32))
  wv = jnp.concatenate(wv_parts, axis=1) if B > 1 else wv_parts[0]

  # ---------------- Stage 3: 3x3 attn-kernel conv + BN + gamma + shortcut ---
  attn_out = batch_norm(conv3x3([(wv, wat_ref)]),
                        bnag_ref[...], bnab_ref[...])
  out = gamma_ref[...] * attn_out + sc

  # ---------------- Stage 4: conv3 over cat([out, shortcut]) ----------------
  p3 = conv3x3([(out, w3o_ref), (sc, w3s_ref)]) + b3_ref[...]

  # ---------------- Stage 5: fuse conv over cat([p1, p2, p3]) + BN + ReLU ---
  fused = conv3x3([(p1, wf1_ref), (p2, wf2_ref), (p3, wf3_ref)]) + bf_ref[...]
  o_ref[...] = jnp.maximum(batch_norm(fused, bnfg_ref[...], bnfb_ref[...]), 0.0)


# ----------------------------------------------------------------------------
# Wrapper glue: weight-only transforms + static mask/shift tables
# ----------------------------------------------------------------------------
def _build_masks_and_shifts(B, H, W):
  """9 per-tap validity masks (9, 1, B*H*W) and flat lane shifts di*W + dj."""
  hh, ww = np.meshgrid(np.arange(H), np.arange(W), indexing="ij")
  masks = np.zeros((9, 1, B * H * W), np.float32)
  shifts = []
  t = 0
  for ki in range(3):
    for kj in range(3):
      di, dj = ki - 1, kj - 1
      valid = ((hh + di >= 0) & (hh + di < H) &
               (ww + dj >= 0) & (ww + dj < W)).astype(np.float32)   # (H, W)
      masks[t, 0] = np.tile(valid.reshape(-1), B)
      shifts.append(di * W + dj)
      t += 1
  return jnp.asarray(masks), tuple(shifts)


def _pad_to_3x3(w_pt):
  """Zero-pad a (Co, Ci, kh, kw) kernel (kh, kw in {1, 3}) into a centered 3x3."""
  _, _, kh, kw = w_pt.shape
  ph = (3 - kh) // 2
  pw = (3 - kw) // 2
  return jnp.pad(w_pt, ((0, 0), (0, 0), (ph, 3 - kh - ph), (pw, 3 - kw - pw)))


def _taps(w):
  """(Co, Ci, 3, 3) conv weight -> (9, Co, Ci) per-tap matrices, t = ki*3 + kj."""
  co, ci = w.shape[0], w.shape[1]
  return jnp.transpose(w, (2, 3, 0, 1)).reshape(9, co, ci)


# ----------------------------------------------------------------------------
# Parameters (deterministic synthetic init — shapes from MFE.__init__)
# ----------------------------------------------------------------------------
def init_params(key, cin, cout):
  keys = iter(jax.random.split(key, 16))
  y, h = cout, cout // 2

  def w(shape, scale=0.1):
    return jax.random.normal(next(keys), shape, jnp.float32) * scale

  bn = lambda c: (jnp.ones((c,), jnp.float32), jnp.zeros((c,), jnp.float32))
  z = lambda c: jnp.zeros((c,), jnp.float32)
  p = {
      # oriConv
      'ori_w': w((y, cin, 3, 3)), 'ori_b': z(y),
      # asyConv (square / vertical / horizontal convs, each followed by BN)
      'sq_w': w((y, cin, 3, 3)), 'sq_bn': bn(y),
      'ver_w': w((y, cin, 3, 1)), 'ver_bn': bn(y),
      'hor_w': w((y, cin, 1, 3)), 'hor_bn': bn(y),
      # AttentionConv2d
      'sc_w': w((y, cin, 1, 1)), 'sc_b': z(y), 'sc_bn': bn(y),
      'c1_w': w((h, cin, 1, 1)), 'c1_b': z(h),
      'c2_w': w((h, cin, 1, 1)), 'c2_b': z(h),
      'q_w': w((y, h, 1, 1)), 'q_b': z(y),
      'k_w': w((y, h, 1, 1)), 'k_b': z(y),
      'v_w': w((y, h, 1, 1)), 'v_b': z(y),
      'attn_kernel': w((y, y, 3, 3), scale=0.05),
      'attn_bn': bn(y),
      'c3_w': w((y, 2 * y, 3, 3)), 'c3_b': z(y),
      'gamma': jnp.asarray(0.1, jnp.float32),
      # MFE fusion conv + BN
      'fuse_w': w((y, 3 * y, 3, 3)), 'fuse_b': z(y),
      'fuse_bn': bn(y),
  }
  return p


# ----------------------------------------------------------------------------
# MFE forward (1 pallas_call)
# ----------------------------------------------------------------------------
def mfe_forward(params, f_nchw):
  p = params
  f32 = jnp.float32
  B, Cin, H, W = f_nchw.shape
  HW = H * W
  M = B * HW
  y = p['ori_w'].shape[0]           # out channels
  hc = p['c1_w'].shape[0]           # out channels // 2

  # NCHW -> (Cin, B*H*W), columns ordered (b, h, w). Lane dim = B*H*W.
  f_t = jnp.transpose(f_nchw.astype(f32), (1, 0, 2, 3)).reshape(Cin, M)

  masks, shifts = _build_masks_and_shifts(B, H, W)

  # Stage-1 merged per-tap weights: rows [ori | sq | ver | hor | sc | c1 | c2]
  w1_full = jnp.concatenate([
      p['ori_w'], p['sq_w'], _pad_to_3x3(p['ver_w']), _pad_to_3x3(p['hor_w']),
      _pad_to_3x3(p['sc_w']), _pad_to_3x3(p['c1_w']), _pad_to_3x3(p['c2_w'])],
      axis=0)                                         # (5y+2hc, Cin, 3, 3)
  w1_taps = _taps(w1_full)                            # (9, 5y+2hc, Cin)
  b1 = jnp.concatenate([p['ori_b'], jnp.zeros((3 * y,), f32), p['sc_b'],
                        p['c1_b'], p['c2_b']])[:, None]
  bn1g = jnp.concatenate([p['sq_bn'][0], p['ver_bn'][0],
                          p['hor_bn'][0], p['sc_bn'][0]])[:, None]
  bn1b = jnp.concatenate([p['sq_bn'][1], p['ver_bn'][1],
                          p['hor_bn'][1], p['sc_bn'][1]])[:, None]

  wat_taps = _taps(p['attn_kernel'])
  w3o_taps = _taps(p['c3_w'][:, :y])                  # conv3, channels of `out`
  w3s_taps = _taps(p['c3_w'][:, y:])                  # conv3, channels of `shortcut`
  wf1_taps = _taps(p['fuse_w'][:, :y])                # fuse conv, channels of p1
  wf2_taps = _taps(p['fuse_w'][:, y:2 * y])           # fuse conv, channels of p2
  wf3_taps = _taps(p['fuse_w'][:, 2 * y:])            # fuse conv, channels of p3

  # Matches torch: attn = bmm(q, k^T) * (HW ** -0.5 + 1e-8)
  scale = float(HW) ** (-0.5) + 1e-8

  out_t = pl.pallas_call(
      functools.partial(_mfe_fused_kernel, B=B, HW=HW, y=y, hc=hc,
                        shifts=shifts, eps=_BN_EPS, scale=scale),
      out_shape=jax.ShapeDtypeStruct((y, M), f32),
      in_specs=[_VMEM] * 25,
      out_specs=_VMEM,
  )(f_t, masks,
    w1_taps, b1, bn1g, bn1b,
    p['q_w'][:, :, 0, 0], p['q_b'][:, None],
    p['k_w'][:, :, 0, 0], p['k_b'][:, None],
    p['v_w'][:, :, 0, 0], p['v_b'][:, None],
    wat_taps, p['attn_bn'][0][:, None], p['attn_bn'][1][:, None],
    p['gamma'].reshape(1, 1),
    w3o_taps, w3s_taps, p['c3_b'][:, None],
    wf1_taps, wf2_taps, wf3_taps, p['fuse_b'][:, None],
    p['fuse_bn'][0][:, None], p['fuse_bn'][1][:, None])

  # (y, B*H*W) -> NCHW
  return jnp.transpose(out_t.reshape(y, B, H, W), (1, 0, 2, 3))


if __name__ == "__main__":
  key = jax.random.PRNGKey(0)
  kp, kx = jax.random.split(key)
  B, Cin, Cout, H, W = 2, 4, 4, 16, 16
  params = init_params(kp, Cin, Cout)
  x = jax.random.normal(kx, (B, Cin, H, W), jnp.float32)

  out = jax.jit(mfe_forward)(params, x)
  out = jax.block_until_ready(out)
  assert out.shape == (B, Cout, H, W)
  assert bool(jnp.all(jnp.isfinite(out)))
  print("KERNEL_OK")
</pallas_src>

<mosaic_0001>
module attributes {stable_mosaic.version = 11 : i64} {
  func.func @_mfe_fused_kernel(%arg0: memref<4x512xf32, #tpu.memory_space<vmem>>, %arg1: memref<9x1x512xf32, #tpu.memory_space<vmem>>, %arg2: memref<9x24x4xf32, #tpu.memory_space<vmem>>, %arg3: memref<24x1xf32, #tpu.memory_space<vmem>>, %arg4: memref<16x1xf32, #tpu.memory_space<vmem>>, %arg5: memref<16x1xf32, #tpu.memory_space<vmem>>, %arg6: memref<4x2xf32, #tpu.memory_space<vmem>>, %arg7: memref<4x1xf32, #tpu.memory_space<vmem>>, %arg8: memref<4x2xf32, #tpu.memory_space<vmem>>, %arg9: memref<4x1xf32, #tpu.memory_space<vmem>>, %arg10: memref<4x2xf32, #tpu.memory_space<vmem>>, %arg11: memref<4x1xf32, #tpu.memory_space<vmem>>, %arg12: memref<9x4x4xf32, #tpu.memory_space<vmem>>, %arg13: memref<4x1xf32, #tpu.memory_space<vmem>>, %arg14: memref<4x1xf32, #tpu.memory_space<vmem>>, %arg15: memref<1x1xf32, #tpu.memory_space<vmem>>, %arg16: memref<9x4x4xf32, #tpu.memory_space<vmem>>, %arg17: memref<9x4x4xf32, #tpu.memory_space<vmem>>, %arg18: memref<4x1xf32, #tpu.memory_space<vmem>>, %arg19: memref<9x4x4xf32, #tpu.memory_space<vmem>>, %arg20: memref<9x4x4xf32, #tpu.memory_space<vmem>>, %arg21: memref<9x4x4xf32, #tpu.memory_space<vmem>>, %arg22: memref<4x1xf32, #tpu.memory_space<vmem>>, %arg23: memref<4x1xf32, #tpu.memory_space<vmem>>, %arg24: memref<4x1xf32, #tpu.memory_space<vmem>>, %arg25: memref<4x512xf32, #tpu.memory_space<vmem>>) attributes {dimension_semantics = [], scalar_prefetch = 0 : i64, scratch_operands = 0 : i64, tpu.core_type = #tpu.core_type<tc>} {
    %c0 = arith.constant 0 : index
    %c0_0 = arith.constant 0 : index
    %0 = vector.load %arg0[%c0, %c0_0] : memref<4x512xf32, #tpu.memory_space<vmem>>, vector<4x512xf32>
    %c0_1 = arith.constant 0 : index
    %c0_2 = arith.constant 0 : index
    %c0_3 = arith.constant 0 : index
    %1 = vector.load %arg2[%c0_1, %c0_2, %c0_3] : memref<9x24x4xf32, #tpu.memory_space<vmem>>, vector<1x24x4xf32>
    %2 = vector.shape_cast %1 : vector<1x24x4xf32> to vector<24x4xf32>
    %c17_i32 = arith.constant 17 : i32
    %3 = tpu.dynamic_rotate %0 by %c17_i32 dim 1 : vector<4x512xf32>, i32 -> vector<4x512xf32>
    %cst = arith.constant dense<0.000000e+00> : vector<24x512xf32>
    %4 = tpu.matmul %2, %3, %cst {dimension_numbers = #tpu.dot_dimension_numbers<[1], [0], [0], [1], [0, 0, 1, 1], [], []>} : vector<24x4xf32>, vector<4x512xf32>, vector<24x512xf32> -> vector<24x512xf32>
    %c0_4 = arith.constant 0 : index
    %c0_5 = arith.constant 0 : index
    %c0_6 = arith.constant 0 : index
    %5 = vector.load %arg1[%c0_4, %c0_5, %c0_6] : memref<9x1x512xf32, #tpu.memory_space<vmem>>, vector<1x1x512xf32>
    %6 = vector.shape_cast %5 : vector<1x1x512xf32> to vector<1x512xf32>
    %7 = vector.broadcast %6 : vector<1x512xf32> to vector<24x512xf32>
    %8 = arith.mulf %7, %4 : vector<24x512xf32>
    %c1 = arith.constant 1 : index
    %c0_7 = arith.constant 0 : index
    %c0_8 = arith.constant 0 : index
    %9 = vector.load %arg2[%c1, %c0_7, %c0_8] : memref<9x24x4xf32, #tpu.memory_space<vmem>>, vector<1x24x4xf32>
    %10 = vector.shape_cast %9 : vector<1x24x4xf32> to vector<24x4xf32>
    %c16_i32 = arith.constant 16 : i32
    %11 = tpu.dynamic_rotate %0 by %c16_i32 dim 1 : vector<4x512xf32>, i32 -> vector<4x512xf32>
    %cst_9 = arith.constant dense<0.000000e+00> : vector<24x512xf32>
    %12 = tpu.matmul %10, %11, %cst_9 {dimension_numbers = #tpu.dot_dimension_numbers<[1], [0], [0], [1], [0, 0, 1, 1], [], []>} : vector<24x4xf32>, vector<4x512xf32>, vector<24x512xf32> -> vector<24x512xf32>
    %c1_10 = arith.constant 1 : index
    %c0_11 = arith.constant 0 : index
    %c0_12 = arith.constant 0 : index
    %13 = vector.load %arg1[%c1_10, %c0_11, %c0_12] : memref<9x1x512xf32, #tpu.memory_space<vmem>>, vector<1x1x512xf32>
    %14 = vector.shape_cast %13 : vector<1x1x512xf32> to vector<1x512xf32>
    %15 = vector.broadcast %14 : vector<1x512xf32> to vector<24x512xf32>
    %16 = arith.mulf %15, %12 : vector<24x512xf32>
    %17 = arith.addf %8, %16 : vector<24x512xf32>
    %c2 = arith.constant 2 : index
    %c0_13 = arith.constant 0 : index
    %c0_14 = arith.constant 0 : index
    %18 = vector.load %arg2[%c2, %c0_13, %c0_14] : memref<9x24x4xf32, #tpu.memory_space<vmem>>, vector<1x24x4xf32>
    %19 = vector.shape_cast %18 : vector<1x24x4xf32> to vector<24x4xf32>
    %c15_i32 = arith.constant 15 : i32
    %20 = tpu.dynamic_rotate %0 by %c15_i32 dim 1 : vector<4x512xf32>, i32 -> vector<4x512xf32>
    %cst_15 = arith.constant dense<0.000000e+00> : vector<24x512xf32>
    %21 = tpu.matmul %19, %20, %cst_15 {dimension_numbers = #tpu.dot_dimension_numbers<[1], [0], [0], [1], [0, 0, 1, 1], [], []>} : vector<24x4xf32>, vector<4x512xf32>, vector<24x512xf32> -> vector<24x512xf32>
    %c2_16 = arith.constant 2 : index
    %c0_17 = arith.constant 0 : index
    %c0_18 = arith.constant 0 : index
    %22 = vector.load %arg1[%c2_16, %c0_17, %c0_18] : memref<9x1x512xf32, #tpu.memory_space<vmem>>, vector<1x1x512xf32>
    %23 = vector.shape_cast %22 : vector<1x1x512xf32> to vector<1x512xf32>
    %24 = vector.broadcast %23 : vector<1x512xf32> to vector<24x512xf32>
    %25 = arith.mulf %24, %21 : vector<24x512xf32>
    %26 = arith.addf %17, %25 : vector<24x512xf32>
    %c3 = arith.constant 3 : index
    %c0_19 = arith.constant 0 : index
    %c0_20 = arith.constant 0 : index
    %27 = vector.load %arg2[%c3, %c0_19, %c0_20] : memref<9x24x4xf32, #tpu.memory_space<vmem>>, vector<1x24x4xf32>
    %28 = vector.shape_cast %27 : vector<1x24x4xf32> to vector<24x4xf32>
    %c1_i32 = arith.constant 1 : i32
    %29 = tpu.dynamic_rotate %0 by %c1_i32 dim 1 : vector<4x512xf32>, i32 -> vector<4x512xf32>
    %cst_21 = arith.constant dense<0.000000e+00> : vector<24x512xf32>
    %30 = tpu.matmul %28, %29, %cst_21 {dimension_numbers = #tpu.dot_dimension_numbers<[1], [0], [0], [1], [0, 0, 1, 1], [], []>} : vector<24x4xf32>, vector<4x512xf32>, vector<24x512xf32> -> vector<24x512xf32>
    %c3_22 = arith.constant 3 : index
    %c0_23 = arith.constant 0 : index
    %c0_24 = arith.constant 0 : index
    %31 = vector.load %arg1[%c3_22, %c0_23, %c0_24] : memref<9x1x512xf32, #tpu.memory_space<vmem>>, vector<1x1x512xf32>
    %32 = vector.shape_cast %31 : vector<1x1x512xf32> to vector<1x512xf32>
    %33 = vector.broadcast %32 : vector<1x512xf32> to vector<24x512xf32>
    %34 = arith.mulf %33, %30 : vector<24x512xf32>
    %35 = arith.addf %26, %34 : vector<24x512xf32>
    %c4 = arith.constant 4 : index
    %c0_25 = arith.constant 0 : index
    %c0_26 = arith.constant 0 : index
    %36 = vector.load %arg2[%c4, %c0_25, %c0_26] : memref<9x24x4xf32, #tpu.memory_space<vmem>>, vector<1x24x4xf32>
    %37 = vector.shape_cast %36 : vector<1x24x4xf32> to vector<24x4xf32>
    %cst_27 = arith.constant dense<0.000000e+00> : vector<24x512xf32>
    %38 = tpu.matmul %37, %0, %cst_27 {dimension_numbers = #tpu.dot_dimension_numbers<[1], [0], [0], [1], [0, 0, 1, 1], [], []>} : vector<24x4xf32>, vector<4x512xf32>, vector<24x512xf32> -> vector<24x512xf32>
    %39 = arith.addf %35, %38 : vector<24x512xf32>
    %c5 = arith.constant 5 : index
    %c0_28 = arith.constant 0 : index
    %c0_29 = arith.constant 0 : index
    %40 = vector.load %arg2[%c5, %c0_28, %c0_29] : memref<9x24x4xf32, #tpu.memory_space<vmem>>, vector<1x24x4xf32>
    %41 = vector.shape_cast %40 : vector<1x24x4xf32> to vector<24x4xf32>
    %c511_i32 = arith.constant 511 : i32
    %42 = tpu.dynamic_rotate %0 by %c511_i32 dim 1 : vector<4x512xf32>, i32 -> vector<4x512xf32>
    %cst_30 = arith.constant dense<0.000000e+00> : vector<24x512xf32>
    %43 = tpu.matmul %41, %42, %cst_30 {dimension_numbers = #tpu.dot_dimension_numbers<[1], [0], [0], [1], [0, 0, 1, 1], [], []>} : vector<24x4xf32>, vector<4x512xf32>, vector<24x512xf32> -> vector<24x512xf32>
    %c5_31 = arith.constant 5 : index
    %c0_32 = arith.constant 0 : index
    %c0_33 = arith.constant 0 : index
    %44 = vector.load %arg1[%c5_31, %c0_32, %c0_33] : memref<9x1x512xf32, #tpu.memory_space<vmem>>, vector<1x1x512xf32>
    %45 = vector.shape_cast %44 : vector<1x1x512xf32> to vector<1x512xf32>
    %46 = vector.broadcast %45 : vector<1x512xf32> to vector<24x512xf32>
    %47 = arith.mulf %46, %43 : vector<24x512xf32>
    %48 = arith.addf %39, %47 : vector<24x512xf32>
    %c6 = arith.constant 6 : index
    %c0_34 = arith.constant 0 : index
    %c0_35 = arith.constant 0 : index
    %49 = vector.load %arg2[%c6, %c0_34, %c0_35] : memref<9x24x4xf32, #tpu.memory_space<vmem>>, vector<1x24x4xf32>
    %50 = vector.shape_cast %49 : vector<1x24x4xf32> to vector<24x4xf32>
    %c497_i32 = arith.constant 497 : i32
    %51 = tpu.dynamic_rotate %0 by %c497_i32 dim 1 : vector<4x512xf32>, i32 -> vector<4x512xf32>
    %cst_36 = arith.constant dense<0.000000e+00> : vector<24x512xf32>
    %52 = tpu.matmul %50, %51, %cst_36 {dimension_numbers = #tpu.dot_dimension_numbers<[1], [0], [0], [1], [0, 0, 1, 1], [], []>} : vector<24x4xf32>, vector<4x512xf32>, vector<24x512xf32> -> vector<24x512xf32>
    %c6_37 = arith.constant 6 : index
    %c0_38 = arith.constant 0 : index
    %c0_39 = arith.constant 0 : index
    %53 = vector.load %arg1[%c6_37, %c0_38, %c0_39] : memref<9x1x512xf32, #tpu.memory_space<vmem>>, vector<1x1x512xf32>
    %54 = vector.shape_cast %53 : vector<1x1x512xf32> to vector<1x512xf32>
    %55 = vector.broadcast %54 : vector<1x512xf32> to vector<24x512xf32>
    %56 = arith.mulf %55, %52 : vector<24x512xf32>
    %57 = arith.addf %48, %56 : vector<24x512xf32>
    %c7 = arith.constant 7 : index
    %c0_40 = arith.constant 0 : index
    %c0_41 = arith.constant 0 : index
    %58 = vector.load %arg2[%c7, %c0_40, %c0_41] : memref<9x24x4xf32, #tpu.memory_space<vmem>>, vector<1x24x4xf32>
    %59 = vector.shape_cast %58 : vector<1x24x4xf32> to vector<24x4xf32>
    %c496_i32 = arith.constant 496 : i32
    %60 = tpu.dynamic_rotate %0 by %c496_i32 dim 1 : vector<4x512xf32>, i32 -> vector<4x512xf32>
    %cst_42 = arith.constant dense<0.000000e+00> : vector<24x512xf32>
    %61 = tpu.matmul %59, %60, %cst_42 {dimension_numbers = #tpu.dot_dimension_numbers<[1], [0], [0], [1], [0, 0, 1, 1], [], []>} : vector<24x4xf32>, vector<4x512xf32>, vector<24x512xf32> -> vector<24x512xf32>
    %c7_43 = arith.constant 7 : index
    %c0_44 = arith.constant 0 : index
    %c0_45 = arith.constant 0 : index
    %62 = vector.load %arg1[%c7_43, %c0_44, %c0_45] : memref<9x1x512xf32, #tpu.memory_space<vmem>>, vector<1x1x512xf32>
    %63 = vector.shape_cast %62 : vector<1x1x512xf32> to vector<1x512xf32>
    %64 = vector.broadcast %63 : vector<1x512xf32> to vector<24x512xf32>
    %65 = arith.mulf %64, %61 : vector<24x512xf32>
    %66 = arith.addf %57, %65 : vector<24x512xf32>
    %c8 = arith.constant 8 : index
    %c0_46 = arith.constant 0 : index
    %c0_47 = arith.constant 0 : index
    %67 = vector.load %arg2[%c8, %c0_46, %c0_47] : memref<9x24x4xf32, #tpu.memory_space<vmem>>, vector<1x24x4xf32>
    %68 = vector.shape_cast %67 : vector<1x24x4xf32> to vector<24x4xf32>
    %c495_i32 = arith.constant 495 : i32
    %69 = tpu.dynamic_rotate %0 by %c495_i32 dim 1 : vector<4x512xf32>, i32 -> vector<4x512xf32>
    %cst_48 = arith.constant dense<0.000000e+00> : vector<24x512xf32>
    %70 = tpu.matmul %68, %69, %cst_48 {dimension_numbers = #tpu.dot_dimension_numbers<[1], [0], [0], [1], [0, 0, 1, 1], [], []>} : vector<24x4xf32>, vector<4x512xf32>, vector<24x512xf32> -> vector<24x512xf32>
    %c8_49 = arith.constant 8 : index
    %c0_50 = arith.constant 0 : index
    %c0_51 = arith.constant 0 : index
    %71 = vector.load %arg1[%c8_49, %c0_50, %c0_51] : memref<9x1x512xf32, #tpu.memory_space<vmem>>, vector<1x1x512xf32>
    %72 = vector.shape_cast %71 : vector<1x1x512xf32> to vector<1x512xf32>
    %73 = vector.broadcast %72 : vector<1x512xf32> to vector<24x512xf32>
    %74 = arith.mulf %73, %70 : vector<24x512xf32>
    %75 = arith.addf %66, %74 : vector<24x512xf32>
    %c0_52 = arith.constant 0 : index
    %c0_53 = arith.constant 0 : index
    %76 = vector.load %arg3[%c0_52, %c0_53] : memref<24x1xf32, #tpu.memory_space<vmem>>, vector<24x1xf32>
    %77 = vector.broadcast %76 : vector<24x1xf32> to vector<24x512xf32>
    %78 = arith.addf %75, %77 : vector<24x512xf32>
    %79 = vector.extract_strided_slice %78 {offsets = [0, 0], sizes = [4, 512], strides = [1, 1]} : vector<24x512xf32> to vector<4x512xf32>
    %80 = vector.extract_strided_slice %78 {offsets = [4, 0], sizes = [16, 512], strides = [1, 1]} : vector<24x512xf32> to vector<16x512xf32>
    %c0_54 = arith.constant 0 : index
    %c0_55 = arith.constant 0 : index
    %81 = vector.load %arg4[%c0_54, %c0_55] : memref<16x1xf32, #tpu.memory_space<vmem>>, vector<16x1xf32>
    %c0_56 = arith.constant 0 : index
    %c0_57 = arith.constant 0 : index
    %82 = vector.load %arg5[%c0_56, %c0_57] : memref<16x1xf32, #tpu.memory_space<vmem>>, vector<16x1xf32>
    %cst_58 = arith.constant dense<0.000000e+00> : vector<16xf32>
    %83 = vector.multi_reduction <add>, %80, %cst_58 [1] : vector<16x512xf32> to vector<16xf32>
    %84 = vector.shape_cast %83 : vector<16xf32> to vector<16x1xf32>
    %cst_59 = arith.constant 5.120000e+02 : f32
    %85 = vector.broadcast %cst_59 : f32 to vector<16x1xf32>
    %86 = arith.divf %84, %85 : vector<16x1xf32>
    %87 = vector.broadcast %86 : vector<16x1xf32> to vector<16x512xf32>
    %88 = arith.subf %80, %87 : vector<16x512xf32>
    %89 = arith.mulf %88, %88 : vector<16x512xf32>
    %cst_60 = arith.constant dense<0.000000e+00> : vector<16xf32>
    %90 = vector.multi_reduction <add>, %89, %cst_60 [1] : vector<16x512xf32> to vector<16xf32>
    %91 = vector.shape_cast %90 : vector<16xf32> to vector<16x1xf32>
    %cst_61 = arith.constant 5.120000e+02 : f32
    %92 = vector.broadcast %cst_61 : f32 to vector<16x1xf32>
    %93 = arith.divf %91, %92 : vector<16x1xf32>
    %cst_62 = arith.constant 9.99999974E-6 : f32
    %94 = vector.broadcast %cst_62 : f32 to vector<16x1xf32>
    %95 = arith.addf %93, %94 : vector<16x1xf32>
    %96 = math.rsqrt %95 : vector<16x1xf32>
    %97 = vector.broadcast %96 : vector<16x1xf32> to vector<16x512xf32>
    %98 = arith.mulf %88, %97 : vector<16x512xf32>
    %99 = vector.broadcast %81 : vector<16x1xf32> to vector<16x512xf32>
    %100 = arith.mulf %98, %99 : vector<16x512xf32>
    %101 = vector.broadcast %82 : vector<16x1xf32> to vector<16x512xf32>
    %102 = arith.addf %100, %101 : vector<16x512xf32>
    %103 = vector.extract_strided_slice %102 {offsets = [0, 0], sizes = [4, 512], strides = [1, 1]} : vector<16x512xf32> to vector<4x512xf32>
    %104 = vector.extract_strided_slice %102 {offsets = [4, 0], sizes = [4, 512], strides = [1, 1]} : vector<16x512xf32> to vector<4x512xf32>
    %105 = arith.addf %103, %104 : vector<4x512xf32>
    %106 = vector.extract_strided_slice %102 {offsets = [8, 0], sizes = [4, 512], strides = [1, 1]} : vector<16x512xf32> to vector<4x512xf32>
    %107 = arith.addf %105, %106 : vector<4x512xf32>
    %108 = vector.extract_strided_slice %102 {offsets = [12, 0], sizes = [4, 512], strides = [1, 1]} : vector<16x512xf32> to vector<4x512xf32>
    %109 = vector.extract_strided_slice %78 {offsets = [20, 0], sizes = [4, 512], strides = [1, 1]} : vector<24x512xf32> to vector<4x512xf32>
    %cst_63 = arith.constant 0.000000e+00 : f32
    %110 = vector.broadcast %cst_63 : f32 to vector<4x512xf32>
    %111 = arith.maximumf %109, %110 : vector<4x512xf32>
    %112 = vector.extract_strided_slice %111 {offsets = [0, 0], sizes = [2, 512], strides = [1, 1]} : vector<4x512xf32> to vector<2x512xf32>
    %113 = vector.extract_strided_slice %111 {offsets = [2, 0], sizes = [2, 512], strides = [1, 1]} : vector<4x512xf32> to vector<2x512xf32>
    %c0_64 = arith.constant 0 : index
    %c0_65 = arith.constant 0 : index
    %114 = vector.load %arg6[%c0_64, %c0_65] : memref<4x2xf32, #tpu.memory_space<vmem>>, vector<4x2xf32>
    %cst_66 = arith.constant dense<0.000000e+00> : vector<4x512xf32>
    %115 = tpu.matmul %114, %112, %cst_66 {dimension_numbers = #tpu.dot_dimension_numbers<[1], [0], [0], [1], [0, 0, 1, 1], [], []>} : vector<4x2xf32>, vector<2x512xf32>, vector<4x512xf32> -> vector<4x512xf32>
    %c0_67 = arith.constant 0 : index
    %c0_68 = arith.constant 0 : index
    %116 = vector.load %arg7[%c0_67, %c0_68] : memref<4x1xf32, #tpu.memory_space<vmem>>, vector<4x1xf32>
    %117 = vector.broadcast %116 : vector<4x1xf32> to vector<4x512xf32>
    %118 = arith.addf %115, %117 : vector<4x512xf32>
    %c0_69 = arith.constant 0 : index
    %c0_70 = arith.constant 0 : index
    %119 = vector.load %arg8[%c0_69, %c0_70] : memref<4x2xf32, #tpu.memory_space<vmem>>, vector<4x2xf32>
    %cst_71 = arith.constant dense<0.000000e+00> : vector<4x512xf32>
    %120 = tpu.matmul %119, %113, %cst_71 {dimension_numbers = #tpu.dot_dimension_numbers<[1], [0], [0], [1], [0, 0, 1, 1], [], []>} : vector<4x2xf32>, vector<2x512xf32>, vector<4x512xf32> -> vector<4x512xf32>
    %c0_72 = arith.constant 0 : index
    %c0_73 = arith.constant 0 : index
    %121 = vector.load %arg9[%c0_72, %c0_73] : memref<4x1xf32, #tpu.memory_space<vmem>>, vector<4x1xf32>
    %122 = vector.broadcast %121 : vector<4x1xf32> to vector<4x512xf32>
    %123 = arith.addf %120, %122 : vector<4x512xf32>
    %c0_74 = arith.constant 0 : index
    %c0_75 = arith.constant 0 : index
    %124 = vector.load %arg10[%c0_74, %c0_75] : memref<4x2xf32, #tpu.memory_space<vmem>>, vector<4x2xf32>
    %cst_76 = arith.constant dense<0.000000e+00> : vector<4x512xf32>
    %125 = tpu.matmul %124, %113, %cst_76 {dimension_numbers = #tpu.dot_dimension_numbers<[1], [0], [0], [1], [0, 0, 1, 1], [], []>} : vector<4x2xf32>, vector<2x512xf32>, vector<4x512xf32> -> vector<4x512xf32>
    %c0_77 = arith.constant 0 : index
    %c0_78 = arith.constant 0 : index
    %126 = vector.load %arg11[%c0_77, %c0_78] : memref<4x1xf32, #tpu.memory_space<vmem>>, vector<4x1xf32>
    %127 = vector.broadcast %126 : vector<4x1xf32> to vector<4x512xf32>
    %128 = arith.addf %125, %127 : vector<4x512xf32>
    %129 = vector.extract_strided_slice %118 {offsets = [0, 0], sizes = [4, 256], strides = [1, 1]} : vector<4x512xf32> to vector<4x256xf32>
    %130 = vector.extract_strided_slice %123 {offsets = [0, 0], sizes = [4, 256], strides = [1, 1]} : vector<4x512xf32> to vector<4x256xf32>
    %cst_79 = arith.constant dense<0.000000e+00> : vector<4x4xf32>
    %131 = tpu.matmul %129, %130, %cst_79 {dimension_numbers = #tpu.dot_dimension_numbers<[1], [1], [0], [0], [0, 0, 1, 0], [], []>} : vector<4x256xf32>, vector<4x256xf32>, vector<4x4xf32> -> vector<4x4xf32>
    %cst_80 = arith.constant 0.0625000075 : f32
    %132 = vector.broadcast %cst_80 : f32 to vector<4x4xf32>
    %133 = arith.mulf %131, %132 : vector<4x4xf32>
    %134 = vector.extract_strided_slice %118 {offsets = [0, 256], sizes = [4, 256], strides = [1, 1]} : vector<4x512xf32> to vector<4x256xf32>
    %135 = vector.extract_strided_slice %123 {offsets = [0, 256], sizes = [4, 256], strides = [1, 1]} : vector<4x512xf32> to vector<4x256xf32>
    %cst_81 = arith.constant dense<0.000000e+00> : vector<4x4xf32>
    %136 = tpu.matmul %134, %135, %cst_81 {dimension_numbers = #tpu.dot_dimension_numbers<[1], [1], [0], [0], [0, 0, 1, 0], [], []>} : vector<4x256xf32>, vector<4x256xf32>, vector<4x4xf32> -> vector<4x4xf32>
    %cst_82 = arith.constant 0.0625000075 : f32
    %137 = vector.broadcast %cst_82 : f32 to vector<4x4xf32>
    %138 = arith.mulf %136, %137 : vector<4x4xf32>
    %139 = arith.maximumf %133, %138 : vector<4x4xf32>
    %140 = arith.subf %133, %139 : vector<4x4xf32>
    %141 = math.exp %140 : vector<4x4xf32>
    %142 = arith.subf %138, %139 : vector<4x4xf32>
    %143 = math.exp %142 : vector<4x4xf32>
    %144 = arith.addf %141, %143 : vector<4x4xf32>
    %145 = arith.divf %141, %144 : vector<4x4xf32>
    %146 = vector.extract_strided_slice %128 {offsets = [0, 0], sizes = [4, 256], strides = [1, 1]} : vector<4x512xf32> to vector<4x256xf32>
    %cst_83 = arith.constant dense<0.000000e+00> : vector<4x256xf32>
    %147 = tpu.matmul %145, %146, %cst_83 {dimension_numbers = #tpu.dot_dimension_numbers<[1], [0], [0], [1], [0, 0, 1, 1], [], []>} : vector<4x4xf32>, vector<4x256xf32>, vector<4x256xf32> -> vector<4x256xf32>
    %148 = arith.divf %143, %144 : vector<4x4xf32>
    %149 = vector.extract_strided_slice %128 {offsets = [0, 256], sizes = [4, 256], strides = [1, 1]} : vector<4x512xf32> to vector<4x256xf32>
    %cst_84 = arith.constant dense<0.000000e+00> : vector<4x256xf32>
    %150 = tpu.matmul %148, %149, %cst_84 {dimension_numbers = #tpu.dot_dimension_numbers<[1], [0], [0], [1], [0, 0, 1, 1], [], []>} : vector<4x4xf32>, vector<4x256xf32>, vector<4x256xf32> -> vector<4x256xf32>
    %151 = tpu.concatenate %147, %150 in 1 : vector<4x256xf32>, vector<4x256xf32> -> vector<4x512xf32>
    %c0_85 = arith.constant 0 : index
    %c0_86 = arith.constant 0 : index
    %c0_87 = arith.constant 0 : index
    %152 = vector.load %arg12[%c0_85, %c0_86, %c0_87] : memref<9x4x4xf32, #tpu.memory_space<vmem>>, vector<1x4x4xf32>
    %153 = vector.shape_cast %152 : vector<1x4x4xf32> to vector<4x4xf32>
    %c17_i32_88 = arith.constant 17 : i32
    %154 = tpu.dynamic_rotate %151 by %c17_i32_88 dim 1 : vector<4x512xf32>, i32 -> vector<4x512xf32>
    %cst_89 = arith.constant dense<0.000000e+00> : vector<4x512xf32>
    %155 = tpu.matmul %153, %154, %cst_89 {dimension_numbers = #tpu.dot_dimension_numbers<[1], [0], [0], [1], [0, 0, 1, 1], [], []>} : vector<4x4xf32>, vector<4x512xf32>, vector<4x512xf32> -> vector<4x512xf32>
    %c0_90 = arith.constant 0 : index
    %c0_91 = arith.constant 0 : index
    %c0_92 = arith.constant 0 : index
    %156 = vector.load %arg1[%c0_90, %c0_91, %c0_92] : memref<9x1x512xf32, #tpu.memory_space<vmem>>, vector<1x1x512xf32>
    %157 = vector.shape_cast %156 : vector<1x1x512xf32> to vector<1x512xf32>
    %158 = vector.broadcast %157 : vector<1x512xf32> to vector<4x512xf32>
    %159 = arith.mulf %158, %155 : vector<4x512xf32>
    %c1_93 = arith.constant 1 : index
    %c0_94 = arith.constant 0 : index
    %c0_95 = arith.constant 0 : index
    %160 = vector.load %arg12[%c1_93, %c0_94, %c0_95] : memref<9x4x4xf32, #tpu.memory_space<vmem>>, vector<1x4x4xf32>
    %161 = vector.shape_cast %160 : vector<1x4x4xf32> to vector<4x4xf32>
    %c16_i32_96 = arith.constant 16 : i32
    %162 = tpu.dynamic_rotate %151 by %c16_i32_96 dim 1 : vector<4x512xf32>, i32 -> vector<4x512xf32>
    %cst_97 = arith.constant dense<0.000000e+00> : vector<4x512xf32>
    %163 = tpu.matmul %161, %162, %cst_97 {dimension_numbers = #tpu.dot_dimension_numbers<[1], [0], [0], [1], [0, 0, 1, 1], [], []>} : vector<4x4xf32>, vector<4x512xf32>, vector<4x512xf32> -> vector<4x512xf32>
    %c1_98 = arith.constant 1 : index
    %c0_99 = arith.constant 0 : index
    %c0_100 = arith.constant 0 : index
    %164 = vector.load %arg1[%c1_98, %c0_99, %c0_100] : memref<9x1x512xf32, #tpu.memory_space<vmem>>, vector<1x1x512xf32>
    %165 = vector.shape_cast %164 : vector<1x1x512xf32> to vector<1x512xf32>
    %166 = vector.broadcast %165 : vector<1x512xf32> to vector<4x512xf32>
    %167 = arith.mulf %166, %163 : vector<4x512xf32>
    %168 = arith.addf %159, %167 : vector<4x512xf32>
    %c2_101 = arith.constant 2 : index
    %c0_102 = arith.constant 0 : index
    %c0_103 = arith.constant 0 : index
    %169 = vector.load %arg12[%c2_101, %c0_102, %c0_103] : memref<9x4x4xf32, #tpu.memory_space<vmem>>, vector<1x4x4xf32>
    %170 = vector.shape_cast %169 : vector<1x4x4xf32> to vector<4x4xf32>
    %c15_i32_104 = arith.constant 15 : i32
    %171 = tpu.dynamic_rotate %151 by %c15_i32_104 dim 1 : vector<4x512xf32>, i32 -> vector<4x512xf32>
    %cst_105 = arith.constant dense<0.000000e+00> : vector<4x512xf32>
    %172 = tpu.matmul %170, %171, %cst_105 {dimension_numbers = #tpu.dot_dimension_numbers<[1], [0], [0], [1], [0, 0, 1, 1], [], []>} : vector<4x4xf32>, vector<4x512xf32>, vector<4x512xf32> -> vector<4x512xf32>
    %c2_106 = arith.constant 2 : index
    %c0_107 = arith.constant 0 : index
    %c0_108 = arith.constant 0 : index
    %173 = vector.load %arg1[%c2_106, %c0_107, %c0_108] : memref<9x1x512xf32, #tpu.memory_space<vmem>>, vector<1x1x512xf32>
    %174 = vector.shape_cast %173 : vector<1x1x512xf32> to vector<1x512xf32>
    %175 = vector.broadcast %174 : vector<1x512xf32> to vector<4x512xf32>
    %176 = arith.mulf %175, %172 : vector<4x512xf32>
    %177 = arith.addf %168, %176 : vector<4x512xf32>
    %c3_109 = arith.constant 3 : index
    %c0_110 = arith.constant 0 : index
    %c0_111 = arith.constant 0 : index
    %178 = vector.load %arg12[%c3_109, %c0_110, %c0_111] : memref<9x4x4xf32, #tpu.memory_space<vmem>>, vector<1x4x4xf32>
    %179 = vector.shape_cast %178 : vector<1x4x4xf32> to vector<4x4xf32>
    %c1_i32_112 = arith.constant 1 : i32
    %180 = tpu.dynamic_rotate %151 by %c1_i32_112 dim 1 : vector<4x512xf32>, i32 -> vector<4x512xf32>
    %cst_113 = arith.constant dense<0.000000e+00> : vector<4x512xf32>
    %181 = tpu.matmul %179, %180, %cst_113 {dimension_numbers = #tpu.dot_dimension_numbers<[1], [0], [0], [1], [0, 0, 1, 1], [], []>} : vector<4x4xf32>, vector<4x512xf32>, vector<4x512xf32> -> vector<4x512xf32>
    %c3_114 = arith.constant 3 : index
    %c0_115 = arith.constant 0 : index
    %c0_116 = arith.constant 0 : index
    %182 = vector.load %arg1[%c3_114, %c0_115, %c0_116] : memref<9x1x512xf32, #tpu.memory_space<vmem>>, vector<1x1x512xf32>
    %183 = vector.shape_cast %182 : vector<1x1x512xf32> to vector<1x512xf32>
    %184 = vector.broadcast %183 : vector<1x512xf32> to vector<4x512xf32>
    %185 = arith.mulf %184, %181 : vector<4x512xf32>
    %186 = arith.addf %177, %185 : vector<4x512xf32>
    %c4_117 = arith.constant 4 : index
    %c0_118 = arith.constant 0 : index
    %c0_119 = arith.constant 0 : index
    %187 = vector.load %arg12[%c4_117, %c0_118, %c0_119] : memref<9x4x4xf32, #tpu.memory_space<vmem>>, vector<1x4x4xf32>
    %188 = vector.shape_cast %187 : vector<1x4x4xf32> to vector<4x4xf32>
    %cst_120 = arith.constant dense<0.000000e+00> : vector<4x512xf32>
    %189 = tpu.matmul %188, %151, %cst_120 {dimension_numbers = #tpu.dot_dimension_numbers<[1], [0], [0], [1], [0, 0, 1, 1], [], []>} : vector<4x4xf32>, vector<4x512xf32>, vector<4x512xf32> -> vector<4x512xf32>
    %190 = arith.addf %186, %189 : vector<4x512xf32>
    %c5_121 = arith.constant 5 : index
    %c0_122 = arith.constant 0 : index
    %c0_123 = arith.constant 0 : index
    %191 = vector.load %arg12[%c5_121, %c0_122, %c0_123] : memref<9x4x4xf32, #tpu.memory_space<vmem>>, vector<1x4x4xf32>
    %192 = vector.shape_cast %191 : vector<1x4x4xf32> to vector<4x4xf32>
    %c511_i32_124 = arith.constant 511 : i32
    %193 = tpu.dynamic_rotate %151 by %c511_i32_124 dim 1 : vector<4x512xf32>, i32 -> vector<4x512xf32>
    %cst_125 = arith.constant dense<0.000000e+00> : vector<4x512xf32>
    %194 = tpu.matmul %192, %193, %cst_125 {dimension_numbers = #tpu.dot_dimension_numbers<[1], [0], [0], [1], [0, 0, 1, 1], [], []>} : vector<4x4xf32>, vector<4x512xf32>, vector<4x512xf32> -> vector<4x512xf32>
    %c5_126 = arith.constant 5 : index
    %c0_127 = arith.constant 0 : index
    %c0_128 = arith.constant 0 : index
    %195 = vector.load %arg1[%c5_126, %c0_127, %c0_128] : memref<9x1x512xf32, #tpu.memory_space<vmem>>, vector<1x1x512xf32>
    %196 = vector.shape_cast %195 : vector<1x1x512xf32> to vector<1x512xf32>
    %197 = vector.broadcast %196 : vector<1x512xf32> to vector<4x512xf32>
    %198 = arith.mulf %197, %194 : vector<4x512xf32>
    %199 = arith.addf %190, %198 : vector<4x512xf32>
    %c6_129 = arith.constant 6 : index
    %c0_130 = arith.constant 0 : index
    %c0_131 = arith.constant 0 : index
    %200 = vector.load %arg12[%c6_129, %c0_130, %c0_131] : memref<9x4x4xf32, #tpu.memory_space<vmem>>, vector<1x4x4xf32>
    %201 = vector.shape_cast %200 : vector<1x4x4xf32> to vector<4x4xf32>
    %c497_i32_132 = arith.constant 497 : i32
    %202 = tpu.dynamic_rotate %151 by %c497_i32_132 dim 1 : vector<4x512xf32>, i32 -> vector<4x512xf32>
    %cst_133 = arith.constant dense<0.000000e+00> : vector<4x512xf32>
    %203 = tpu.matmul %201, %202, %cst_133 {dimension_numbers = #tpu.dot_dimension_numbers<[1], [0], [0], [1], [0, 0, 1, 1], [], []>} : vector<4x4xf32>, vector<4x512xf32>, vector<4x512xf32> -> vector<4x512xf32>
    %c6_134 = arith.constant 6 : index
    %c0_135 = arith.constant 0 : index
    %c0_136 = arith.constant 0 : index
    %204 = vector.load %arg1[%c6_134, %c0_135, %c0_136] : memref<9x1x512xf32, #tpu.memory_space<vmem>>, vector<1x1x512xf32>
    %205 = vector.shape_cast %204 : vector<1x1x512xf32> to vector<1x512xf32>
    %206 = vector.broadcast %205 : vector<1x512xf32> to vector<4x512xf32>
    %207 = arith.mulf %206, %203 : vector<4x512xf32>
    %208 = arith.addf %199, %207 : vector<4x512xf32>
    %c7_137 = arith.constant 7 : index
    %c0_138 = arith.constant 0 : index
    %c0_139 = arith.constant 0 : index
    %209 = vector.load %arg12[%c7_137, %c0_138, %c0_139] : memref<9x4x4xf32, #tpu.memory_space<vmem>>, vector<1x4x4xf32>
    %210 = vector.shape_cast %209 : vector<1x4x4xf32> to vector<4x4xf32>
    %c496_i32_140 = arith.constant 496 : i32
    %211 = tpu.dynamic_rotate %151 by %c496_i32_140 dim 1 : vector<4x512xf32>, i32 -> vector<4x512xf32>
    %cst_141 = arith.constant dense<0.000000e+00> : vector<4x512xf32>
    %212 = tpu.matmul %210, %211, %cst_141 {dimension_numbers = #tpu.dot_dimension_numbers<[1], [0], [0], [1], [0, 0, 1, 1], [], []>} : vector<4x4xf32>, vector<4x512xf32>, vector<4x512xf32> -> vector<4x512xf32>
    %c7_142 = arith.constant 7 : index
    %c0_143 = arith.constant 0 : index
    %c0_144 = arith.constant 0 : index
    %213 = vector.load %arg1[%c7_142, %c0_143, %c0_144] : memref<9x1x512xf32, #tpu.memory_space<vmem>>, vector<1x1x512xf32>
    %214 = vector.shape_cast %213 : vector<1x1x512xf32> to vector<1x512xf32>
    %215 = vector.broadcast %214 : vector<1x512xf32> to vector<4x512xf32>
    %216 = arith.mulf %215, %212 : vector<4x512xf32>
    %217 = arith.addf %208, %216 : vector<4x512xf32>
    %c8_145 = arith.constant 8 : index
    %c0_146 = arith.constant 0 : index
    %c0_147 = arith.constant 0 : index
    %218 = vector.load %arg12[%c8_145, %c0_146, %c0_147] : memref<9x4x4xf32, #tpu.memory_space<vmem>>, vector<1x4x4xf32>
    %219 = vector.shape_cast %218 : vector<1x4x4xf32> to vector<4x4xf32>
    %c495_i32_148 = arith.constant 495 : i32
    %220 = tpu.dynamic_rotate %151 by %c495_i32_148 dim 1 : vector<4x512xf32>, i32 -> vector<4x512xf32>
    %cst_149 = arith.constant dense<0.000000e+00> : vector<4x512xf32>
    %221 = tpu.matmul %219, %220, %cst_149 {dimension_numbers = #tpu.dot_dimension_numbers<[1], [0], [0], [1], [0, 0, 1, 1], [], []>} : vector<4x4xf32>, vector<4x512xf32>, vector<4x512xf32> -> vector<4x512xf32>
    %c8_150 = arith.constant 8 : index
    %c0_151 = arith.constant 0 : index
    %c0_152 = arith.constant 0 : index
    %222 = vector.load %arg1[%c8_150, %c0_151, %c0_152] : memref<9x1x512xf32, #tpu.memory_space<vmem>>, vector<1x1x512xf32>
    %223 = vector.shape_cast %222 : vector<1x1x512xf32> to vector<1x512xf32>
    %224 = vector.broadcast %223 : vector<1x512xf32> to vector<4x512xf32>
    %225 = arith.mulf %224, %221 : vector<4x512xf32>
    %226 = arith.addf %217, %225 : vector<4x512xf32>
    %c0_153 = arith.constant 0 : index
    %c0_154 = arith.constant 0 : index
    %227 = vector.load %arg13[%c0_153, %c0_154] : memref<4x1xf32, #tpu.memory_space<vmem>>, vector<4x1xf32>
    %c0_155 = arith.constant 0 : index
    %c0_156 = arith.constant 0 : index
    %228 = vector.load %arg14[%c0_155, %c0_156] : memref<4x1xf32, #tpu.memory_space<vmem>>, vector<4x1xf32>
    %cst_157 = arith.constant dense<0.000000e+00> : vector<4xf32>
    %229 = vector.multi_reduction <add>, %226, %cst_157 [1] : vector<4x512xf32> to vector<4xf32>
    %230 = vector.shape_cast %229 : vector<4xf32> to vector<4x1xf32>
    %cst_158 = arith.constant 5.120000e+02 : f32
    %231 = vector.broadcast %cst_158 : f32 to vector<4x1xf32>
    %232 = arith.divf %230, %231 : vector<4x1xf32>
    %233 = vector.broadcast %232 : vector<4x1xf32> to vector<4x512xf32>
    %234 = arith.subf %226, %233 : vector<4x512xf32>
    %235 = arith.mulf %234, %234 : vector<4x512xf32>
    %cst_159 = arith.constant dense<0.000000e+00> : vector<4xf32>
    %236 = vector.multi_reduction <add>, %235, %cst_159 [1] : vector<4x512xf32> to vector<4xf32>
    %237 = vector.shape_cast %236 : vector<4xf32> to vector<4x1xf32>
    %cst_160 = arith.constant 5.120000e+02 : f32
    %238 = vector.broadcast %cst_160 : f32 to vector<4x1xf32>
    %239 = arith.divf %237, %238 : vector<4x1xf32>
    %cst_161 = arith.constant 9.99999974E-6 : f32
    %240 = vector.broadcast %cst_161 : f32 to vector<4x1xf32>
    %241 = arith.addf %239, %240 : vector<4x1xf32>
    %242 = math.rsqrt %241 : vector<4x1xf32>
    %243 = vector.broadcast %242 : vector<4x1xf32> to vector<4x512xf32>
    %244 = arith.mulf %234, %243 : vector<4x512xf32>
    %245 = vector.broadcast %227 : vector<4x1xf32> to vector<4x512xf32>
    %246 = arith.mulf %244, %245 : vector<4x512xf32>
    %247 = vector.broadcast %228 : vector<4x1xf32> to vector<4x512xf32>
    %248 = arith.addf %246, %247 : vector<4x512xf32>
    %c0_162 = arith.constant 0 : index
    %c0_163 = arith.constant 0 : index
    %249 = vector.load %arg15[%c0_162, %c0_163] : memref<1x1xf32, #tpu.memory_space<vmem>>, vector<1x1xf32>
    %250 = vector.broadcast %249 : vector<1x1xf32> to vector<4x512xf32>
    %251 = arith.mulf %250, %248 : vector<4x512xf32>
    %252 = arith.addf %251, %108 : vector<4x512xf32>
    %c0_164 = arith.constant 0 : index
    %c0_165 = arith.constant 0 : index
    %c0_166 = arith.constant 0 : index
    %253 = vector.load %arg16[%c0_164, %c0_165, %c0_166] : memref<9x4x4xf32, #tpu.memory_space<vmem>>, vector<1x4x4xf32>
    %254 = vector.shape_cast %253 : vector<1x4x4xf32> to vector<4x4xf32>
    %c17_i32_167 = arith.constant 17 : i32
    %255 = tpu.dynamic_rotate %252 by %c17_i32_167 dim 1 : vector<4x512xf32>, i32 -> vector<4x512xf32>
    %cst_168 = arith.constant dense<0.000000e+00> : vector<4x512xf32>
    %256 = tpu.matmul %254, %255, %cst_168 {dimension_numbers = #tpu.dot_dimension_numbers<[1], [0], [0], [1], [0, 0, 1, 1], [], []>} : vector<4x4xf32>, vector<4x512xf32>, vector<4x512xf32> -> vector<4x512xf32>
    %c0_169 = arith.constant 0 : index
    %c0_170 = arith.constant 0 : index
    %c0_171 = arith.constant 0 : index
    %257 = vector.load %arg17[%c0_169, %c0_170, %c0_171] : memref<9x4x4xf32, #tpu.memory_space<vmem>>, vector<1x4x4xf32>
    %258 = vector.shape_cast %257 : vector<1x4x4xf32> to vector<4x4xf32>
    %c17_i32_172 = arith.constant 17 : i32
    %259 = tpu.dynamic_rotate %108 by %c17_i32_172 dim 1 : vector<4x512xf32>, i32 -> vector<4x512xf32>
    %cst_173 = arith.constant dense<0.000000e+00> : vector<4x512xf32>
    %260 = tpu.matmul %258, %259, %cst_173 {dimension_numbers = #tpu.dot_dimension_numbers<[1], [0], [0], [1], [0, 0, 1, 1], [], []>} : vector<4x4xf32>, vector<4x512xf32>, vector<4x512xf32> -> vector<4x512xf32>
    %261 = arith.addf %256, %260 : vector<4x512xf32>
    %c0_174 = arith.constant 0 : index
    %c0_175 = arith.constant 0 : index
    %c0_176 = arith.constant 0 : index
    %262 = vector.load %arg1[%c0_174, %c0_175, %c0_176] : memref<9x1x512xf32, #tpu.memory_space<vmem>>, vector<1x1x512xf32>
    %263 = vector.shape_cast %262 : vector<1x1x512xf32> to vector<1x512xf32>
    %264 = vector.broadcast %263 : vector<1x512xf32> to vector<4x512xf32>
    %265 = arith.mulf %264, %261 : vector<4x512xf32>
    %c1_177 = arith.constant 1 : index
    %c0_178 = arith.constant 0 : index
    %c0_179 = arith.constant 0 : index
    %266 = vector.load %arg16[%c1_177, %c0_178, %c0_179] : memref<9x4x4xf32, #tpu.memory_space<vmem>>, vector<1x4x4xf32>
    %267 = vector.shape_cast %266 : vector<1x4x4xf32> to vector<4x4xf32>
    %c16_i32_180 = arith.constant 16 : i32
    %268 = tpu.dynamic_rotate %252 by %c16_i32_180 dim 1 : vector<4x512xf32>, i32 -> vector<4x512xf32>
    %cst_181 = arith.constant dense<0.000000e+00> : vector<4x512xf32>
    %269 = tpu.matmul %267, %268, %cst_181 {dimension_numbers = #tpu.dot_dimension_numbers<[1], [0], [0], [1], [0, 0, 1, 1], [], []>} : vector<4x4xf32>, vector<4x512xf32>, vector<4x512xf32> -> vector<4x512xf32>
    %c1_182 = arith.constant 1 : index
    %c0_183 = arith.constant 0 : index
    %c0_184 = arith.constant 0 : index
    %270 = vector.load %arg17[%c1_182, %c0_183, %c0_184] : memref<9x4x4xf32, #tpu.memory_space<vmem>>, vector<1x4x4xf32>
    %271 = vector.shape_cast %270 : vector<1x4x4xf32> to vector<4x4xf32>
    %c16_i32_185 = arith.constant 16 : i32
    %272 = tpu.dynamic_rotate %108 by %c16_i32_185 dim 1 : vector<4x512xf32>, i32 -> vector<4x512xf32>
    %cst_186 = arith.constant dense<0.000000e+00> : vector<4x512xf32>
    %273 = tpu.matmul %271, %272, %cst_186 {dimension_numbers = #tpu.dot_dimension_numbers<[1], [0], [0], [1], [0, 0, 1, 1], [], []>} : vector<4x4xf32>, vector<4x512xf32>, vector<4x512xf32> -> vector<4x512xf32>
    %274 = arith.addf %269, %273 : vector<4x512xf32>
    %c1_187 = arith.constant 1 : index
    %c0_188 = arith.constant 0 : index
    %c0_189 = arith.constant 0 : index
    %275 = vector.load %arg1[%c1_187, %c0_188, %c0_189] : memref<9x1x512xf32, #tpu.memory_space<vmem>>, vector<1x1x512xf32>
    %276 = vector.shape_cast %275 : vector<1x1x512xf32> to vector<1x512xf32>
    %277 = vector.broadcast %276 : vector<1x512xf32> to vector<4x512xf32>
    %278 = arith.mulf %277, %274 : vector<4x512xf32>
    %279 = arith.addf %265, %278 : vector<4x512xf32>
    %c2_190 = arith.constant 2 : index
    %c0_191 = arith.constant 0 : index
    %c0_192 = arith.constant 0 : index
    %280 = vector.load %arg16[%c2_190, %c0_191, %c0_192] : memref<9x4x4xf32, #tpu.memory_space<vmem>>, vector<1x4x4xf32>
    %281 = vector.shape_cast %280 : vector<1x4x4xf32> to vector<4x4xf32>
    %c15_i32_193 = arith.constant 15 : i32
    %282 = tpu.dynamic_rotate %252 by %c15_i32_193 dim 1 : vector<4x512xf32>, i32 -> vector<4x512xf32>
    %cst_194 = arith.constant dense<0.000000e+00> : vector<4x512xf32>
    %283 = tpu.matmul %281, %282, %cst_194 {dimension_numbers = #tpu.dot_dimension_numbers<[1], [0], [0], [1], [0, 0, 1, 1], [], []>} : vector<4x4xf32>, vector<4x512xf32>, vector<4x512xf32> -> vector<4x512xf32>
    %c2_195 = arith.constant 2 : index
    %c0_196 = arith.constant 0 : index
    %c0_197 = arith.constant 0 : index
    %284 = vector.load %arg17[%c2_195, %c0_196, %c0_197] : memref<9x4x4xf32, #tpu.memory_space<vmem>>, vector<1x4x4xf32>
    %285 = vector.shape_cast %284 : vector<1x4x4xf32> to vector<4x4xf32>
    %c15_i32_198 = arith.constant 15 : i32
    %286 = tpu.dynamic_rotate %108 by %c15_i32_198 dim 1 : vector<4x512xf32>, i32 -> vector<4x512xf32>
    %cst_199 = arith.constant dense<0.000000e+00> : vector<4x512xf32>
    %287 = tpu.matmul %285, %286, %cst_199 {dimension_numbers = #tpu.dot_dimension_numbers<[1], [0], [0], [1], [0, 0, 1, 1], [], []>} : vector<4x4xf32>, vector<4x512xf32>, vector<4x512xf32> -> vector<4x512xf32>
    %288 = arith.addf %283, %287 : vector<4x512xf32>
    %c2_200 = arith.constant 2 : index
    %c0_201 = arith.constant 0 : index
    %c0_202 = arith.constant 0 : index
    %289 = vector.load %arg1[%c2_200, %c0_201, %c0_202] : memref<9x1x512xf32, #tpu.memory_space<vmem>>, vector<1x1x512xf32>
    %290 = vector.shape_cast %289 : vector<1x1x512xf32> to vector<1x512xf32>
    %291 = vector.broadcast %290 : vector<1x512xf32> to vector<4x512xf32>
    %292 = arith.mulf %291, %288 : vector<4x512xf32>
    %293 = arith.addf %279, %292 : vector<4x512xf32>
    %c3_203 = arith.constant 3 : index
    %c0_204 = arith.constant 0 : index
    %c0_205 = arith.constant 0 : index
    %294 = vector.load %arg16[%c3_203, %c0_204, %c0_205] : memref<9x4x4xf32, #tpu.memory_space<vmem>>, vector<1x4x4xf32>
    %295 = vector.shape_cast %294 : vector<1x4x4xf32> to vector<4x4xf32>
    %c1_i32_206 = arith.constant 1 : i32
    %296 = tpu.dynamic_rotate %252 by %c1_i32_206 dim 1 : vector<4x512xf32>, i32 -> vector<4x512xf32>
    %cst_207 = arith.constant dense<0.000000e+00> : vector<4x512xf32>
    %297 = tpu.matmul %295, %296, %cst_207 {dimension_numbers = #tpu.dot_dimension_numbers<[1], [0], [0], [1], [0, 0, 1, 1], [], []>} : vector<4x4xf32>, vector<4x512xf32>, vector<4x512xf32> -> vector<4x512xf32>
    %c3_208 = arith.constant 3 : index
    %c0_209 = arith.constant 0 : index
    %c0_210 = arith.constant 0 : index
    %298 = vector.load %arg17[%c3_208, %c0_209, %c0_210] : memref<9x4x4xf32, #tpu.memory_space<vmem>>, vector<1x4x4xf32>
    %299 = vector.shape_cast %298 : vector<1x4x4xf32> to vector<4x4xf32>
    %c1_i32_211 = arith.constant 1 : i32
    %300 = tpu.dynamic_rotate %108 by %c1_i32_211 dim 1 : vector<4x512xf32>, i32 -> vector<4x512xf32>
    %cst_212 = arith.constant dense<0.000000e+00> : vector<4x512xf32>
    %301 = tpu.matmul %299, %300, %cst_212 {dimension_numbers = #tpu.dot_dimension_numbers<[1], [0], [0], [1], [0, 0, 1, 1], [], []>} : vector<4x4xf32>, vector<4x512xf32>, vector<4x512xf32> -> vector<4x512xf32>
    %302 = arith.addf %297, %301 : vector<4x512xf32>
    %c3_213 = arith.constant 3 : index
    %c0_214 = arith.constant 0 : index
    %c0_215 = arith.constant 0 : index
    %303 = vector.load %arg1[%c3_213, %c0_214, %c0_215] : memref<9x1x512xf32, #tpu.memory_space<vmem>>, vector<1x1x512xf32>
    %304 = vector.shape_cast %303 : vector<1x1x512xf32> to vector<1x512xf32>
    %305 = vector.broadcast %304 : vector<1x512xf32> to vector<4x512xf32>
    %306 = arith.mulf %305, %302 : vector<4x512xf32>
    %307 = arith.addf %293, %306 : vector<4x512xf32>
    %c4_216 = arith.constant 4 : index
    %c0_217 = arith.constant 0 : index
    %c0_218 = arith.constant 0 : index
    %308 = vector.load %arg16[%c4_216, %c0_217, %c0_218] : memref<9x4x4xf32, #tpu.memory_space<vmem>>, vector<1x4x4xf32>
    %309 = vector.shape_cast %308 : vector<1x4x4xf32> to vector<4x4xf32>
    %cst_219 = arith.constant dense<0.000000e+00> : vector<4x512xf32>
    %310 = tpu.matmul %309, %252, %cst_219 {dimension_numbers = #tpu.dot_dimension_numbers<[1], [0], [0], [1], [0, 0, 1, 1], [], []>} : vector<4x4xf32>, vector<4x512xf32>, vector<4x512xf32> -> vector<4x512xf32>
    %c4_220 = arith.constant 4 : index
    %c0_221 = arith.constant 0 : index
    %c0_222 = arith.constant 0 : index
    %311 = vector.load %arg17[%c4_220, %c0_221, %c0_222] : memref<9x4x4xf32, #tpu.memory_space<vmem>>, vector<1x4x4xf32>
    %312 = vector.shape_cast %311 : vector<1x4x4xf32> to vector<4x4xf32>
    %cst_223 = arith.constant dense<0.000000e+00> : vector<4x512xf32>
    %313 = tpu.matmul %312, %108, %cst_223 {dimension_numbers = #tpu.dot_dimension_numbers<[1], [0], [0], [1], [0, 0, 1, 1], [], []>} : vector<4x4xf32>, vector<4x512xf32>, vector<4x512xf32> -> vector<4x512xf32>
    %314 = arith.addf %310, %313 : vector<4x512xf32>
    %315 = arith.addf %307, %314 : vector<4x512xf32>
    %c5_224 = arith.constant 5 : index
    %c0_225 = arith.constant 0 : index
    %c0_226 = arith.constant 0 : index
    %316 = vector.load %arg16[%c5_224, %c0_225, %c0_226] : memref<9x4x4xf32, #tpu.memory_space<vmem>>, vector<1x4x4xf32>
    %317 = vector.shape_cast %316 : vector<1x4x4xf32> to vector<4x4xf32>
    %c511_i32_227 = arith.constant 511 : i32
    %318 = tpu.dynamic_rotate %252 by %c511_i32_227 dim 1 : vector<4x512xf32>, i32 -> vector<4x512xf32>
    %cst_228 = arith.constant dense<0.000000e+00> : vector<4x512xf32>
    %319 = tpu.matmul %317, %318, %cst_228 {dimension_numbers = #tpu.dot_dimension_numbers<[1], [0], [0], [1], [0, 0, 1, 1], [], []>} : vector<4x4xf32>, vector<4x512xf32>, vector<4x512xf32> -> vector<4x512xf32>
    %c5_229 = arith.constant 5 : index
    %c0_230 = arith.constant 0 : index
    %c0_231 = arith.constant 0 : index
    %320 = vector.load %arg17[%c5_229, %c0_230, %c0_231] : memref<9x4x4xf32, #tpu.memory_space<vmem>>, vector<1x4x4xf32>
    %321 = vector.shape_cast %320 : vector<1x4x4xf32> to vector<4x4xf32>
    %c511_i32_232 = arith.constant 511 : i32
    %322 = tpu.dynamic_rotate %108 by %c511_i32_232 dim 1 : vector<4x512xf32>, i32 -> vector<4x512xf32>
    %cst_233 = arith.constant dense<0.000000e+00> : vector<4x512xf32>
    %323 = tpu.matmul %321, %322, %cst_233 {dimension_numbers = #tpu.dot_dimension_numbers<[1], [0], [0], [1], [0, 0, 1, 1], [], []>} : vector<4x4xf32>, vector<4x512xf32>, vector<4x512xf32> -> vector<4x512xf32>
    %324 = arith.addf %319, %323 : vector<4x512xf32>
    %c5_234 = arith.constant 5 : index
    %c0_235 = arith.constant 0 : index
    %c0_236 = arith.constant 0 : index
    %325 = vector.load %arg1[%c5_234, %c0_235, %c0_236] : memref<9x1x512xf32, #tpu.memory_space<vmem>>, vector<1x1x512xf32>
    %326 = vector.shape_cast %325 : vector<1x1x512xf32> to vector<1x512xf32>
    %327 = vector.broadcast %326 : vector<1x512xf32> to vector<4x512xf32>
    %328 = arith.mulf %327, %324 : vector<4x512xf32>
    %329 = arith.addf %315, %328 : vector<4x512xf32>
    %c6_237 = arith.constant 6 : index
    %c0_238 = arith.constant 0 : index
    %c0_239 = arith.constant 0 : index
    %330 = vector.load %arg16[%c6_237, %c0_238, %c0_239] : memref<9x4x4xf32, #tpu.memory_space<vmem>>, vector<1x4x4xf32>
    %331 = vector.shape_cast %330 : vector<1x4x4xf32> to vector<4x4xf32>
    %c497_i32_240 = arith.constant 497 : i32
    %332 = tpu.dynamic_rotate %252 by %c497_i32_240 dim 1 : vector<4x512xf32>, i32 -> vector<4x512xf32>
    %cst_241 = arith.constant dense<0.000000e+00> : vector<4x512xf32>
    %333 = tpu.matmul %331, %332, %cst_241 {dimension_numbers = #tpu.dot_dimension_numbers<[1], [0], [0], [1], [0, 0, 1, 1], [], []>} : vector<4x4xf32>, vector<4x512xf32>, vector<4x512xf32> -> vector<4x512xf32>
    %c6_242 = arith.constant 6 : index
    %c0_243 = arith.constant 0 : index
    %c0_244 = arith.constant 0 : index
    %334 = vector.load %arg17[%c6_242, %c0_243, %c0_244] : memref<9x4x4xf32, #tpu.memory_space<vmem>>, vector<1x4x4xf32>
    %335 = vector.shape_cast %334 : vector<1x4x4xf32> to vector<4x4xf32>
    %c497_i32_245 = arith.constant 497 : i32
    %336 = tpu.dynamic_rotate %108 by %c497_i32_245 dim 1 : vector<4x512xf32>, i32 -> vector<4x512xf32>
    %cst_246 = arith.constant dense<0.000000e+00> : vector<4x512xf32>
    %337 = tpu.matmul %335, %336, %cst_246 {dimension_numbers = #tpu.dot_dimension_numbers<[1], [0], [0], [1], [0, 0, 1, 1], [], []>} : vector<4x4xf32>, vector<4x512xf32>, vector<4x512xf32> -> vector<4x512xf32>
    %338 = arith.addf %333, %337 : vector<4x512xf32>
    %c6_247 = arith.constant 6 : index
    %c0_248 = arith.constant 0 : index
    %c0_249 = arith.constant 0 : index
    %339 = vector.load %arg1[%c6_247, %c0_248, %c0_249] : memref<9x1x512xf32, #tpu.memory_space<vmem>>, vector<1x1x512xf32>
    %340 = vector.shape_cast %339 : vector<1x1x512xf32> to vector<1x512xf32>
    %341 = vector.broadcast %340 : vector<1x512xf32> to vector<4x512xf32>
    %342 = arith.mulf %341, %338 : vector<4x512xf32>
    %343 = arith.addf %329, %342 : vector<4x512xf32>
    %c7_250 = arith.constant 7 : index
    %c0_251 = arith.constant 0 : index
    %c0_252 = arith.constant 0 : index
    %344 = vector.load %arg16[%c7_250, %c0_251, %c0_252] : memref<9x4x4xf32, #tpu.memory_space<vmem>>, vector<1x4x4xf32>
    %345 = vector.shape_cast %344 : vector<1x4x4xf32> to vector<4x4xf32>
    %c496_i32_253 = arith.constant 496 : i32
    %346 = tpu.dynamic_rotate %252 by %c496_i32_253 dim 1 : vector<4x512xf32>, i32 -> vector<4x512xf32>
    %cst_254 = arith.constant dense<0.000000e+00> : vector<4x512xf32>
    %347 = tpu.matmul %345, %346, %cst_254 {dimension_numbers = #tpu.dot_dimension_numbers<[1], [0], [0], [1], [0, 0, 1, 1], [], []>} : vector<4x4xf32>, vector<4x512xf32>, vector<4x512xf32> -> vector<4x512xf32>
    %c7_255 = arith.constant 7 : index
    %c0_256 = arith.constant 0 : index
    %c0_257 = arith.constant 0 : index
    %348 = vector.load %arg17[%c7_255, %c0_256, %c0_257] : memref<9x4x4xf32, #tpu.memory_space<vmem>>, vector<1x4x4xf32>
    %349 = vector.shape_cast %348 : vector<1x4x4xf32> to vector<4x4xf32>
    %c496_i32_258 = arith.constant 496 : i32
    %350 = tpu.dynamic_rotate %108 by %c496_i32_258 dim 1 : vector<4x512xf32>, i32 -> vector<4x512xf32>
    %cst_259 = arith.constant dense<0.000000e+00> : vector<4x512xf32>
    %351 = tpu.matmul %349, %350, %cst_259 {dimension_numbers = #tpu.dot_dimension_numbers<[1], [0], [0], [1], [0, 0, 1, 1], [], []>} : vector<4x4xf32>, vector<4x512xf32>, vector<4x512xf32> -> vector<4x512xf32>
    %352 = arith.addf %347, %351 : vector<4x512xf32>
    %c7_260 = arith.constant 7 : index
    %c0_261 = arith.constant 0 : index
    %c0_262 = arith.constant 0 : index
    %353 = vector.load %arg1[%c7_260, %c0_261, %c0_262] : memref<9x1x512xf32, #tpu.memory_space<vmem>>, vector<1x1x512xf32>
    %354 = vector.shape_cast %353 : vector<1x1x512xf32> to vector<1x512xf32>
    %355 = vector.broadcast %354 : vector<1x512xf32> to vector<4x512xf32>
    %356 = arith.mulf %355, %352 : vector<4x512xf32>
    %357 = arith.addf %343, %356 : vector<4x512xf32>
    %c8_263 = arith.constant 8 : index
    %c0_264 = arith.constant 0 : index
    %c0_265 = arith.constant 0 : index
    %358 = vector.load %arg16[%c8_263, %c0_264, %c0_265] : memref<9x4x4xf32, #tpu.memory_space<vmem>>, vector<1x4x4xf32>
    %359 = vector.shape_cast %358 : vector<1x4x4xf32> to vector<4x4xf32>
    %c495_i32_266 = arith.constant 495 : i32
    %360 = tpu.dynamic_rotate %252 by %c495_i32_266 dim 1 : vector<4x512xf32>, i32 -> vector<4x512xf32>
    %cst_267 = arith.constant dense<0.000000e+00> : vector<4x512xf32>
    %361 = tpu.matmul %359, %360, %cst_267 {dimension_numbers = #tpu.dot_dimension_numbers<[1], [0], [0], [1], [0, 0, 1, 1], [], []>} : vector<4x4xf32>, vector<4x512xf32>, vector<4x512xf32> -> vector<4x512xf32>
    %c8_268 = arith.constant 8 : index
    %c0_269 = arith.constant 0 : index
    %c0_270 = arith.constant 0 : index
    %362 = vector.load %arg17[%c8_268, %c0_269, %c0_270] : memref<9x4x4xf32, #tpu.memory_space<vmem>>, vector<1x4x4xf32>
    %363 = vector.shape_cast %362 : vector<1x4x4xf32> to vector<4x4xf32>
    %c495_i32_271 = arith.constant 495 : i32
    %364 = tpu.dynamic_rotate %108 by %c495_i32_271 dim 1 : vector<4x512xf32>, i32 -> vector<4x512xf32>
    %cst_272 = arith.constant dense<0.000000e+00> : vector<4x512xf32>
    %365 = tpu.matmul %363, %364, %cst_272 {dimension_numbers = #tpu.dot_dimension_numbers<[1], [0], [0], [1], [0, 0, 1, 1], [], []>} : vector<4x4xf32>, vector<4x512xf32>, vector<4x512xf32> -> vector<4x512xf32>
    %366 = arith.addf %361, %365 : vector<4x512xf32>
    %c8_273 = arith.constant 8 : index
    %c0_274 = arith.constant 0 : index
    %c0_275 = arith.constant 0 : index
    %367 = vector.load %arg1[%c8_273, %c0_274, %c0_275] : memref<9x1x512xf32, #tpu.memory_space<vmem>>, vector<1x1x512xf32>
    %368 = vector.shape_cast %367 : vector<1x1x512xf32> to vector<1x512xf32>
    %369 = vector.broadcast %368 : vector<1x512xf32> to vector<4x512xf32>
    %370 = arith.mulf %369, %366 : vector<4x512xf32>
    %371 = arith.addf %357, %370 : vector<4x512xf32>
    %c0_276 = arith.constant 0 : index
    %c0_277 = arith.constant 0 : index
    %372 = vector.load %arg18[%c0_276, %c0_277] : memref<4x1xf32, #tpu.memory_space<vmem>>, vector<4x1xf32>
    %373 = vector.broadcast %372 : vector<4x1xf32> to vector<4x512xf32>
    %374 = arith.addf %371, %373 : vector<4x512xf32>
    %c0_278 = arith.constant 0 : index
    %c0_279 = arith.constant 0 : index
    %c0_280 = arith.constant 0 : index
    %375 = vector.load %arg19[%c0_278, %c0_279, %c0_280] : memref<9x4x4xf32, #tpu.memory_space<vmem>>, vector<1x4x4xf32>
    %376 = vector.shape_cast %375 : vector<1x4x4xf32> to vector<4x4xf32>
    %c17_i32_281 = arith.constant 17 : i32
    %377 = tpu.dynamic_rotate %79 by %c17_i32_281 dim 1 : vector<4x512xf32>, i32 -> vector<4x512xf32>
    %cst_282 = arith.constant dense<0.000000e+00> : vector<4x512xf32>
    %378 = tpu.matmul %376, %377, %cst_282 {dimension_numbers = #tpu.dot_dimension_numbers<[1], [0], [0], [1], [0, 0, 1, 1], [], []>} : vector<4x4xf32>, vector<4x512xf32>, vector<4x512xf32> -> vector<4x512xf32>
    %c0_283 = arith.constant 0 : index
    %c0_284 = arith.constant 0 : index
    %c0_285 = arith.constant 0 : index
    %379 = vector.load %arg20[%c0_283, %c0_284, %c0_285] : memref<9x4x4xf32, #tpu.memory_space<vmem>>, vector<1x4x4xf32>
    %380 = vector.shape_cast %379 : vector<1x4x4xf32> to vector<4x4xf32>
    %c17_i32_286 = arith.constant 17 : i32
    %381 = tpu.dynamic_rotate %107 by %c17_i32_286 dim 1 : vector<4x512xf32>, i32 -> vector<4x512xf32>
    %cst_287 = arith.constant dense<0.000000e+00> : vector<4x512xf32>
    %382 = tpu.matmul %380, %381, %cst_287 {dimension_numbers = #tpu.dot_dimension_numbers<[1], [0], [0], [1], [0, 0, 1, 1], [], []>} : vector<4x4xf32>, vector<4x512xf32>, vector<4x512xf32> -> vector<4x512xf32>
    %383 = arith.addf %378, %382 : vector<4x512xf32>
    %c0_288 = arith.constant 0 : index
    %c0_289 = arith.constant 0 : index
    %c0_290 = arith.constant 0 : index
    %384 = vector.load %arg21[%c0_288, %c0_289, %c0_290] : memref<9x4x4xf32, #tpu.memory_space<vmem>>, vector<1x4x4xf32>
    %385 = vector.shape_cast %384 : vector<1x4x4xf32> to vector<4x4xf32>
    %c17_i32_291 = arith.constant 17 : i32
    %386 = tpu.dynamic_rotate %374 by %c17_i32_291 dim 1 : vector<4x512xf32>, i32 -> vector<4x512xf32>
    %cst_292 = arith.constant dense<0.000000e+00> : vector<4x512xf32>
    %387 = tpu.matmul %385, %386, %cst_292 {dimension_numbers = #tpu.dot_dimension_numbers<[1], [0], [0], [1], [0, 0, 1, 1], [], []>} : vector<4x4xf32>, vector<4x512xf32>, vector<4x512xf32> -> vector<4x512xf32>
    %388 = arith.addf %383, %387 : vector<4x512xf32>
    %c0_293 = arith.constant 0 : index
    %c0_294 = arith.constant 0 : index
    %c0_295 = arith.constant 0 : index
    %389 = vector.load %arg1[%c0_293, %c0_294, %c0_295] : memref<9x1x512xf32, #tpu.memory_space<vmem>>, vector<1x1x512xf32>
    %390 = vector.shape_cast %389 : vector<1x1x512xf32> to vector<1x512xf32>
    %391 = vector.broadcast %390 : vector<1x512xf32> to vector<4x512xf32>
    %392 = arith.mulf %391, %388 : vector<4x512xf32>
    %c1_296 = arith.constant 1 : index
    %c0_297 = arith.constant 0 : index
    %c0_298 = arith.constant 0 : index
    %393 = vector.load %arg19[%c1_296, %c0_297, %c0_298] : memref<9x4x4xf32, #tpu.memory_space<vmem>>, vector<1x4x4xf32>
    %394 = vector.shape_cast %393 : vector<1x4x4xf32> to vector<4x4xf32>
    %c16_i32_299 = arith.constant 16 : i32
    %395 = tpu.dynamic_rotate %79 by %c16_i32_299 dim 1 : vector<4x512xf32>, i32 -> vector<4x512xf32>
    %cst_300 = arith.constant dense<0.000000e+00> : vector<4x512xf32>
    %396 = tpu.matmul %394, %395, %cst_300 {dimension_numbers = #tpu.dot_dimension_numbers<[1], [0], [0], [1], [0, 0, 1, 1], [], []>} : vector<4x4xf32>, vector<4x512xf32>, vector<4x512xf32> -> vector<4x512xf32>
    %c1_301 = arith.constant 1 : index
    %c0_302 = arith.constant 0 : index
    %c0_303 = arith.constant 0 : index
    %397 = vector.load %arg20[%c1_301, %c0_302, %c0_303] : memref<9x4x4xf32, #tpu.memory_space<vmem>>, vector<1x4x4xf32>
    %398 = vector.shape_cast %397 : vector<1x4x4xf32> to vector<4x4xf32>
    %c16_i32_304 = arith.constant 16 : i32
    %399 = tpu.dynamic_rotate %107 by %c16_i32_304 dim 1 : vector<4x512xf32>, i32 -> vector<4x512xf32>
    %cst_305 = arith.constant dense<0.000000e+00> : vector<4x512xf32>
    %400 = tpu.matmul %398, %399, %cst_305 {dimension_numbers = #tpu.dot_dimension_numbers<[1], [0], [0], [1], [0, 0, 1, 1], [], []>} : vector<4x4xf32>, vector<4x512xf32>, vector<4x512xf32> -> vector<4x512xf32>
    %401 = arith.addf %396, %400 : vector<4x512xf32>
    %c1_306 = arith.constant 1 : index
    %c0_307 = arith.constant 0 : index
    %c0_308 = arith.constant 0 : index
    %402 = vector.load %arg21[%c1_306, %c0_307, %c0_308] : memref<9x4x4xf32, #tpu.memory_space<vmem>>, vector<1x4x4xf32>
    %403 = vector.shape_cast %402 : vector<1x4x4xf32> to vector<4x4xf32>
    %c16_i32_309 = arith.constant 16 : i32
    %404 = tpu.dynamic_rotate %374 by %c16_i32_309 dim 1 : vector<4x512xf32>, i32 -> vector<4x512xf32>
    %cst_310 = arith.constant dense<0.000000e+00> : vector<4x512xf32>
    %405 = tpu.matmul %403, %404, %cst_310 {dimension_numbers = #tpu.dot_dimension_numbers<[1], [0], [0], [1], [0, 0, 1, 1], [], []>} : vector<4x4xf32>, vector<4x512xf32>, vector<4x512xf32> -> vector<4x512xf32>
    %406 = arith.addf %401, %405 : vector<4x512xf32>
    %c1_311 = arith.constant 1 : index
    %c0_312 = arith.constant 0 : index
    %c0_313 = arith.constant 0 : index
    %407 = vector.load %arg1[%c1_311, %c0_312, %c0_313] : memref<9x1x512xf32, #tpu.memory_space<vmem>>, vector<1x1x512xf32>
    %408 = vector.shape_cast %407 : vector<1x1x512xf32> to vector<1x512xf32>
    %409 = vector.broadcast %408 : vector<1x512xf32> to vector<4x512xf32>
    %410 = arith.mulf %409, %406 : vector<4x512xf32>
    %411 = arith.addf %392, %410 : vector<4x512xf32>
    %c2_314 = arith.constant 2 : index
    %c0_315 = arith.constant 0 : index
    %c0_316 = arith.constant 0 : index
    %412 = vector.load %arg19[%c2_314, %c0_315, %c0_316] : memref<9x4x4xf32, #tpu.memory_space<vmem>>, vector<1x4x4xf32>
    %413 = vector.shape_cast %412 : vector<1x4x4xf32> to vector<4x4xf32>
    %c15_i32_317 = arith.constant 15 : i32
    %414 = tpu.dynamic_rotate %79 by %c15_i32_317 dim 1 : vector<4x512xf32>, i32 -> vector<4x512xf32>
    %cst_318 = arith.constant dense<0.000000e+00> : vector<4x512xf32>
    %415 = tpu.matmul %413, %414, %cst_318 {dimension_numbers = #tpu.dot_dimension_numbers<[1], [0], [0], [1], [0, 0, 1, 1], [], []>} : vector<4x4xf32>, vector<4x512xf32>, vector<4x512xf32> -> vector<4x512xf32>
    %c2_319 = arith.constant 2 : index
    %c0_320 = arith.constant 0 : index
    %c0_321 = arith.constant 0 : index
    %416 = vector.load %arg20[%c2_319, %c0_320, %c0_321] : memref<9x4x4xf32, #tpu.memory_space<vmem>>, vector<1x4x4xf32>
    %417 = vector.shape_cast %416 : vector<1x4x4xf32> to vector<4x4xf32>
    %c15_i32_322 = arith.constant 15 : i32
    %418 = tpu.dynamic_rotate %107 by %c15_i32_322 dim 1 : vector<4x512xf32>, i32 -> vector<4x512xf32>
    %cst_323 = arith.constant dense<0.000000e+00> : vector<4x512xf32>
    %419 = tpu.matmul %417, %418, %cst_323 {dimension_numbers = #tpu.dot_dimension_numbers<[1], [0], [0], [1], [0, 0, 1, 1], [], []>} : vector<4x4xf32>, vector<4x512xf32>, vector<4x512xf32> -> vector<4x512xf32>
    %420 = arith.addf %415, %419 : vector<4x512xf32>
    %c2_324 = arith.constant 2 : index
    %c0_325 = arith.constant 0 : index
    %c0_326 = arith.constant 0 : index
    %421 = vector.load %arg21[%c2_324, %c0_325, %c0_326] : memref<9x4x4xf32, #tpu.memory_space<vmem>>, vector<1x4x4xf32>
    %422 = vector.shape_cast %421 : vector<1x4x4xf32> to vector<4x4xf32>
    %c15_i32_327 = arith.constant 15 : i32
    %423 = tpu.dynamic_rotate %374 by %c15_i32_327 dim 1 : vector<4x512xf32>, i32 -> vector<4x512xf32>
    %cst_328 = arith.constant dense<0.000000e+00> : vector<4x512xf32>
    %424 = tpu.matmul %422, %423, %cst_328 {dimension_numbers = #tpu.dot_dimension_numbers<[1], [0], [0], [1], [0, 0, 1, 1], [], []>} : vector<4x4xf32>, vector<4x512xf32>, vector<4x512xf32> -> vector<4x512xf32>
    %425 = arith.addf %420, %424 : vector<4x512xf32>
    %c2_329 = arith.constant 2 : index
    %c0_330 = arith.constant 0 : index
    %c0_331 = arith.constant 0 : index
    %426 = vector.load %arg1[%c2_329, %c0_330, %c0_331] : memref<9x1x512xf32, #tpu.memory_space<vmem>>, vector<1x1x512xf32>
    %427 = vector.shape_cast %426 : vector<1x1x512xf32> to vector<1x512xf32>
    %428 = vector.broadcast %427 : vector<1x512xf32> to vector<4x512xf32>
    %429 = arith.mulf %428, %425 : vector<4x512xf32>
    %430 = arith.addf %411, %429 : vector<4x512xf32>
    %c3_332 = arith.constant 3 : index
    %c0_333 = arith.constant 0 : index
    %c0_334 = arith.constant 0 : index
    %431 = vector.load %arg19[%c3_332, %c0_333, %c0_334] : memref<9x4x4xf32, #tpu.memory_space<vmem>>, vector<1x4x4xf32>
    %432 = vector.shape_cast %431 : vector<1x4x4xf32> to vector<4x4xf32>
    %c1_i32_335 = arith.constant 1 : i32
    %433 = tpu.dynamic_rotate %79 by %c1_i32_335 dim 1 : vector<4x512xf32>, i32 -> vector<4x512xf32>
    %cst_336 = arith.constant dense<0.000000e+00> : vector<4x512xf32>
    %434 = tpu.matmul %432, %433, %cst_336 {dimension_numbers = #tpu.dot_dimension_numbers<[1], [0], [0], [1], [0, 0, 1, 1], [], []>} : vector<4x4xf32>, vector<4x512xf32>, vector<4x512xf32> -> vector<4x512xf32>
    %c3_337 = arith.constant 3 : index
    %c0_338 = arith.constant 0 : index
    %c0_339 = arith.constant 0 : index
    %435 = vector.load %arg20[%c3_337, %c0_338, %c0_339] : memref<9x4x4xf32, #tpu.memory_space<vmem>>, vector<1x4x4xf32>
    %436 = vector.shape_cast %435 : vector<1x4x4xf32> to vector<4x4xf32>
    %c1_i32_340 = arith.constant 1 : i32
    %437 = tpu.dynamic_rotate %107 by %c1_i32_340 dim 1 : vector<4x512xf32>, i32 -> vector<4x512xf32>
    %cst_341 = arith.constant dense<0.000000e+00> : vector<4x512xf32>
    %438 = tpu.matmul %436, %437, %cst_341 {dimension_numbers = #tpu.dot_dimension_numbers<[1], [0], [0], [1], [0, 0, 1, 1], [], []>} : vector<4x4xf32>, vector<4x512xf32>, vector<4x512xf32> -> vector<4x512xf32>
    %439 = arith.addf %434, %438 : vector<4x512xf32>
    %c3_342 = arith.constant 3 : index
    %c0_343 = arith.constant 0 : index
    %c0_344 = arith.constant 0 : index
    %440 = vector.load %arg21[%c3_342, %c0_343, %c0_344] : memref<9x4x4xf32, #tpu.memory_space<vmem>>, vector<1x4x4xf32>
    %441 = vector.shape_cast %440 : vector<1x4x4xf32> to vector<4x4xf32>
    %c1_i32_345 = arith.constant 1 : i32
    %442 = tpu.dynamic_rotate %374 by %c1_i32_345 dim 1 : vector<4x512xf32>, i32 -> vector<4x512xf32>
    %cst_346 = arith.constant dense<0.000000e+00> : vector<4x512xf32>
    %443 = tpu.matmul %441, %442, %cst_346 {dimension_numbers = #tpu.dot_dimension_numbers<[1], [0], [0], [1], [0, 0, 1, 1], [], []>} : vector<4x4xf32>, vector<4x512xf32>, vector<4x512xf32> -> vector<4x512xf32>
    %444 = arith.addf %439, %443 : vector<4x512xf32>
    %c3_347 = arith.constant 3 : index
    %c0_348 = arith.constant 0 : index
    %c0_349 = arith.constant 0 : index
    %445 = vector.load %arg1[%c3_347, %c0_348, %c0_349] : memref<9x1x512xf32, #tpu.memory_space<vmem>>, vector<1x1x512xf32>
    %446 = vector.shape_cast %445 : vector<1x1x512xf32> to vector<1x512xf32>
    %447 = vector.broadcast %446 : vector<1x512xf32> to vector<4x512xf32>
    %448 = arith.mulf %447, %444 : vector<4x512xf32>
    %449 = arith.addf %430, %448 : vector<4x512xf32>
    %c4_350 = arith.constant 4 : index
    %c0_351 = arith.constant 0 : index
    %c0_352 = arith.constant 0 : index
    %450 = vector.load %arg19[%c4_350, %c0_351, %c0_352] : memref<9x4x4xf32, #tpu.memory_space<vmem>>, vector<1x4x4xf32>
    %451 = vector.shape_cast %450 : vector<1x4x4xf32> to vector<4x4xf32>
    %cst_353 = arith.constant dense<0.000000e+00> : vector<4x512xf32>
    %452 = tpu.matmul %451, %79, %cst_353 {dimension_numbers = #tpu.dot_dimension_numbers<[1], [0], [0], [1], [0, 0, 1, 1], [], []>} : vector<4x4xf32>, vector<4x512xf32>, vector<4x512xf32> -> vector<4x512xf32>
    %c4_354 = arith.constant 4 : index
    %c0_355 = arith.constant 0 : index
    %c0_356 = arith.constant 0 : index
    %453 = vector.load %arg20[%c4_354, %c0_355, %c0_356] : memref<9x4x4xf32, #tpu.memory_space<vmem>>, vector<1x4x4xf32>
    %454 = vector.shape_cast %453 : vector<1x4x4xf32> to vector<4x4xf32>
    %cst_357 = arith.constant dense<0.000000e+00> : vector<4x512xf32>
    %455 = tpu.matmul %454, %107, %cst_357 {dimension_numbers = #tpu.dot_dimension_numbers<[1], [0], [0], [1], [0, 0, 1, 1], [], []>} : vector<4x4xf32>, vector<4x512xf32>, vector<4x512xf32> -> vector<4x512xf32>
    %456 = arith.addf %452, %455 : vector<4x512xf32>
    %c4_358 = arith.constant 4 : index
    %c0_359 = arith.constant 0 : index
    %c0_360 = arith.constant 0 : index
    %457 = vector.load %arg21[%c4_358, %c0_359, %c0_360] : memref<9x4x4xf32, #tpu.memory_space<vmem>>, vector<1x4x4xf32>
    %458 = vector.shape_cast %457 : vector<1x4x4xf32> to vector<4x4xf32>
    %cst_361 = arith.constant dense<0.000000e+00> : vector<4x512xf32>
    %459 = tpu.matmul %458, %374, %cst_361 {dimension_numbers = #tpu.dot_dimension_numbers<[1], [0], [0], [1], [0, 0, 1, 1], [], []>} : vector<4x4xf32>, vector<4x512xf32>, vector<4x512xf32> -> vector<4x512xf32>
    %460 = arith.addf %456, %459 : vector<4x512xf32>
    %461 = arith.addf %449, %460 : vector<4x512xf32>
    %c5_362 = arith.constant 5 : index
    %c0_363 = arith.constant 0 : index
    %c0_364 = arith.constant 0 : index
    %462 = vector.load %arg19[%c5_362, %c0_363, %c0_364] : memref<9x4x4xf32, #tpu.memory_space<vmem>>, vector<1x4x4xf32>
    %463 = vector.shape_cast %462 : vector<1x4x4xf32> to vector<4x4xf32>
    %c511_i32_365 = arith.constant 511 : i32
    %464 = tpu.dynamic_rotate %79 by %c511_i32_365 dim 1 : vector<4x512xf32>, i32 -> vector<4x512xf32>
    %cst_366 = arith.constant dense<0.000000e+00> : vector<4x512xf32>
    %465 = tpu.matmul %463, %464, %cst_366 {dimension_numbers = #tpu.dot_dimension_numbers<[1], [0], [0], [1], [0, 0, 1, 1], [], []>} : vector<4x4xf32>, vector<4x512xf32>, vector<4x512xf32> -> vector<4x512xf32>
    %c5_367 = arith.constant 5 : index
    %c0_368 = arith.constant 0 : index
    %c0_369 = arith.constant 0 : index
    %466 = vector.load %arg20[%c5_367, %c0_368, %c0_369] : memref<9x4x4xf32, #tpu.memory_space<vmem>>, vector<1x4x4xf32>
    %467 = vector.shape_cast %466 : vector<1x4x4xf32> to vector<4x4xf32>
    %c511_i32_370 = arith.constant 511 : i32
    %468 = tpu.dynamic_rotate %107 by %c511_i32_370 dim 1 : vector<4x512xf32>, i32 -> vector<4x512xf32>
    %cst_371 = arith.constant dense<0.000000e+00> : vector<4x512xf32>
    %469 = tpu.matmul %467, %468, %cst_371 {dimension_numbers = #tpu.dot_dimension_numbers<[1], [0], [0], [1], [0, 0, 1, 1], [], []>} : vector<4x4xf32>, vector<4x512xf32>, vector<4x512xf32> -> vector<4x512xf32>
    %470 = arith.addf %465, %469 : vector<4x512xf32>
    %c5_372 = arith.constant 5 : index
    %c0_373 = arith.constant 0 : index
    %c0_374 = arith.constant 0 : index
    %471 = vector.load %arg21[%c5_372, %c0_373, %c0_374] : memref<9x4x4xf32, #tpu.memory_space<vmem>>, vector<1x4x4xf32>
    %472 = vector.shape_cast %471 : vector<1x4x4xf32> to vector<4x4xf32>
    %c511_i32_375 = arith.constant 511 : i32
    %473 = tpu.dynamic_rotate %374 by %c511_i32_375 dim 1 : vector<4x512xf32>, i32 -> vector<4x512xf32>
    %cst_376 = arith.constant dense<0.000000e+00> : vector<4x512xf32>
    %474 = tpu.matmul %472, %473, %cst_376 {dimension_numbers = #tpu.dot_dimension_numbers<[1], [0], [0], [1], [0, 0, 1, 1], [], []>} : vector<4x4xf32>, vector<4x512xf32>, vector<4x512xf32> -> vector<4x512xf32>
    %475 = arith.addf %470, %474 : vector<4x512xf32>
    %c5_377 = arith.constant 5 : index
    %c0_378 = arith.constant 0 : index
    %c0_379 = arith.constant 0 : index
    %476 = vector.load %arg1[%c5_377, %c0_378, %c0_379] : memref<9x1x512xf32, #tpu.memory_space<vmem>>, vector<1x1x512xf32>
    %477 = vector.shape_cast %476 : vector<1x1x512xf32> to vector<1x512xf32>
    %478 = vector.broadcast %477 : vector<1x512xf32> to vector<4x512xf32>
    %479 = arith.mulf %478, %475 : vector<4x512xf32>
    %480 = arith.addf %461, %479 : vector<4x512xf32>
    %c6_380 = arith.constant 6 : index
    %c0_381 = arith.constant 0 : index
    %c0_382 = arith.constant 0 : index
    %481 = vector.load %arg19[%c6_380, %c0_381, %c0_382] : memref<9x4x4xf32, #tpu.memory_space<vmem>>, vector<1x4x4xf32>
    %482 = vector.shape_cast %481 : vector<1x4x4xf32> to vector<4x4xf32>
    %c497_i32_383 = arith.constant 497 : i32
    %483 = tpu.dynamic_rotate %79 by %c497_i32_383 dim 1 : vector<4x512xf32>, i32 -> vector<4x512xf32>
    %cst_384 = arith.constant dense<0.000000e+00> : vector<4x512xf32>
    %484 = tpu.matmul %482, %483, %cst_384 {dimension_numbers = #tpu.dot_dimension_numbers<[1], [0], [0], [1], [0, 0, 1, 1], [], []>} : vector<4x4xf32>, vector<4x512xf32>, vector<4x512xf32> -> vector<4x512xf32>
    %c6_385 = arith.constant 6 : index
    %c0_386 = arith.constant 0 : index
    %c0_387 = arith.constant 0 : index
    %485 = vector.load %arg20[%c6_385, %c0_386, %c0_387] : memref<9x4x4xf32, #tpu.memory_space<vmem>>, vector<1x4x4xf32>
    %486 = vector.shape_cast %485 : vector<1x4x4xf32> to vector<4x4xf32>
    %c497_i32_388 = arith.constant 497 : i32
    %487 = tpu.dynamic_rotate %107 by %c497_i32_388 dim 1 : vector<4x512xf32>, i32 -> vector<4x512xf32>
    %cst_389 = arith.constant dense<0.000000e+00> : vector<4x512xf32>
    %488 = tpu.matmul %486, %487, %cst_389 {dimension_numbers = #tpu.dot_dimension_numbers<[1], [0], [0], [1], [0, 0, 1, 1], [], []>} : vector<4x4xf32>, vector<4x512xf32>, vector<4x512xf32> -> vector<4x512xf32>
    %489 = arith.addf %484, %488 : vector<4x512xf32>
    %c6_390 = arith.constant 6 : index
    %c0_391 = arith.constant 0 : index
    %c0_392 = arith.constant 0 : index
    %490 = vector.load %arg21[%c6_390, %c0_391, %c0_392] : memref<9x4x4xf32, #tpu.memory_space<vmem>>, vector<1x4x4xf32>
    %491 = vector.shape_cast %490 : vector<1x4x4xf32> to vector<4x4xf32>
    %c497_i32_393 = arith.constant 497 : i32
    %492 = tpu.dynamic_rotate %374 by %c497_i32_393 dim 1 : vector<4x512xf32>, i32 -> vector<4x512xf32>
    %cst_394 = arith.constant dense<0.000000e+00> : vector<4x512xf32>
    %493 = tpu.matmul %491, %492, %cst_394 {dimension_numbers = #tpu.dot_dimension_numbers<[1], [0], [0], [1], [0, 0, 1, 1], [], []>} : vector<4x4xf32>, vector<4x512xf32>, vector<4x512xf32> -> vector<4x512xf32>
    %494 = arith.addf %489, %493 : vector<4x512xf32>
    %c6_395 = arith.constant 6 : index
    %c0_396 = arith.constant 0 : index
    %c0_397 = arith.constant 0 : index
    %495 = vector.load %arg1[%c6_395, %c0_396, %c0_397] : memref<9x1x512xf32, #tpu.memory_space<vmem>>, vector<1x1x512xf32>
    %496 = vector.shape_cast %495 : vector<1x1x512xf32> to vector<1x512xf32>
    %497 = vector.broadcast %496 : vector<1x512xf32> to vector<4x512xf32>
    %498 = arith.mulf %497, %494 : vector<4x512xf32>
    %499 = arith.addf %480, %498 : vector<4x512xf32>
    %c7_398 = arith.constant 7 : index
    %c0_399 = arith.constant 0 : index
    %c0_400 = arith.constant 0 : index
    %500 = vector.load %arg19[%c7_398, %c0_399, %c0_400] : memref<9x4x4xf32, #tpu.memory_space<vmem>>, vector<1x4x4xf32>
    %501 = vector.shape_cast %500 : vector<1x4x4xf32> to vector<4x4xf32>
    %c496_i32_401 = arith.constant 496 : i32
    %502 = tpu.dynamic_rotate %79 by %c496_i32_401 dim 1 : vector<4x512xf32>, i32 -> vector<4x512xf32>
    %cst_402 = arith.constant dense<0.000000e+00> : vector<4x512xf32>
    %503 = tpu.matmul %501, %502, %cst_402 {dimension_numbers = #tpu.dot_dimension_numbers<[1], [0], [0], [1], [0, 0, 1, 1], [], []>} : vector<4x4xf32>, vector<4x512xf32>, vector<4x512xf32> -> vector<4x512xf32>
    %c7_403 = arith.constant 7 : index
    %c0_404 = arith.constant 0 : index
    %c0_405 = arith.constant 0 : index
    %504 = vector.load %arg20[%c7_403, %c0_404, %c0_405] : memref<9x4x4xf32, #tpu.memory_space<vmem>>, vector<1x4x4xf32>
    %505 = vector.shape_cast %504 : vector<1x4x4xf32> to vector<4x4xf32>
    %c496_i32_406 = arith.constant 496 : i32
    %506 = tpu.dynamic_rotate %107 by %c496_i32_406 dim 1 : vector<4x512xf32>, i32 -> vector<4x512xf32>
    %cst_407 = arith.constant dense<0.000000e+00> : vector<4x512xf32>
    %507 = tpu.matmul %505, %506, %cst_407 {dimension_numbers = #tpu.dot_dimension_numbers<[1], [0], [0], [1], [0, 0, 1, 1], [], []>} : vector<4x4xf32>, vector<4x512xf32>, vector<4x512xf32> -> vector<4x512xf32>
    %508 = arith.addf %503, %507 : vector<4x512xf32>
    %c7_408 = arith.constant 7 : index
    %c0_409 = arith.constant 0 : index
    %c0_410 = arith.constant 0 : index
    %509 = vector.load %arg21[%c7_408, %c0_409, %c0_410] : memref<9x4x4xf32, #tpu.memory_space<vmem>>, vector<1x4x4xf32>
    %510 = vector.shape_cast %509 : vector<1x4x4xf32> to vector<4x4xf32>
    %c496_i32_411 = arith.constant 496 : i32
    %511 = tpu.dynamic_rotate %374 by %c496_i32_411 dim 1 : vector<4x512xf32>, i32 -> vector<4x512xf32>
    %cst_412 = arith.constant dense<0.000000e+00> : vector<4x512xf32>
    %512 = tpu.matmul %510, %511, %cst_412 {dimension_numbers = #tpu.dot_dimension_numbers<[1], [0], [0], [1], [0, 0, 1, 1], [], []>} : vector<4x4xf32>, vector<4x512xf32>, vector<4x512xf32> -> vector<4x512xf32>
    %513 = arith.addf %508, %512 : vector<4x512xf32>
    %c7_413 = arith.constant 7 : index
    %c0_414 = arith.constant 0 : index
    %c0_415 = arith.constant 0 : index
    %514 = vector.load %arg1[%c7_413, %c0_414, %c0_415] : memref<9x1x512xf32, #tpu.memory_space<vmem>>, vector<1x1x512xf32>
    %515 = vector.shape_cast %514 : vector<1x1x512xf32> to vector<1x512xf32>
    %516 = vector.broadcast %515 : vector<1x512xf32> to vector<4x512xf32>
    %517 = arith.mulf %516, %513 : vector<4x512xf32>
    %518 = arith.addf %499, %517 : vector<4x512xf32>
    %c8_416 = arith.constant 8 : index
    %c0_417 = arith.constant 0 : index
    %c0_418 = arith.constant 0 : index
    %519 = vector.load %arg19[%c8_416, %c0_417, %c0_418] : memref<9x4x4xf32, #tpu.memory_space<vmem>>, vector<1x4x4xf32>
    %520 = vector.shape_cast %519 : vector<1x4x4xf32> to vector<4x4xf32>
    %c495_i32_419 = arith.constant 495 : i32
    %521 = tpu.dynamic_rotate %79 by %c495_i32_419 dim 1 : vector<4x512xf32>, i32 -> vector<4x512xf32>
    %cst_420 = arith.constant dense<0.000000e+00> : vector<4x512xf32>
    %522 = tpu.matmul %520, %521, %cst_420 {dimension_numbers = #tpu.dot_dimension_numbers<[1], [0], [0], [1], [0, 0, 1, 1], [], []>} : vector<4x4xf32>, vector<4x512xf32>, vector<4x512xf32> -> vector<4x512xf32>
    %c8_421 = arith.constant 8 : index
    %c0_422 = arith.constant 0 : index
    %c0_423 = arith.constant 0 : index
    %523 = vector.load %arg20[%c8_421, %c0_422, %c0_423] : memref<9x4x4xf32, #tpu.memory_space<vmem>>, vector<1x4x4xf32>
    %524 = vector.shape_cast %523 : vector<1x4x4xf32> to vector<4x4xf32>
    %c495_i32_424 = arith.constant 495 : i32
    %525 = tpu.dynamic_rotate %107 by %c495_i32_424 dim 1 : vector<4x512xf32>, i32 -> vector<4x512xf32>
    %cst_425 = arith.constant dense<0.000000e+00> : vector<4x512xf32>
    %526 = tpu.matmul %524, %525, %cst_425 {dimension_numbers = #tpu.dot_dimension_numbers<[1], [0], [0], [1], [0, 0, 1, 1], [], []>} : vector<4x4xf32>, vector<4x512xf32>, vector<4x512xf32> -> vector<4x512xf32>
    %527 = arith.addf %522, %526 : vector<4x512xf32>
    %c8_426 = arith.constant 8 : index
    %c0_427 = arith.constant 0 : index
    %c0_428 = arith.constant 0 : index
    %528 = vector.load %arg21[%c8_426, %c0_427, %c0_428] : memref<9x4x4xf32, #tpu.memory_space<vmem>>, vector<1x4x4xf32>
    %529 = vector.shape_cast %528 : vector<1x4x4xf32> to vector<4x4xf32>
    %c495_i32_429 = arith.constant 495 : i32
    %530 = tpu.dynamic_rotate %374 by %c495_i32_429 dim 1 : vector<4x512xf32>, i32 -> vector<4x512xf32>
    %cst_430 = arith.constant dense<0.000000e+00> : vector<4x512xf32>
    %531 = tpu.matmul %529, %530, %cst_430 {dimension_numbers = #tpu.dot_dimension_numbers<[1], [0], [0], [1], [0, 0, 1, 1], [], []>} : vector<4x4xf32>, vector<4x512xf32>, vector<4x512xf32> -> vector<4x512xf32>
    %532 = arith.addf %527, %531 : vector<4x512xf32>
    %c8_431 = arith.constant 8 : index
    %c0_432 = arith.constant 0 : index
    %c0_433 = arith.constant 0 : index
    %533 = vector.load %arg1[%c8_431, %c0_432, %c0_433] : memref<9x1x512xf32, #tpu.memory_space<vmem>>, vector<1x1x512xf32>
    %534 = vector.shape_cast %533 : vector<1x1x512xf32> to vector<1x512xf32>
    %535 = vector.broadcast %534 : vector<1x512xf32> to vector<4x512xf32>
    %536 = arith.mulf %535, %532 : vector<4x512xf32>
    %537 = arith.addf %518, %536 : vector<4x512xf32>
    %c0_434 = arith.constant 0 : index
    %c0_435 = arith.constant 0 : index
    %538 = vector.load %arg22[%c0_434, %c0_435] : memref<4x1xf32, #tpu.memory_space<vmem>>, vector<4x1xf32>
    %539 = vector.broadcast %538 : vector<4x1xf32> to vector<4x512xf32>
    %540 = arith.addf %537, %539 : vector<4x512xf32>
    %c0_436 = arith.constant 0 : index
    %c0_437 = arith.constant 0 : index
    %541 = vector.load %arg23[%c0_436, %c0_437] : memref<4x1xf32, #tpu.memory_space<vmem>>, vector<4x1xf32>
    %c0_438 = arith.constant 0 : index
    %c0_439 = arith.constant 0 : index
    %542 = vector.load %arg24[%c0_438, %c0_439] : memref<4x1xf32, #tpu.memory_space<vmem>>, vector<4x1xf32>
    %cst_440 = arith.constant dense<0.000000e+00> : vector<4xf32>
    %543 = vector.multi_reduction <add>, %540, %cst_440 [1] : vector<4x512xf32> to vector<4xf32>
    %544 = vector.shape_cast %543 : vector<4xf32> to vector<4x1xf32>
    %cst_441 = arith.constant 5.120000e+02 : f32
    %545 = vector.broadcast %cst_441 : f32 to vector<4x1xf32>
    %546 = arith.divf %544, %545 : vector<4x1xf32>
    %547 = vector.broadcast %546 : vector<4x1xf32> to vector<4x512xf32>
    %548 = arith.subf %540, %547 : vector<4x512xf32>
    %549 = arith.mulf %548, %548 : vector<4x512xf32>
    %cst_442 = arith.constant dense<0.000000e+00> : vector<4xf32>
    %550 = vector.multi_reduction <add>, %549, %cst_442 [1] : vector<4x512xf32> to vector<4xf32>
    %551 = vector.shape_cast %550 : vector<4xf32> to vector<4x1xf32>
    %cst_443 = arith.constant 5.120000e+02 : f32
    %552 = vector.broadcast %cst_443 : f32 to vector<4x1xf32>
    %553 = arith.divf %551, %552 : vector<4x1xf32>
    %cst_444 = arith.constant 9.99999974E-6 : f32
    %554 = vector.broadcast %cst_444 : f32 to vector<4x1xf32>
    %555 = arith.addf %553, %554 : vector<4x1xf32>
    %556 = math.rsqrt %555 : vector<4x1xf32>
    %557 = vector.broadcast %556 : vector<4x1xf32> to vector<4x512xf32>
    %558 = arith.mulf %548, %557 : vector<4x512xf32>
    %559 = vector.broadcast %541 : vector<4x1xf32> to vector<4x512xf32>
    %560 = arith.mulf %558, %559 : vector<4x512xf32>
    %561 = vector.broadcast %542 : vector<4x1xf32> to vector<4x512xf32>
    %562 = arith.addf %560, %561 : vector<4x512xf32>
    %cst_445 = arith.constant 0.000000e+00 : f32
    %563 = vector.broadcast %cst_445 : f32 to vector<4x512xf32>
    %564 = arith.maximumf %562, %563 : vector<4x512xf32>
    %c0_446 = arith.constant 0 : index
    %c0_447 = arith.constant 0 : index
    %565 = vector.load %arg25[%c0_446, %c0_447] : memref<4x512xf32, #tpu.memory_space<vmem>>, vector<4x512xf32>
    tpu.vector_store %arg25[%c0_446, %c0_447], %564 {strides = array<i32>} : memref<4x512xf32, #tpu.memory_space<vmem>>, vector<4x512xf32>,
    return
  }
}

</mosaic_0001>

<bundles_post_ra>
// kernel: mfe_forward.1
= control target key start
LH: loop header
LB: loop body
LE: loop exit
PB: predicated region body
PF: predicated region fallthrough
CT: control target
= control target key end

     0   :  { %v16145_v2 = vmov 0.0   ;;  %s13506_s26 = smov 16   ;;  %s13509_s27 = smov 127   ;;  %v13513_v5 = vmov 0   ;;  %v101_v8 = vlaneseq  ;;  %vm118_vm1 = vcmask 1043456   ;;  %s16113_s0 = inlined_call_operand.vmem [shape: f32[4,512], index: 0, kind: input, shape index: {}]   ;;  %s16114_s3 = inlined_call_operand.vmem [shape: f32[24,1], index: 3, kind: input, shape index: {}]   ;;  %s16115_s11 = inlined_call_operand.vmem [shape: f32[4,1], index: 11, kind: input, shape index: {}]   ;;  %s16116_s2 = inlined_call_operand.vmem [shape: f32[9,24,4], index: 2, kind: input, shape index: {}]   ;;  %s16117_s9 = inlined_call_operand.vmem [shape: f32[4,1], index: 9, kind: input, shape index: {}]   ;;  %s16118_s7 = inlined_call_operand.vmem [shape: f32[4,1], index: 7, kind: input, shape index: {}]   ;;  %s16119_s1 = inlined_call_operand.vmem [shape: f32[9,1,512], index: 1, kind: input, shape index: {}]   ;;  %s16120_s6 = inlined_call_operand.vmem [shape: f32[4,2], index: 6, kind: input, shape index: {}]   ;;  %s16121_s8 = inlined_call_operand.vmem [shape: f32[4,2], index: 8, kind: input, shape index: {}]   ;;  %s16122_s10 = inlined_call_operand.vmem [shape: f32[4,2], index: 10, kind: input, shape index: {}]   ;;  %s16123_s5 = inlined_call_operand.vmem [shape: f32[16,1], index: 5, kind: input, shape index: {}]   ;;  %s16124_s13 = inlined_call_operand.vmem [shape: f32[4,1], index: 13, kind: input, shape index: {}]   ;;  %s16125_s12 = inlined_call_operand.vmem [shape: f32[9,4,4], index: 12, kind: input, shape index: {}]   ;;  %s16126_s4 = inlined_call_operand.vmem [shape: f32[16,1], index: 4, kind: input, shape index: {}]   ;;  %s16127_s14 = inlined_call_operand.vmem [shape: f32[4,1], index: 14, kind: input, shape index: {}]   ;;  %s16128_s15 = inlined_call_operand.<no memory space> [shape: f32[1,1], index: 15, kind: input, shape index: {}]   ;;  %s16129_s17 = inlined_call_operand.vmem [shape: f32[9,4,4], index: 17, kind: input, shape index: {}]   ;;  %s16130_s16 = inlined_call_operand.vmem [shape: f32[9,4,4], index: 16, kind: input, shape index: {}]   ;;  %s16131_s18 = inlined_call_operand.vmem [shape: f32[4,1], index: 18, kind: input, shape index: {}]   ;;  %s16132_s20 = inlined_call_operand.vmem [shape: f32[9,4,4], index: 20, kind: input, shape index: {}]   ;;  %s16133_s19 = inlined_call_operand.vmem [shape: f32[9,4,4], index: 19, kind: input, shape index: {}]   ;;  %s16134_s21 = inlined_call_operand.vmem [shape: f32[9,4,4], index: 21, kind: input, shape index: {}]   ;;  %s16135_s22 = inlined_call_operand.vmem [shape: f32[4,1], index: 22, kind: input, shape index: {}]   ;;  %s16136_s23 = inlined_call_operand.vmem [shape: f32[4,1], index: 23, kind: input, shape index: {}]   ;;  %s16137_s24 = inlined_call_operand.vmem [shape: f32[4,1], index: 24, kind: input, shape index: {}]   ;;  %s16138_s25 = inlined_call_operand.vmem [shape: f32[4,512], index: 25, kind: output, shape index: {}]  }
   0x1   :  { %16160 = sst [smem:[#allocation20_spill]] %s16113_s0  ;;  %195 = vmatprep.mubr.f32.mxu0 %v16145_v2  ;;  %278 = vmatprep.mubr.f32.mxu1 %v16145_v2  ;;  %s13511_s28 = smov 112   ;;  %vm108_vm2 = vcmask 31744   ;;  %vm2512_vm10 = vcmask 1041408   ;;  %vm2508_vm11 = vcmask 15360   ;;  %vm2321_vm12 = vcmask 1047556  }
   0x2   :  { %16161 = sst [smem:[#allocation21_spill]] %s16114_s3  ;;  %s13507_s3 = smov 15   ;;  %13484 = vset.pattern.permute.xlu0 %v13513_v5  ;;  %13485 = vset.pattern.permute.xlu1 %v13513_v5  ;;  %v13735_v9 = vand.u32 127, %v101_v8 }
   0x3   :  { %16162 = sst [smem:[#allocation22_spill]] %s16115_s11  ;;  %s16170_s11 = sld [smem:[#allocation20_spill]] }
   0x4   :  { %16163 = sst [smem:[#allocation23_spill]] %s16116_s2  ;;  %s13505_s2 = smov 17   ;;  %vm103_vm0 = vcmp.lt.s32.totalorder %v13735_v9, 17  ;;  %vm343_vm3 = vcmp.lt.s32.totalorder %v13735_v9, 16  ;;  %vm594_vm4 = vcmp.lt.s32.totalorder %v13735_v9, 15  ;;  %vm845_vm5 = vcmp.lt.s32.totalorder %v13735_v9, 1 }
   0x5   :  { %16164 = sst [smem:[#allocation24_spill]] %s16117_s9  ;;  %s13510_s9 = smov 113   ;;  %vm1295_vm6 = vcmp.lt.s32.totalorder %v13735_v9, 127  ;;  %vm1546_vm7 = vcmp.lt.s32.totalorder %v13735_v9, 113  ;;  %vm1797_vm8 = vcmp.lt.s32.totalorder %v13735_v9, 112  ;;  %vm2048_vm9 = vcmp.lt.s32.totalorder %v13735_v9, 111 }
   0x6   :  { %16165 = sst [smem:[#allocation25_spill]] %s16118_s7  ;;  %s16172_s30 = sld [smem:[#allocation22_spill]] }
   0x7   :  { %16166 = sst [smem:[#allocation26_spill]] %s16119_s1  ;;  %s16171_s1 = sld [smem:[#allocation21_spill]] }
   0x8   :  { %16167 = sst [smem:[#allocation27_spill]] %s16120_s6  ;;  %s16173_s0 = sld [smem:[#allocation23_spill]] }
   0x9   :  { %16168 = sst [smem:[#allocation28_spill]] %s16121_s8  ;;  %v13647_v0 = vld [vmem:[%s16170_s11 + $0x8] sm:$0xff]  ;;  %v13652_v1 = vld [vmem:[%s16170_s11] sm:$0xff]  ;;  %s13508_s8 = smov 1  }
   0xa   :  { %16169 = sst [smem:[#allocation29_spill]] %s16122_s10  ;;  %97 = vrot.lane.b32.xlu1 %v13647_v0, %s13505_s2  ;;  %93 = vrot.lane.b32.xlu0 %v13652_v1, %s13505_s2  ;;  %v13662_v3 = vcombine.high %v13647_v0, %v13647_v0  ;;  %v13666_v4 = vcombine.high %v13652_v1, %v13652_v1  ;;  %s16143_s10 = smov 111  }
   0xb   :  { %s16174_s7 = sld [smem:[#allocation24_spill]]  ;;  %s16175_s11 = sld [smem:[#allocation25_spill]] }
   0xc   :  { %v2828_v7 = vld [vmem:[%s16172_s30] sm:$0xf]  ;;  %s16194_s29 = sld [smem:[#allocation27_spill]]  ;;  %s16195_s6 = sld [smem:[#allocation28_spill]] }
   0xd   :  { %v2289_v6 = vld [vmem:[%s16171_s1 + $0x10] sm:$0xff] }
   0xe   :  { %99 = vrot.lane.b32.xlu1 %v13662_v3, %s13505_s2  ;;  %95 = vrot.lane.b32.xlu0 %v13666_v4, %s13505_s2  ;;  %v84_v18 = vld [vmem:[%s16173_s0] sm:$0xff]  ;;  %v85_v21 = vld [vmem:[%s16173_s0 + $0x8] sm:$0xff] }
   0xf   :  { %v86_v28 = vld [vmem:[%s16173_s0 + $0x10] sm:$0xff]  ;;  %v12858_v31 = vld [vmem:[%s16173_s0 + $0x18] sm:$0xff]  ;;  %v12859_v37 = vld [vmem:[%s16173_s0 + $0x20] sm:$0xff] }
  0x10   :  { %v12860_v41 = vld [vmem:[%s16173_s0 + $0x28] sm:$0xff]  ;;  %v12872_v45 = vld [vmem:[%s16173_s0 + $0x30] sm:$0xff]  ;;  %v12873_v49 = vld [vmem:[%s16173_s0 + $0x38] sm:$0xff] }
  0x11   :  { %v12874_v52 = vld [vmem:[%s16173_s0 + $0x40] sm:$0xff]  ;;  %v12886_v53 = vld [vmem:[%s16173_s0 + $0x48] sm:$0xff]  ;;  %v12887_v58 = vld [vmem:[%s16173_s0 + $0x50] sm:$0xff] }
  0x12   :  { %337 = vrot.lane.b32.xlu1 %v13666_v4, %s13506_s26  ;;  %335 = vrot.lane.b32.xlu0 %v13652_v1, %s13506_s26  ;;  %v12888_v61 = vld [vmem:[%s16173_s0 + $0x58] sm:$0xff]  ;;  %v12900_v62 = vld [vmem:[%s16173_s0 + $0x60] sm:$0xff] }
  0x16   :  { %341 = vrot.lane.b32.xlu1 %v13662_v3, %s13506_s26  ;;  %339 = vrot.lane.b32.xlu0 %v13647_v0, %s13506_s26 }
  0x1a   :  { %588 = vrot.lane.b32.xlu1 %v13666_v4, %s13507_s3  ;;  %586 = vrot.lane.b32.xlu0 %v13652_v1, %s13507_s3 }
  0x1e   :  { %592 = vrot.lane.b32.xlu1 %v13662_v3, %s13507_s3  ;;  %590 = vrot.lane.b32.xlu0 %v13647_v0, %s13507_s3 }
  0x22   :  { %839 = vrot.lane.b32.xlu1 %v13666_v4, %s13508_s8  ;;  %837 = vrot.lane.b32.xlu0 %v13652_v1, %s13508_s8 }
  0x26   :  { %843 = vrot.lane.b32.xlu1 %v13662_v3, %s13508_s8  ;;  %841 = vrot.lane.b32.xlu0 %v13647_v0, %s13508_s8 }
  0x2a   :  { %1287 = vrot.lane.b32.xlu0 %v13652_v1, %s13509_s27  ;;  %1289 = vrot.lane.b32.xlu1 %v13666_v4, %s13509_s27 }
  0x2e   :  { %1291 = vrot.lane.b32.xlu0 %v13647_v0, %s13509_s27  ;;  %1293 = vrot.lane.b32.xlu1 %v13662_v3, %s13509_s27 }
  0x32   :  { %1538 = vrot.lane.b32.xlu0 %v13652_v1, %s13510_s9  ;;  %1540 = vrot.lane.b32.xlu1 %v13666_v4, %s13510_s9 }
  0x36   :  { %1542 = vrot.lane.b32.xlu0 %v13647_v0, %s13510_s9  ;;  %1544 = vrot.lane.b32.xlu1 %v13662_v3, %s13510_s9 }
  0x3a   :  { %1789 = vrot.lane.b32.xlu0 %v13652_v1, %s13511_s28  ;;  %1791 = vrot.lane.b32.xlu1 %v13666_v4, %s13511_s28 }
  0x3e   :  { %1793 = vrot.lane.b32.xlu0 %v13647_v0, %s13511_s28  ;;  %1795 = vrot.lane.b32.xlu1 %v13662_v3, %s13511_s28 }
  0x42   :  { %2040 = vrot.lane.b32.xlu0 %v13652_v1, %s16143_s10  ;;  %2042 = vrot.lane.b32.xlu1 %v13666_v4, %s16143_s10 }
  0x46   :  { %2044 = vrot.lane.b32.xlu0 %v13647_v0, %s16143_s10  ;;  %2046 = vrot.lane.b32.xlu1 %v13662_v3, %s16143_s10  ;;  %s16197_s10 = sld [smem:[#allocation29_spill]] }
  0x4a   :  { %2302 = vperm.xlu0 %13484, %v2289_v6   ;;  %v12901_v6 = vld [vmem:[%s16173_s0 + $0x68] sm:$0xff] }
  0x4e   :  { %2831 = vperm.xlu0 %13484, %v2828_v7  }
  0x7c   :  { %v98_v10 = vpop.permute.xlu1 %97  ;;  %v94_v11 = vpop.permute.xlu0 %93 }
  0x80   :  { %v100_v12 = vpop.permute.xlu1 %99  ;;  %v96_v13 = vpop.permute.xlu0 %95 }
  0x81   :  { %v106_v14 = vsel %vm103_vm0, %v94_v11, %v96_v13  ;;  %v104_v15 = vsel %vm103_vm0, %v98_v10, %v100_v12  ;;  %v107_v16 = vsel %vm103_vm0, %v100_v12, %v94_v11  ;;  %v105_v17 = vsel %vm103_vm0, %v96_v13, %v98_v10  ;;  %v12902_v11 = vld [vmem:[%s16173_s0 + $0x70] sm:$0xff]  ;;  %v12913_v12 = vld [vmem:[%s16173_s0 + $0x78] sm:$0xff] }
  0x82   :  { %12848 = vmatprep.subr.msk.mxu0 %vm118_vm1, %v106_v14  ;;  %12853 = vmatprep.subr.msk.mxu1 %vm118_vm1, %v104_v15 }
  0x83   :  { %12849 = vmatpush1.msk.msra.mxu0 %vm118_vm1, %v107_v16  ;;  %12854 = vmatpush1.msk.msra.mxu1 %vm118_vm1, %v105_v17 }
  0x84   :  { %v338_v19 = vpop.permute.xlu1 %337  ;;  %12850 = vmatmul.mubr.msk.f32.vlgmr.msra.gmra.mrb[0].mxu0 %vm108_vm2, %v84_v18  ;;  %12855 = vmatmul.mubr.msk.f32.vlgmr.msra.gmra.mrb[0].mxu1 %vm108_vm2, %v84_v18  ;;  %v336_v20 = vpop.permute.xlu0 %335 }
  0x85   :  { %201 = vmatprep.mubr.f32.mxu0 %v16145_v2  ;;  %284 = vmatprep.mubr.f32.mxu1 %v16145_v2  ;;  %v346_v22 = vsel %vm343_vm3, %v336_v20, %v338_v19 }
  0x86   :  { %12861 = vmatprep.subr.msk.mxu0 %vm118_vm1, %v346_v22  ;;  %v12915_v22 = vld [vmem:[%s16173_s0 + $0x88] sm:$0xff] }
  0x88   :  { %v342_v23 = vpop.permute.xlu1 %341  ;;  %12851 = vmatmul.mubr.msk.f32.gmra.mrb[2].mxu0 %vm108_vm2, %v85_v21  ;;  %12856 = vmatmul.mubr.msk.f32.gmra.mrb[2].mxu1 %vm108_vm2, %v85_v21  ;;  %v340_v24 = vpop.permute.xlu0 %339 }
  0x89   :  { %v347_v25 = vsel %vm343_vm3, %v342_v23, %v336_v20  ;;  %v345_v26 = vsel %vm343_vm3, %v338_v19, %v340_v24  ;;  %v344_v27 = vsel %vm343_vm3, %v340_v24, %v342_v23  ;;  %207 = vmatprep.mubr.f32.mxu0 %v16145_v2  ;;  %290 = vmatprep.mubr.f32.mxu1 %v16145_v2  ;;  %v12914_v19 = vld [vmem:[%s16173_s0 + $0x80] sm:$0xff]  ;;  %v12927_v23 = vld [vmem:[%s16173_s0 + $0x90] sm:$0xff] }
  0x8a   :  { %12862 = vmatpush1.msk.msra.mxu0 %vm118_vm1, %v347_v25  ;;  %12866 = vmatprep.subr.msk.mxu1 %vm118_vm1, %v344_v27 }
  0x8b   :  { %12867 = vmatpush1.msk.msra.mxu1 %vm118_vm1, %v345_v26 }
  0x8c   :  { %12852 = vmatmul.mubr.msk.f32.gmra.mrb[4].mxu0 %vm108_vm2, %v86_v28  ;;  %12857 = vmatmul.mubr.msk.f32.gmra.mrb[4].mxu1 %vm108_vm2, %v86_v28  ;;  %v589_v29 = vpop.permute.xlu1 %588  ;;  %v587_v30 = vpop.permute.xlu0 %586 }
  0x8d   :  { %433 = vmatprep.mubr.f32.mxu0 %v16145_v2  ;;  %516 = vmatprep.mubr.f32.mxu1 %v16145_v2  ;;  %v597_v32 = vsel %vm594_vm4, %v587_v30, %v589_v29 }
  0x8e   :  { %12875 = vmatprep.subr.msk.mxu0 %vm118_vm1, %v597_v32  ;;  %v12941_v32 = vld [vmem:[%s16173_s0 + $0xa8] sm:$0xff] }
  0x90   :  { %12863 = vmatmul.mubr.msk.f32.vlgmr.msra.gmra.mrb[6].mxu0 %vm108_vm2, %v12858_v31  ;;  %12868 = vmatmul.mubr.msk.f32.vlgmr.msra.gmra.mrb[6].mxu1 %vm108_vm2, %v12858_v31  ;;  %v593_v33 = vpop.permute.xlu1 %592  ;;  %v591_v34 = vpop.permute.xlu0 %590  ;;  %v12929_v31 = vld [vmem:[%s16173_s0 + $0xa0] sm:$0xff] }
  0x91   :  { %v598_v35 = vsel %vm594_vm4, %v593_v33, %v587_v30  ;;  %439 = vmatprep.mubr.f32.mxu0 %v16145_v2  ;;  %522 = vmatprep.mubr.f32.mxu1 %v16145_v2  ;;  %v596_v36 = vsel %vm594_vm4, %v589_v29, %v591_v34  ;;  %v595_v38 = vsel %vm594_vm4, %v591_v34, %v593_v33  ;;  %v12928_v30 = vld [vmem:[%s16173_s0 + $0x98] sm:$0xff] }
  0x92   :  { %12880 = vmatprep.subr.msk.mxu1 %vm118_vm1, %v595_v38  ;;  %12876 = vmatpush1.msk.msra.mxu0 %vm118_vm1, %v598_v35  ;;  %v12942_v35 = vld [vmem:[%s16173_s0 + $0xb0] sm:$0xff]  ;;  %v12956_v38 = vld [vmem:[%s16173_s0 + $0xc8] sm:$0xff] }
  0x93   :  { %12881 = vmatpush1.msk.msra.mxu1 %vm118_vm1, %v596_v36  ;;  %v12943_v36 = vld [vmem:[%s16173_s0 + $0xb8] sm:$0xff] }
  0x94   :  { %12864 = vmatmul.mubr.msk.f32.gmra.mrb[8].mxu0 %vm108_vm2, %v12859_v37  ;;  %12869 = vmatmul.mubr.msk.f32.gmra.mrb[8].mxu1 %vm108_vm2, %v12859_v37  ;;  %v840_v39 = vpop.permute.xlu1 %839  ;;  %v838_v40 = vpop.permute.xlu0 %837  ;;  %v12955_v37 = vld [vmem:[%s16173_s0 + $0xc0] sm:$0xff] }
  0x95   :  { %445 = vmatprep.mubr.f32.mxu0 %v16145_v2  ;;  %528 = vmatprep.mubr.f32.mxu1 %v16145_v2  ;;  %v848_v42 = vsel %vm845_vm5, %v838_v40, %v840_v39 }
  0x96   :  { %12889 = vmatprep.subr.msk.mxu0 %vm118_vm1, %v848_v42  ;;  %v2664_v42 = vld [vmem:[%s16174_s7] sm:$0xf]  ;;  %s16176_s7 = sld [smem:[#allocation26_spill]] }
  0x97   :  { %2667 = vperm.xlu1 %13485, %v2664_v42  }
  0x98   :  { %12865 = vmatmul.mubr.msk.f32.gmra.mrb[10].mxu0 %vm108_vm2, %v12860_v41  ;;  %12870 = vmatmul.mubr.msk.f32.gmra.mrb[10].mxu1 %vm108_vm2, %v12860_v41  ;;  %v844_v43 = vpop.permute.xlu1 %843  ;;  %v842_v44 = vpop.permute.xlu0 %841 }
  0x99   :  { %684 = vmatprep.mubr.f32.mxu0 %v16145_v2  ;;  %767 = vmatprep.mubr.f32.mxu1 %v16145_v2  ;;  %v846_v46 = vsel %vm845_vm5, %v842_v44, %v844_v43  ;;  %v849_v47 = vsel %vm845_vm5, %v844_v43, %v838_v40  ;;  %v847_v48 = vsel %vm845_vm5, %v840_v39, %v842_v44  ;;  %v12957_v39 = vld [vmem:[%s16173_s0 + $0xd0] sm:$0xff]  ;;  %v300_v43 = vshrl.u32 %v101_v8, 7 }
  0x9a   :  { %12894 = vmatprep.subr.msk.mxu1 %vm118_vm1, %v846_v46  ;;  %v2494_v46 = vld [vmem:[%s16175_s11] sm:$0xf] }
  0x9b   :  { %2497 = vperm.xlu1 %13485, %v2494_v46  }
  0x9c   :  { %12877 = vmatmul.mubr.msk.f32.vlgmr.msra.gmra.mrb[12].mxu0 %vm108_vm2, %v12872_v45  ;;  %12882 = vmatmul.mubr.msk.f32.vlgmr.msra.gmra.mrb[12].mxu1 %vm108_vm2, %v12872_v45  ;;  %v1288_v50 = vpop.permute.xlu0 %1287  ;;  %v1290_v51 = vpop.permute.xlu1 %1289  ;;  %v297_v8 = vld [vmem:[%s16176_s7] sm:$0xf] }
  0x9d   :  { %690 = vmatprep.mubr.f32.mxu0 %v16145_v2  ;;  %773 = vmatprep.mubr.f32.mxu1 %v16145_v2 }
  0x9e   :  { %12890 = vmatpush1.msk.msra.mxu0 %vm118_vm1, %v849_v47  ;;  %12895 = vmatpush1.msk.msra.mxu1 %vm118_vm1, %v847_v48 }
  0x9f   :  { %12903 = vmatprep.subr.msk.mxu0 %vm118_vm1, %v13666_v4  ;;  %12908 = vmatprep.subr.msk.mxu1 %vm118_vm1, %v13662_v3 }
  0xa0   :  { %12878 = vmatmul.mubr.msk.f32.gmra.mrb[14].mxu0 %vm108_vm2, %v12873_v49  ;;  %12883 = vmatmul.mubr.msk.f32.gmra.mrb[14].mxu1 %vm108_vm2, %v12873_v49  ;;  %v1292_v54 = vpop.permute.xlu0 %1291  ;;  %v1294_v55 = vpop.permute.xlu1 %1293  ;;  %v14045_v49 = vsub.s32 0, %v300_v43 }
  0xa1   :  { %696 = vmatprep.mubr.f32.mxu0 %v16145_v2  ;;  %779 = vmatprep.mubr.f32.mxu1 %v16145_v2  ;;  %v1297_v56 = vsel %vm1295_vm6, %v1290_v51, %v1292_v54  ;;  %v1299_v57 = vsel %vm1295_vm6, %v1294_v55, %v1288_v50  ;;  %v1296_v3 = vsel %vm1295_vm6, %v1292_v54, %v1294_v55  ;;  %v14054_v54 = vsub.s32 3, %v300_v43  ;;  %v12871_v55 = vld [vmem:[%s16176_s7 + $0x4] sm:$0xf] }
  0xa4   :  { %12879 = vmatmul.mubr.msk.f32.gmra.mrb[16].mxu0 %vm108_vm2, %v12874_v52  ;;  %12884 = vmatmul.mubr.msk.f32.gmra.mrb[16].mxu1 %vm108_vm2, %v12874_v52  ;;  %v1539_v59 = vpop.permute.xlu0 %1538  ;;  %v1541_v60 = vpop.permute.xlu1 %1540 }
  0xa5   :  { %935 = vmatprep.mubr.f32.mxu0 %v16145_v2  ;;  %1018 = vmatprep.mubr.f32.mxu1 %v16145_v2  ;;  %v1549_v15 = vsel %vm1546_vm7, %v1539_v59, %v1541_v60 }
  0xa8   :  { %12891 = vmatmul.mubr.msk.f32.vlgmr.msra.gmra.mrb[18].mxu0 %vm108_vm2, %v12886_v53  ;;  %12896 = vmatmul.mubr.msk.f32.vlgmr.msra.gmra.mrb[18].mxu1 %vm108_vm2, %v12886_v53  ;;  %v1543_v63 = vpop.permute.xlu0 %1542  ;;  %v14052_v53 = vsub.s32 1, %v300_v43 }
  0xa9   :  { %941 = vmatprep.mubr.f32.mxu0 %v16145_v2  ;;  %1024 = vmatprep.mubr.f32.mxu1 %v16145_v2  ;;  %v1548_v4 = vsel %vm1546_vm7, %v1541_v60, %v1543_v63 }
  0xaa   :  { %12904 = vmatpush1.msk.msra.mxu0 %vm118_vm1, %v13652_v1  ;;  %12909 = vmatpush1.msk.msra.mxu1 %vm118_vm1, %v13647_v0  ;;  %v1545_v0 = vpop.permute.xlu1 %1544  ;;  %v1298_v1 = vsel %vm1295_vm6, %v1288_v50, %v1290_v51  ;;  %v14047_v50 = vsub.s32 2, %v300_v43 }
  0xab   :  { %12916 = vmatprep.subr.msk.mxu0 %vm118_vm1, %v1297_v56  ;;  %12921 = vmatprep.subr.msk.mxu1 %vm118_vm1, %v1299_v57  ;;  %v1550_v5 = vsel %vm1546_vm7, %v1545_v0, %v1539_v59  ;;  %v1547_v16 = vsel %vm1546_vm7, %v1543_v63, %v1545_v0  ;;  %v14072_v0 = vrot.slane %v297_v8, %v14052_v53 }
  0xac   :  { %12892 = vmatmul.mubr.msk.f32.gmra.mrb[20].mxu0 %vm108_vm2, %v12887_v58  ;;  %12897 = vmatmul.mubr.msk.f32.gmra.mrb[20].mxu1 %vm108_vm2, %v12887_v58  ;;  %v1790_v7 = vpop.permute.xlu0 %1789  ;;  %v14060_v58 = vrot.slane %v297_v8, %v14045_v49  ;;  %v14063_v59 = vrot.slane %v297_v8, %v14047_v50  ;;  %v14069_v63 = vrot.slane %v12871_v55, %v14047_v50 }
  0xad   :  { %947 = vmatprep.mubr.f32.mxu0 %v16145_v2  ;;  %1030 = vmatprep.mubr.f32.mxu1 %v16145_v2 }
  0xae   :  { %v1792_v10 = vpop.permute.xlu1 %1791  ;;  %16177 = vst [vmem:[#allocation3_spill] sm:$0xff] %v14069_v63 }
  0xaf   :  { %v1800_v26 = vsel %vm1797_vm8, %v1790_v7, %v1792_v10 }
  0xb0   :  { %12893 = vmatmul.mubr.msk.f32.gmra.mrb[22].mxu0 %vm108_vm2, %v12888_v61  ;;  %12898 = vmatmul.mubr.msk.f32.gmra.mrb[22].mxu1 %vm108_vm2, %v12888_v61  ;;  %v1794_v13 = vpop.permute.xlu0 %1793 }
  0xb1   :  { %1169 = vmatprep.mubr.f32.mxu0 %v16145_v2  ;;  %1252 = vmatprep.mubr.f32.mxu1 %v16145_v2  ;;  %v1799_v17 = vsel %vm1797_vm8, %v1792_v10, %v1794_v13 }
  0xb2   :  { %v1796_v14 = vpop.permute.xlu1 %1795 }
  0xb3   :  { %v1801_v18 = vsel %vm1797_vm8, %v1796_v14, %v1790_v7  ;;  %v1798_v27 = vsel %vm1797_vm8, %v1794_v13, %v1796_v14 }
  0xb4   :  { %12905 = vmatmul.mubr.msk.f32.vlgmr.msra.gmra.mrb[24].mxu0 %vm108_vm2, %v12900_v62  ;;  %12910 = vmatmul.mubr.msk.f32.vlgmr.msra.gmra.mrb[24].mxu1 %vm108_vm2, %v12900_v62  ;;  %v2041_v20 = vpop.permute.xlu0 %2040  ;;  %v14066_v62 = vrot.slane %v12871_v55, %v14045_v49 }
  0xb5   :  { %1175 = vmatprep.mubr.f32.mxu0 %v16145_v2  ;;  %1258 = vmatprep.mubr.f32.mxu1 %v16145_v2 }
  0xb6   :  { %12917 = vmatpush1.msk.msra.mxu0 %vm118_vm1, %v1298_v1  ;;  %12922 = vmatpush1.msk.msra.mxu1 %vm118_vm1, %v1296_v3  ;;  %v2043_v21 = vpop.permute.xlu1 %2042  ;;  %v14075_v1 = vrot.slane %v297_v8, %v14054_v54  ;;  %v14078_v3 = vrot.slane %v12871_v55, %v14052_v53 }
  0xb7   :  { %12930 = vmatprep.subr.msk.mxu0 %vm118_vm1, %v1548_v4  ;;  %12935 = vmatprep.subr.msk.mxu1 %vm118_vm1, %v1550_v5  ;;  %v2051_v33 = vsel %vm2048_vm9, %v2041_v20, %v2043_v21  ;;  %v14081_v4 = vrot.slane %v12871_v55, %v14054_v54 }
  0xb8   :  { %12906 = vmatmul.mubr.msk.f32.gmra.mrb[26].mxu0 %vm108_vm2, %v12901_v6  ;;  %12911 = vmatmul.mubr.msk.f32.gmra.mrb[26].mxu1 %vm108_vm2, %v12901_v6  ;;  %v2045_v24 = vpop.permute.xlu0 %2044  ;;  %16178 = vst [vmem:[#allocation4_spill] sm:$0xff] %v14075_v1 }
  0xb9   :  { %1181 = vmatprep.mubr.f32.mxu0 %v16145_v2  ;;  %1264 = vmatprep.mubr.f32.mxu1 %v16145_v2  ;;  %v2050_v28 = vsel %vm2048_vm9, %v2043_v21, %v2045_v24 }
  0xba   :  { %v2047_v25 = vpop.permute.xlu1 %2046 }
  0xbb   :  { %v2052_v29 = vsel %vm2048_vm9, %v2047_v25, %v2041_v20  ;;  %v2049_v34 = vsel %vm2048_vm9, %v2045_v24, %v2047_v25  ;;  %v12885_v25 = vld [vmem:[%s16176_s7 + $0x8] sm:$0xf] }
  0xbc   :  { %12907 = vmatmul.mubr.msk.f32.gmra.mrb[28].mxu0 %vm108_vm2, %v12902_v11  ;;  %12912 = vmatmul.mubr.msk.f32.gmra.mrb[28].mxu1 %vm108_vm2, %v12902_v11 }
  0xbd   :  { %1385 = vmatprep.mubr.f32.mxu0 %v16145_v2  ;;  %1468 = vmatprep.mubr.f32.mxu1 %v16145_v2 }
  0xc0   :  { %12918 = vmatmul.mubr.msk.f32.vlgmr.msra.gmra.mrb[30].mxu0 %vm108_vm2, %v12913_v12  ;;  %12923 = vmatmul.mubr.msk.f32.vlgmr.msra.gmra.mrb[30].mxu1 %vm108_vm2, %v12913_v12 }
  0xc1   :  { %1391 = vmatprep.mubr.f32.mxu0 %v16145_v2  ;;  %1474 = vmatprep.mubr.f32.mxu1 %v16145_v2 }
  0xc2   :  { %12931 = vmatpush1.msk.msra.mxu0 %vm118_vm1, %v1549_v15  ;;  %12936 = vmatpush1.msk.msra.mxu1 %vm118_vm1, %v1547_v16 }
  0xc3   :  { %12944 = vmatprep.subr.msk.mxu0 %vm118_vm1, %v1799_v17  ;;  %12949 = vmatprep.subr.msk.mxu1 %vm118_vm1, %v1801_v18 }
  0xc4   :  { %12919 = vmatmul.mubr.msk.f32.gmra.mrb[32].mxu0 %vm108_vm2, %v12914_v19  ;;  %12924 = vmatmul.mubr.msk.f32.gmra.mrb[32].mxu1 %vm108_vm2, %v12914_v19 }
  0xc5   :  { %1397 = vmatprep.mubr.f32.mxu0 %v16145_v2  ;;  %1480 = vmatprep.mubr.f32.mxu1 %v16145_v2 }
  0xc8   :  { %12920 = vmatmul.mubr.msk.f32.gmra.mrb[34].mxu0 %vm108_vm2, %v12915_v22  ;;  %12925 = vmatmul.mubr.msk.f32.gmra.mrb[34].mxu1 %vm108_vm2, %v12915_v22 }
  0xc9   :  { %1636 = vmatprep.mubr.f32.mxu0 %v16145_v2  ;;  %1719 = vmatprep.mubr.f32.mxu1 %v16145_v2 }
  0xcc   :  { %12932 = vmatmul.mubr.msk.f32.vlgmr.msra.gmra.mrb[36].mxu0 %vm108_vm2, %v12927_v23  ;;  %12937 = vmatmul.mubr.msk.f32.vlgmr.msra.gmra.mrb[36].mxu1 %vm108_vm2, %v12927_v23 }
  0xcd   :  { %1642 = vmatprep.mubr.f32.mxu0 %v16145_v2  ;;  %1725 = vmatprep.mubr.f32.mxu1 %v16145_v2 }
  0xce   :  { %12945 = vmatpush1.msk.msra.mxu0 %vm118_vm1, %v1800_v26  ;;  %12950 = vmatpush1.msk.msra.mxu1 %vm118_vm1, %v1798_v27 }
  0xcf   :  { %12958 = vmatprep.subr.msk.mxu0 %vm118_vm1, %v2050_v28  ;;  %12963 = vmatprep.subr.msk.mxu1 %vm118_vm1, %v2052_v29 }
  0xd0   :  { %12933 = vmatmul.mubr.msk.f32.gmra.mrb[38].mxu0 %vm108_vm2, %v12928_v30  ;;  %12938 = vmatmul.mubr.msk.f32.gmra.mrb[38].mxu1 %vm108_vm2, %v12928_v30 }
  0xd1   :  { %1648 = vmatprep.mubr.f32.mxu0 %v16145_v2  ;;  %1731 = vmatprep.mubr.f32.mxu1 %v16145_v2 }
  0xd4   :  { %12934 = vmatmul.mubr.msk.f32.gmra.mrb[40].mxu0 %vm108_vm2, %v12929_v31  ;;  %12939 = vmatmul.mubr.msk.f32.gmra.mrb[40].mxu1 %vm108_vm2, %v12929_v31 }
  0xd5   :  { %1887 = vmatprep.mubr.f32.mxu0 %v16145_v2  ;;  %1970 = vmatprep.mubr.f32.mxu1 %v16145_v2 }
  0xd8   :  { %12946 = vmatmul.mubr.msk.f32.vlgmr.msra.gmra.mrb[42].mxu0 %vm108_vm2, %v12941_v32  ;;  %12951 = vmatmul.mubr.msk.f32.vlgmr.msra.gmra.mrb[42].mxu1 %vm108_vm2, %v12941_v32 }
  0xd9   :  { %1893 = vmatprep.mubr.f32.mxu0 %v16145_v2  ;;  %1976 = vmatprep.mubr.f32.mxu1 %v16145_v2 }
  0xda   :  { %12959 = vmatpush1.msk.msra.mxu0 %vm118_vm1, %v2051_v33  ;;  %12964 = vmatpush1.msk.msra.mxu1 %vm118_vm1, %v2049_v34 }
  0xdc   :  { %12947 = vmatmul.mubr.msk.f32.gmra.mrb[44].mxu0 %vm108_vm2, %v12942_v35  ;;  %12952 = vmatmul.mubr.msk.f32.gmra.mrb[44].mxu1 %vm108_vm2, %v12942_v35 }
  0xdd   :  { %1899 = vmatprep.mubr.f32.mxu0 %v16145_v2  ;;  %1982 = vmatprep.mubr.f32.mxu1 %v16145_v2 }
  0xe0   :  { %12948 = vmatmul.mubr.msk.f32.gmra.mrb[46].mxu0 %vm108_vm2, %v12943_v36  ;;  %12953 = vmatmul.mubr.msk.f32.gmra.mrb[46].mxu1 %vm108_vm2, %v12943_v36 }
  0xe1   :  { %2138 = vmatprep.mubr.f32.mxu0 %v16145_v2  ;;  %2221 = vmatprep.mubr.f32.mxu1 %v16145_v2 }
  0xe4   :  { %12960 = vmatmul.mubr.msk.f32.vlgmr.msra.gmra.mrb[48].mxu0 %vm108_vm2, %v12955_v37  ;;  %12965 = vmatmul.mubr.msk.f32.vlgmr.msra.gmra.mrb[48].mxu1 %vm108_vm2, %v12955_v37 }
  0xe5   :  { %2144 = vmatprep.mubr.f32.mxu0 %v16145_v2  ;;  %2227 = vmatprep.mubr.f32.mxu1 %v16145_v2 }
  0xe8   :  { %12961 = vmatmul.mubr.msk.f32.gmra.mrb[50].mxu0 %vm108_vm2, %v12956_v38  ;;  %12966 = vmatmul.mubr.msk.f32.gmra.mrb[50].mxu1 %vm108_vm2, %v12956_v38  ;;  %v14103_v38 = vrot.slane %v12885_v25, %v14045_v49 }
  0xe9   :  { %2150 = vmatprep.mubr.f32.mxu0 %v16145_v2  ;;  %2233 = vmatprep.mubr.f32.mxu1 %v16145_v2 }
  0xec   :  { %12962 = vmatmul.mubr.msk.f32.gmra.mrb[52].mxu0 %vm108_vm2, %v12957_v39  ;;  %12967 = vmatmul.mubr.msk.f32.gmra.mrb[52].mxu1 %vm108_vm2, %v12957_v39  ;;  %v14106_v39 = vrot.slane %v12885_v25, %v14047_v50 }
  0xed   :  { %2585 = vmatprep.mubr.f32.mxu0 %v16145_v2  ;;  %2656 = vmatprep.mubr.f32.mxu1 %v16145_v2 }
  0xee   :  { %16179 = vst [vmem:[#allocation5_spill] sm:$0xff] %v14106_v39 }
 0x157   :  { %v197_v40 = vpop.f32.mrb[0].mxu0  ;;  %v280_v41 = vpop.f32.mrb[0].mxu1 }
 0x158   :  { %v199_v44 = vpop.f32.mrb[1].mxu0  ;;  %v282_v45 = vpop.f32.mrb[1].mxu1  ;;  %v319_v7 = vmul.f32 %v14060_v58, %v197_v40  ;;  %v321_v10 = vmul.f32 %v14063_v59, %v280_v41 }
 0x159   :  { %v320_v15 = vmul.f32 %v14072_v0, %v199_v44  ;;  %v322_v16 = vmul.f32 %v14075_v1, %v282_v45  ;;  %v14109_v44 = vrot.slane %v12885_v25, %v14052_v53  ;;  %v14112_v45 = vrot.slane %v12885_v25, %v14054_v54 }
 0x15b   :  { %v203_v47 = vpop.f32.mrb[2].mxu0  ;;  %v286_v48 = vpop.f32.mrb[2].mxu1  ;;  %16180 = vst [vmem:[#allocation6_spill] sm:$0xff] %v14109_v44  ;;  %16181 = vst [vmem:[#allocation7_spill] sm:$0xff] %v14112_v45 }
 0x15c   :  { %v205_v51 = vpop.f32.mrb[3].mxu0  ;;  %v288_v52 = vpop.f32.mrb[3].mxu1  ;;  %v323_v26 = vmul.f32 %v14060_v58, %v203_v47  ;;  %v325_v27 = vmul.f32 %v14063_v59, %v286_v48 }
 0x15d   :  { %v324_v32 = vmul.f32 %v14072_v0, %v205_v51  ;;  %v326_v33 = vmul.f32 %v14075_v1, %v288_v52 }
 0x15f   :  { %v209_v56 = vpop.f32.mrb[4].mxu0  ;;  %v292_v57 = vpop.f32.mrb[4].mxu1 }
 0x160   :  { %v211_v60 = vpop.f32.mrb[5].mxu0  ;;  %v294_v61 = vpop.f32.mrb[5].mxu1  ;;  %v327_v46 = vmul.f32 %v14060_v58, %v209_v56  ;;  %v329_v47 = vmul.f32 %v14063_v59, %v292_v57 }
 0x161   :  { %v328_v55 = vmul.f32 %v14072_v0, %v211_v60 }
 0x163   :  { %v435_v5 = vpop.f32.mrb[6].mxu0  ;;  %v518_v6 = vpop.f32.mrb[6].mxu1 }
 0x164   :  { %v558_v11 = vmul.f32 %v14066_v62, %v435_v5  ;;  %v560_v12 = vmul.f32 %v14069_v63, %v518_v6  ;;  %v437_v13 = vpop.f32.mrb[7].mxu0  ;;  %v520_v14 = vpop.f32.mrb[7].mxu1  ;;  %v330_v5 = vmul.f32 %v14075_v1, %v294_v61 }
 0x165   :  { %v559_v17 = vmul.f32 %v14078_v3, %v437_v13  ;;  %v561_v18 = vmul.f32 %v14081_v4, %v520_v14 }
 0x166   :  { %v570_v19 = vadd.f32 %v558_v11, %v319_v7  ;;  %v572_v20 = vadd.f32 %v560_v12, %v321_v10 }
 0x167   :  { %v571_v21 = vadd.f32 %v559_v17, %v320_v15  ;;  %v573_v22 = vadd.f32 %v561_v18, %v322_v16  ;;  %v441_v23 = vpop.f32.mrb[8].mxu0  ;;  %v524_v24 = vpop.f32.mrb[8].mxu1 }
 0x168   :  { %v562_v28 = vmul.f32 %v14066_v62, %v441_v23  ;;  %v564_v29 = vmul.f32 %v14069_v63, %v524_v24  ;;  %v443_v30 = vpop.f32.mrb[9].mxu0  ;;  %v526_v31 = vpop.f32.mrb[9].mxu1 }
 0x169   :  { %v563_v34 = vmul.f32 %v14078_v3, %v443_v30  ;;  %v565_v35 = vmul.f32 %v14081_v4, %v526_v31 }
 0x16a   :  { %v574_v36 = vadd.f32 %v562_v28, %v323_v26  ;;  %v576_v37 = vadd.f32 %v564_v29, %v325_v27 }
 0x16b   :  { %v575_v40 = vadd.f32 %v563_v34, %v324_v32  ;;  %v577_v41 = vadd.f32 %v565_v35, %v326_v33  ;;  %v447_v42 = vpop.f32.mrb[10].mxu0  ;;  %v530_v43 = vpop.f32.mrb[10].mxu1  ;;  %v12899_v34 = vld [vmem:[%s16176_s7 + $0xc] sm:$0xf] }
 0x16c   :  { %v566_v48 = vmul.f32 %v14066_v62, %v447_v42  ;;  %v568_v51 = vmul.f32 %v14069_v63, %v530_v43  ;;  %v449_v52 = vpop.f32.mrb[11].mxu0  ;;  %v532_v8 = vpop.f32.mrb[11].mxu1 }
 0x16d   :  { %v567_v6 = vmul.f32 %v14078_v3, %v449_v52  ;;  %v569_v7 = vmul.f32 %v14081_v4, %v532_v8  ;;  %v14139_v52 = vrot.slane %v12899_v34, %v14047_v50 }
 0x16e   :  { %v578_v10 = vadd.f32 %v566_v48, %v327_v46  ;;  %v580_v11 = vadd.f32 %v568_v51, %v329_v47  ;;  %v14136_v51 = vrot.slane %v12899_v34, %v14045_v49 }
 0x16f   :  { %v579_v12 = vadd.f32 %v567_v6, %v328_v55  ;;  %v581_v56 = vadd.f32 %v569_v7, %v330_v5  ;;  %v686_v13 = vpop.f32.mrb[12].mxu0  ;;  %v769_v57 = vpop.f32.mrb[12].mxu1  ;;  %16183 = vst [vmem:[#allocation9_spill] sm:$0xff] %v14139_v52 }
 0x170   :  { %v809_v14 = vmul.f32 %v14103_v38, %v686_v13  ;;  %v811_v15 = vmul.f32 %v14106_v39, %v769_v57  ;;  %v688_v16 = vpop.f32.mrb[13].mxu0  ;;  %v771_v17 = vpop.f32.mrb[13].mxu1  ;;  %16182 = vst [vmem:[#allocation8_spill] sm:$0xff] %v14136_v51 }
 0x171   :  { %v810_v60 = vmul.f32 %v14109_v44, %v688_v16  ;;  %v812_v61 = vmul.f32 %v14112_v45, %v771_v17 }
 0x172   :  { %v821_v18 = vadd.f32 %v809_v14, %v570_v19  ;;  %v823_v23 = vadd.f32 %v811_v15, %v572_v20 }
 0x173   :  { %v822_v24 = vadd.f32 %v810_v60, %v571_v21  ;;  %v824_v25 = vadd.f32 %v812_v61, %v573_v22  ;;  %v692_v26 = vpop.f32.mrb[14].mxu0  ;;  %v775_v27 = vpop.f32.mrb[14].mxu1 }
 0x174   :  { %v813_v28 = vmul.f32 %v14103_v38, %v692_v26  ;;  %v815_v29 = vmul.f32 %v14106_v39, %v775_v27  ;;  %v694_v30 = vpop.f32.mrb[15].mxu0  ;;  %v777_v31 = vpop.f32.mrb[15].mxu1 }
 0x175   :  { %v814_v32 = vmul.f32 %v14109_v44, %v694_v30  ;;  %v816_v33 = vmul.f32 %v14112_v45, %v777_v31 }
 0x176   :  { %v825_v19 = vadd.f32 %v813_v28, %v574_v36  ;;  %v827_v20 = vadd.f32 %v815_v29, %v576_v37  ;;  %v14144_v37 = vrot.slane %v12899_v34, %v14052_v53 }
 0x177   :  { %v826_v21 = vadd.f32 %v814_v32, %v575_v40  ;;  %v828_v22 = vadd.f32 %v816_v33, %v577_v41  ;;  %v698_v35 = vpop.f32.mrb[16].mxu0  ;;  %v781_v42 = vpop.f32.mrb[16].mxu1  ;;  %v14147_v40 = vrot.slane %v12899_v34, %v14054_v54 }
 0x178   :  { %v817_v43 = vmul.f32 %v14103_v38, %v698_v35  ;;  %v819_v46 = vmul.f32 %v14106_v39, %v781_v42  ;;  %v700_v47 = vpop.f32.mrb[17].mxu0  ;;  %v783_v48 = vpop.f32.mrb[17].mxu1  ;;  %16184 = vst [vmem:[#allocation10_spill] sm:$0xff] %v14144_v37 }
 0x179   :  { %v818_v8 = vmul.f32 %v14109_v44, %v700_v47  ;;  %v820_v36 = vmul.f32 %v14112_v45, %v783_v48  ;;  %16185 = vst [vmem:[#allocation11_spill] sm:$0xff] %v14147_v40 }
 0x17a   :  { %v829_v41 = vadd.f32 %v817_v43, %v578_v10  ;;  %v831_v55 = vadd.f32 %v819_v46, %v580_v11 }
 0x17b   :  { %v830_v5 = vadd.f32 %v818_v8, %v579_v12  ;;  %v832_v6 = vadd.f32 %v820_v36, %v581_v56  ;;  %v937_v7 = vpop.f32.mrb[18].mxu0  ;;  %v1020_v13 = vpop.f32.mrb[18].mxu1 }
 0x17c   :  { %v1060_v57 = vmul.f32 %v14136_v51, %v937_v7  ;;  %v1062_v14 = vmul.f32 %v14139_v52, %v1020_v13  ;;  %v939_v15 = vpop.f32.mrb[19].mxu0  ;;  %v1022_v16 = vpop.f32.mrb[19].mxu1 }
 0x17d   :  { %v1061_v17 = vmul.f32 %v14144_v37, %v939_v15  ;;  %v1063_v60 = vmul.f32 %v14147_v40, %v1022_v16 }
 0x17e   :  { %v1072_v61 = vadd.f32 %v1060_v57, %v821_v18  ;;  %v1074_v26 = vadd.f32 %v1062_v14, %v823_v23 }
 0x17f   :  { %v943_v27 = vpop.f32.mrb[20].mxu0  ;;  %v1026_v28 = vpop.f32.mrb[20].mxu1  ;;  %v1073_v10 = vadd.f32 %v1061_v17, %v822_v24  ;;  %v1075_v11 = vadd.f32 %v1063_v60, %v824_v25 }
 0x180   :  { %v1064_v12 = vmul.f32 %v14136_v51, %v943_v27  ;;  %v1066_v56 = vmul.f32 %v14139_v52, %v1026_v28  ;;  %v945_v29 = vpop.f32.mrb[21].mxu0  ;;  %v1028_v30 = vpop.f32.mrb[21].mxu1 }
 0x181   :  { %v1065_v31 = vmul.f32 %v14144_v37, %v945_v29  ;;  %v1067_v32 = vmul.f32 %v14147_v40, %v1028_v30 }
 0x182   :  { %v1076_v33 = vadd.f32 %v1064_v12, %v825_v19  ;;  %v1078_v34 = vadd.f32 %v1066_v56, %v827_v20 }
 0x183   :  { %v949_v35 = vpop.f32.mrb[22].mxu0  ;;  %v1032_v42 = vpop.f32.mrb[22].mxu1  ;;  %v1077_v18 = vadd.f32 %v1065_v31, %v826_v21  ;;  %v1079_v23 = vadd.f32 %v1067_v32, %v828_v22 }
 0x184   :  { %v1068_v43 = vmul.f32 %v14136_v51, %v949_v35  ;;  %v1070_v24 = vmul.f32 %v14139_v52, %v1032_v42  ;;  %v951_v25 = vpop.f32.mrb[23].mxu0  ;;  %v1034_v46 = vpop.f32.mrb[23].mxu1 }
 0x185   :  { %v1069_v47 = vmul.f32 %v14144_v37, %v951_v25  ;;  %v1071_v48 = vmul.f32 %v14147_v40, %v1034_v46 }
 0x186   :  { %v1080_v8 = vadd.f32 %v1068_v43, %v829_v41  ;;  %v1082_v36 = vadd.f32 %v1070_v24, %v831_v55  ;;  %v12926_v41 = vld [vmem:[%s16176_s7 + $0x14] sm:$0xf] }
 0x187   :  { %v1171_v7 = vpop.f32.mrb[24].mxu0  ;;  %v1254_v13 = vpop.f32.mrb[24].mxu1  ;;  %v1081_v19 = vadd.f32 %v1069_v47, %v830_v5  ;;  %v1083_v20 = vadd.f32 %v1071_v48, %v832_v6  ;;  %v14174_v35 = vrot.slane %v12926_v41, %v14054_v54 }
 0x188   :  { %v1271_v57 = vadd.f32 %v1171_v7, %v1072_v61  ;;  %v1273_v14 = vadd.f32 %v1254_v13, %v1074_v26  ;;  %v1173_v21 = vpop.f32.mrb[25].mxu0  ;;  %v1256_v22 = vpop.f32.mrb[25].mxu1 }
 0x189   :  { %v1272_v15 = vadd.f32 %v1173_v21, %v1073_v10  ;;  %v1274_v16 = vadd.f32 %v1256_v22, %v1075_v11  ;;  %v14165_v10 = vrot.slane %v12926_v41, %v14045_v49  ;;  %v14168_v11 = vrot.slane %v12926_v41, %v14047_v50 }
 0x18b   :  { %v1177_v17 = vpop.f32.mrb[26].mxu0  ;;  %v1260_v60 = vpop.f32.mrb[26].mxu1 }
 0x18c   :  { %v1275_v27 = vadd.f32 %v1177_v17, %v1076_v33  ;;  %v1277_v28 = vadd.f32 %v1260_v60, %v1078_v34  ;;  %v1179_v12 = vpop.f32.mrb[27].mxu0  ;;  %v1262_v56 = vpop.f32.mrb[27].mxu1  ;;  %v14171_v34 = vrot.slane %v12926_v41, %v14052_v53 }
 0x18d   :  { %v1276_v29 = vadd.f32 %v1179_v12, %v1077_v18  ;;  %v1278_v30 = vadd.f32 %v1262_v56, %v1079_v23  ;;  %v12940_v56 = vld [vmem:[%s16176_s7 + $0x18] sm:$0xf] }
 0x18f   :  { %v1183_v55 = vpop.f32.mrb[28].mxu0  ;;  %v1266_v5 = vpop.f32.mrb[28].mxu1 }
 0x190   :  { %v1279_v6 = vadd.f32 %v1183_v55, %v1080_v8  ;;  %v1281_v61 = vadd.f32 %v1266_v5, %v1082_v36  ;;  %v1185_v26 = vpop.f32.mrb[29].mxu0  ;;  %v1268_v31 = vpop.f32.mrb[29].mxu1 }
 0x191   :  { %v1280_v32 = vadd.f32 %v1185_v26, %v1081_v19  ;;  %v1282_v33 = vadd.f32 %v1268_v31, %v1083_v20 }
 0x193   :  { %v1387_v42 = vpop.f32.mrb[30].mxu0  ;;  %v1470_v18 = vpop.f32.mrb[30].mxu1 }
 0x194   :  { %v1510_v23 = vmul.f32 %v14165_v10, %v1387_v42  ;;  %v1512_v43 = vmul.f32 %v14168_v11, %v1470_v18  ;;  %v1389_v24 = vpop.f32.mrb[31].mxu0  ;;  %v1472_v25 = vpop.f32.mrb[31].mxu1  ;;  %v14190_v18 = vrot.slane %v12940_v56, %v14045_v49 }
 0x195   :  { %v1511_v46 = vmul.f32 %v14171_v34, %v1389_v24  ;;  %v1513_v47 = vmul.f32 %v14174_v35, %v1472_v25 }
 0x196   :  { %v1522_v48 = vadd.f32 %v1510_v23, %v1271_v57  ;;  %v1524_v8 = vadd.f32 %v1512_v43, %v1273_v14  ;;  %v14193_v23 = vrot.slane %v12940_v56, %v14047_v50 }
 0x197   :  { %v1523_v36 = vadd.f32 %v1511_v46, %v1272_v15  ;;  %v1525_v7 = vadd.f32 %v1513_v47, %v1274_v16  ;;  %v1393_v13 = vpop.f32.mrb[32].mxu0  ;;  %v1476_v19 = vpop.f32.mrb[32].mxu1 }
 0x198   :  { %v1514_v20 = vmul.f32 %v14165_v10, %v1393_v13  ;;  %v1516_v21 = vmul.f32 %v14168_v11, %v1476_v19  ;;  %v1395_v22 = vpop.f32.mrb[33].mxu0  ;;  %v1478_v17 = vpop.f32.mrb[33].mxu1 }
 0x199   :  { %v1515_v60 = vmul.f32 %v14171_v34, %v1395_v22  ;;  %v1517_v12 = vmul.f32 %v14174_v35, %v1478_v17 }
 0x19a   :  { %v1526_v57 = vadd.f32 %v1514_v20, %v1275_v27  ;;  %v1528_v14 = vadd.f32 %v1516_v21, %v1277_v28  ;;  %v14198_v28 = vrot.slane %v12940_v56, %v14052_v53 }
 0x19b   :  { %v1527_v15 = vadd.f32 %v1515_v60, %v1276_v29  ;;  %v1529_v16 = vadd.f32 %v1517_v12, %v1278_v30  ;;  %v1399_v41 = vpop.f32.mrb[34].mxu0  ;;  %v1482_v55 = vpop.f32.mrb[34].mxu1  ;;  %v14201_v29 = vrot.slane %v12940_v56, %v14054_v54 }
 0x19c   :  { %v1518_v5 = vmul.f32 %v14165_v10, %v1399_v41  ;;  %v1520_v26 = vmul.f32 %v14168_v11, %v1482_v55  ;;  %v1401_v31 = vpop.f32.mrb[35].mxu0  ;;  %v1484_v42 = vpop.f32.mrb[35].mxu1 }
 0x19d   :  { %v1519_v43 = vmul.f32 %v14171_v34, %v1401_v31  ;;  %v1521_v27 = vmul.f32 %v14174_v35, %v1484_v42  ;;  %16186 = vst [vmem:[#allocation12_spill] sm:$0xff] %v14201_v29 }
 0x19e   :  { %v1530_v30 = vadd.f32 %v1518_v5, %v1279_v6  ;;  %v1532_v24 = vadd.f32 %v1520_v26, %v1281_v61 }
 0x19f   :  { %v1531_v25 = vadd.f32 %v1519_v43, %v1280_v32  ;;  %v1533_v46 = vadd.f32 %v1521_v27, %v1282_v33  ;;  %v1638_v47 = vpop.f32.mrb[36].mxu0  ;;  %v1721_v13 = vpop.f32.mrb[36].mxu1  ;;  %v12954_v43 = vld [vmem:[%s16176_s7 + $0x1c] sm:$0xf] }
 0x1a0   :  { %v1761_v19 = vmul.f32 %v14190_v18, %v1638_v47  ;;  %v1763_v20 = vmul.f32 %v14193_v23, %v1721_v13  ;;  %v1640_v21 = vpop.f32.mrb[37].mxu0  ;;  %v1723_v22 = vpop.f32.mrb[37].mxu1 }
 0x1a1   :  { %v1762_v17 = vmul.f32 %v14198_v28, %v1640_v21  ;;  %v1764_v60 = vmul.f32 %v14201_v29, %v1723_v22  ;;  %v14217_v22 = vrot.slane %v12954_v43, %v14045_v49 }
 0x1a2   :  { %v1773_v12 = vadd.f32 %v1761_v19, %v1522_v48  ;;  %v1775_v41 = vadd.f32 %v1763_v20, %v1524_v8 }
 0x1a3   :  { %v1774_v56 = vadd.f32 %v1762_v17, %v1523_v36  ;;  %v1776_v55 = vadd.f32 %v1764_v60, %v1525_v7  ;;  %v1644_v6 = vpop.f32.mrb[38].mxu0  ;;  %v1727_v61 = vpop.f32.mrb[38].mxu1  ;;  %v14220_v17 = vrot.slane %v12954_v43, %v14047_v50 }
 0x1a4   :  { %v1765_v32 = vmul.f32 %v14190_v18, %v1644_v6  ;;  %v1767_v33 = vmul.f32 %v14193_v23, %v1727_v61  ;;  %v1646_v5 = vpop.f32.mrb[39].mxu0  ;;  %v1729_v26 = vpop.f32.mrb[39].mxu1 }
 0x1a5   :  { %v1766_v31 = vmul.f32 %v14198_v28, %v1646_v5  ;;  %v1768_v42 = vmul.f32 %v14201_v29, %v1729_v26 }
 0x1a6   :  { %v1777_v48 = vadd.f32 %v1765_v32, %v1526_v57  ;;  %v1779_v8 = vadd.f32 %v1767_v33, %v1528_v14  ;;  %v14225_v14 = vrot.slane %v12954_v43, %v14052_v53 }
 0x1a7   :  { %v1778_v36 = vadd.f32 %v1766_v31, %v1527_v15  ;;  %v1780_v7 = vadd.f32 %v1768_v42, %v1529_v16  ;;  %v1650_v27 = vpop.f32.mrb[40].mxu0  ;;  %v1733_v47 = vpop.f32.mrb[40].mxu1  ;;  %v14228_v15 = vrot.slane %v12954_v43, %v14054_v54 }
 0x1a8   :  { %v1769_v13 = vmul.f32 %v14190_v18, %v1650_v27  ;;  %v1771_v19 = vmul.f32 %v14193_v23, %v1733_v47  ;;  %v1652_v20 = vpop.f32.mrb[41].mxu0  ;;  %v1735_v21 = vpop.f32.mrb[41].mxu1 }
 0x1a9   :  { %v1770_v60 = vmul.f32 %v14198_v28, %v1652_v20  ;;  %v1772_v57 = vmul.f32 %v14201_v29, %v1735_v21 }
 0x1aa   :  { %v1781_v16 = vadd.f32 %v1769_v13, %v1530_v30  ;;  %v1783_v6 = vadd.f32 %v1771_v19, %v1532_v24 }
 0x1ab   :  { %v1782_v61 = vadd.f32 %v1770_v60, %v1531_v25  ;;  %v1784_v32 = vadd.f32 %v1772_v57, %v1533_v46  ;;  %v1889_v33 = vpop.f32.mrb[42].mxu0  ;;  %v1972_v5 = vpop.f32.mrb[42].mxu1 }
 0x1ac   :  { %v2012_v26 = vmul.f32 %v14217_v22, %v1889_v33  ;;  %v2014_v31 = vmul.f32 %v14220_v17, %v1972_v5  ;;  %v1891_v42 = vpop.f32.mrb[43].mxu0  ;;  %v1974_v27 = vpop.f32.mrb[43].mxu1  ;;  %v12968_v33 = vld [vmem:[%s16176_s7 + $0x20] sm:$0xf] }
 0x1ad   :  { %v2013_v47 = vmul.f32 %v14225_v14, %v1891_v42  ;;  %v2015_v20 = vmul.f32 %v14228_v15, %v1974_v27 }
 0x1ae   :  { %v2024_v21 = vadd.f32 %v2012_v26, %v1773_v12  ;;  %v2026_v2 = vadd.f32 %v2014_v31, %v1775_v41 }
 0x1af   :  { %v2025_v43 = vadd.f32 %v2013_v47, %v1774_v56  ;;  %v2027_v29 = vadd.f32 %v2015_v20, %v1776_v55  ;;  %v1895_v30 = vpop.f32.mrb[44].mxu0  ;;  %v1978_v24 = vpop.f32.mrb[44].mxu1  ;;  %v14244_v20 = vrot.slane %v12968_v33, %v14045_v49 }
 0x1b0   :  { %v2016_v25 = vmul.f32 %v14217_v22, %v1895_v30  ;;  %v2018_v46 = vmul.f32 %v14220_v17, %v1978_v24  ;;  %v1897_v13 = vpop.f32.mrb[45].mxu0  ;;  %v1980_v19 = vpop.f32.mrb[45].mxu1  ;;  %v14247_v30 = vrot.slane %v12968_v33, %v14047_v50 }
 0x1b1   :  { %v2017_v60 = vmul.f32 %v14225_v14, %v1897_v13  ;;  %v2019_v57 = vmul.f32 %v14228_v15, %v1980_v19 }
 0x1b2   :  { %v2028_v12 = vadd.f32 %v2016_v25, %v1777_v48  ;;  %v2030_v41 = vadd.f32 %v2018_v46, %v1779_v8  ;;  %v14252_v8 = vrot.slane %v12968_v33, %v14052_v53 }
 0x1b3   :  { %v2029_v56 = vadd.f32 %v2017_v60, %v1778_v36  ;;  %v2031_v55 = vadd.f32 %v2019_v57, %v1780_v7  ;;  %v1901_v5 = vpop.f32.mrb[46].mxu0  ;;  %v1984_v26 = vpop.f32.mrb[46].mxu1  ;;  %v14255_v36 = vrot.slane %v12968_v33, %v14054_v54 }
 0x1b4   :  { %v2020_v31 = vmul.f32 %v14217_v22, %v1901_v5  ;;  %v2022_v42 = vmul.f32 %v14220_v17, %v1984_v26  ;;  %v1903_v27 = vpop.f32.mrb[47].mxu0  ;;  %v1986_v47 = vpop.f32.mrb[47].mxu1 }
 0x1b5   :  { %v2021_v24 = vmul.f32 %v14225_v14, %v1903_v27  ;;  %v2023_v48 = vmul.f32 %v14228_v15, %v1986_v47  ;;  %16187 = vst [vmem:[#allocation13_spill] sm:$0xff] %v14255_v36 }
 0x1b6   :  { %v2032_v7 = vadd.f32 %v2020_v31, %v1781_v16  ;;  %v2034_v25 = vadd.f32 %v2022_v42, %v1783_v6 }
 0x1b7   :  { %v2033_v46 = vadd.f32 %v2021_v24, %v1782_v61  ;;  %v2035_v13 = vadd.f32 %v2023_v48, %v1784_v32  ;;  %v2140_v19 = vpop.f32.mrb[48].mxu0  ;;  %v2223_v49 = vpop.f32.mrb[48].mxu1 }
 0x1b8   :  { %v2263_v60 = vmul.f32 %v14244_v20, %v2140_v19  ;;  %v2265_v50 = vmul.f32 %v14247_v30, %v2223_v49  ;;  %v2142_v57 = vpop.f32.mrb[49].mxu0  ;;  %v2225_v5 = vpop.f32.mrb[49].mxu1 }
 0x1b9   :  { %v2264_v26 = vmul.f32 %v14252_v8, %v2142_v57  ;;  %v2266_v53 = vmul.f32 %v14255_v36, %v2225_v5 }
 0x1ba   :  { %v14261_v27 = vadd.f32 %v2263_v60, %v2024_v21  ;;  %v14263_v54 = vadd.f32 %v2265_v50, %v2026_v2 }
 0x1bb   :  { %v14265_v16 = vadd.f32 %v2264_v26, %v2025_v43  ;;  %v14267_v6 = vadd.f32 %v2266_v53, %v2027_v29  ;;  %v2146_v61 = vpop.f32.mrb[50].mxu0  ;;  %v2229_v32 = vpop.f32.mrb[50].mxu1 }
 0x1bc   :  { %16188 = vst [vmem:[#allocation14_spill] sm:$0xff] %v14261_v27  ;;  %16189 = vst [vmem:[#allocation15_spill] sm:$0xff] %v14263_v54  ;;  %v2267_v33 = vmul.f32 %v14244_v20, %v2146_v61  ;;  %v2269_v31 = vmul.f32 %v14247_v30, %v2229_v32  ;;  %v2148_v42 = vpop.f32.mrb[51].mxu0  ;;  %v2231_v47 = vpop.f32.mrb[51].mxu1 }
 0x1bd   :  { %16190 = vst [vmem:[#allocation16_spill] sm:$0xff] %v14265_v16  ;;  %16191 = vst [vmem:[#allocation17_spill] sm:$0xff] %v14267_v6  ;;  %v2268_v24 = vmul.f32 %v14252_v8, %v2148_v42  ;;  %v2270_v48 = vmul.f32 %v14255_v36, %v2231_v47 }
 0x1be   :  { %v14273_v21 = vadd.f32 %v2267_v33, %v2028_v12  ;;  %v14275_v2 = vadd.f32 %v2269_v31, %v2030_v41 }
 0x1bf   :  { %v14277_v43 = vadd.f32 %v2268_v24, %v2029_v56  ;;  %v14279_v29 = vadd.f32 %v2270_v48, %v2031_v55  ;;  %v2152_v19 = vpop.f32.mrb[52].mxu0  ;;  %v2235_v49 = vpop.f32.mrb[52].mxu1 }
 0x1c0   :  { %16192 = vst [vmem:[#allocation18_spill] sm:$0xff] %v14275_v2  ;;  %v2271_v60 = vmul.f32 %v14244_v20, %v2152_v19  ;;  %v2273_v50 = vmul.f32 %v14247_v30, %v2235_v49  ;;  %v2154_v57 = vpop.f32.mrb[53].mxu0  ;;  %v2237_v5 = vpop.f32.mrb[53].mxu1  ;;  %v2493_v49 = vld [vmem:[%s16194_s29] sm:$0xf]  ;;  %s16198_s29 = smov 111  }
 0x1c1   :  { %16193 = vst [vmem:[#allocation19_spill] sm:$0xff] %v14279_v29  ;;  %v2272_v26 = vmul.f32 %v14252_v8, %v2154_v57  ;;  %v2274_v53 = vmul.f32 %v14255_v36, %v2237_v5  ;;  %v2303_v56 = vpop.permute.xlu0 %2302 }
 0x1c2   :  { %v2283_v12 = vadd.f32 %v2271_v60, %v2032_v7  ;;  %v2285_v61 = vadd.f32 %v2273_v50, %v2034_v25 }
 0x1c3   :  { %v2284_v41 = vadd.f32 %v2272_v26, %v2033_v46  ;;  %v2286_v32 = vadd.f32 %v2274_v53, %v2035_v13  ;;  %v2663_v26 = vld [vmem:[%s16195_s6] sm:$0xf]  ;;  %v16196_v53 = vmov 0.0  }
 0x1c4   :  { %v14285_v33 = vadd.f32 %v2303_v56, %v2283_v12  ;;  %v14287_v55 = vadd.f32 %v2303_v56, %v2285_v61  ;;  %v2827_v12 = vld [vmem:[%s16197_s10] sm:$0xf]  ;;  %v2668_v61 = vpop.permute.xlu1 %2667 }
 0x1c5   :  { %v14289_v31 = vadd.f32 %v2303_v56, %v2284_v41  ;;  %v14291_v42 = vadd.f32 %v2303_v56, %v2286_v32 }
 0x1c6   :  { %v2489_v47 = vmax.f32 %v14285_v33, 0.0  ;;  %v2491_v24 = vmax.f32 %v14287_v55, 0.0 }
 0x1c7   :  { %v2490_v48 = vmax.f32 %v14289_v31, 0.0  ;;  %v2492_v7 = vmax.f32 %v14291_v42, 0.0 }
 0x1c8   :  { %v2504_v13 = vrot.slane %v2489_v47, 4  ;;  %v2506_v19 = vrot.slane %v2491_v24, 4  ;;  %v2670_v57 = vrot.slane %v2489_v47, 6  ;;  %v2672_v5 = vrot.slane %v2491_v24, 6  ;;  %v2498_v41 = vpop.permute.xlu1 %2497 }
 0x1c9   :  { %v2505_v25 = vrot.slane %v2490_v48, 4  ;;  %v2507_v46 = vrot.slane %v2492_v7, 4  ;;  %v2671_v60 = vrot.slane %v2490_v48, 6  ;;  %v2673_v50 = vrot.slane %v2492_v7, 6 }
 0x1cb   :  { %12969 = vmatprep.subr.msk.mxu0 %vm2512_vm10, %v2505_v25  ;;  %12972 = vmatprep.subr.msk.mxu1 %vm2512_vm10, %v2507_v46 }
 0x1cc   :  { %12970 = vmatpush1.msk.msra.mxu0 %vm2512_vm10, %v2504_v13  ;;  %12973 = vmatpush1.msk.msra.mxu1 %vm2512_vm10, %v2506_v19 }
 0x1cd   :  { %12971 = vmatmul.mubr.msk.f32.vlgmr.msra.gmra.mrb[54].mxu0 %vm2508_vm11, %v2493_v49  ;;  %12974 = vmatmul.mubr.msk.f32.vlgmr.msra.gmra.mrb[54].mxu1 %vm2508_vm11, %v2493_v49 }
 0x1ce   :  { %12975 = vmatprep.subr.msk.mxu0 %vm2512_vm10, %v2671_v60  ;;  %12978 = vmatprep.subr.msk.mxu1 %vm2512_vm10, %v2673_v50 }
 0x1cf   :  { %12976 = vmatpush1.msk.msra.mxu0 %vm2512_vm10, %v2670_v57  ;;  %12979 = vmatpush1.msk.msra.mxu1 %vm2512_vm10, %v2672_v5 }
 0x1d0   :  { %12981 = vmatprep.subr.msk.mxu0 %vm2512_vm10, %v2671_v60  ;;  %12984 = vmatprep.subr.msk.mxu1 %vm2512_vm10, %v2673_v50  ;;  %v2832_v50 = vpop.permute.xlu0 %2831 }
 0x1d1   :  { %2749 = vmatprep.mubr.f32.mxu0 %v16196_v53  ;;  %2820 = vmatprep.mubr.f32.mxu1 %v16196_v53 }
 0x1d2   :  { %12977 = vmatmul.mubr.msk.f32.vlgmr.msra.gmra.mrb[56].mxu0 %vm2508_vm11, %v2663_v26  ;;  %12980 = vmatmul.mubr.msk.f32.vlgmr.msra.gmra.mrb[56].mxu1 %vm2508_vm11, %v2663_v26 }
 0x1d3   :  { %12982 = vmatpush1.msk.msra.mxu0 %vm2512_vm10, %v2670_v57  ;;  %12985 = vmatpush1.msk.msra.mxu1 %vm2512_vm10, %v2672_v5 }
 0x1d4   :  { %2901 = vmatprep.mubr.f32.mxu0 %v16196_v53  ;;  %2972 = vmatprep.mubr.f32.mxu1 %v16196_v53 }
 0x1d6   :  { %12983 = vmatmul.mubr.msk.f32.vlgmr.msra.gmra.mrb[58].mxu0 %vm2508_vm11, %v2827_v12  ;;  %12986 = vmatmul.mubr.msk.f32.vlgmr.msra.gmra.mrb[58].mxu1 %vm2508_vm11, %v2827_v12 }
 0x2a0   :  { %v2587_v32 = vpop.f32.mrb[54].mxu0  ;;  %v2658_v56 = vpop.f32.mrb[54].mxu1 }
 0x2a1   :  { %v2589_v47 = vpop.f32.mrb[55].mxu0  ;;  %v2660_v24 = vpop.f32.mrb[55].mxu1 }
 0x2a2   :  { %v2590_v48 = vadd.f32 %v2589_v47, %v2498_v41  ;;  %v2661_v7 = vadd.f32 %v2660_v24, %v2498_v41 }
 0x2a4   :  { %3043 = vmatprep.mubr.f32.mxu0 %v2590_v48  ;;  %3114 = vmatprep.mubr.f32.mxu1 %v2661_v7  ;;  %v2588_v48 = vadd.f32 %v2587_v32, %v2498_v41  ;;  %v2659_v7 = vadd.f32 %v2658_v56, %v2498_v41 }
 0x2a5   :  { %v2751_v25 = vpop.f32.mrb[56].mxu0  ;;  %v2822_v46 = vpop.f32.mrb[56].mxu1 }
 0x2a6   :  { %v2753_v13 = vpop.f32.mrb[57].mxu0  ;;  %v2824_v19 = vpop.f32.mrb[57].mxu1  ;;  %v2752_v57 = vadd.f32 %v2751_v25, %v2668_v61  ;;  %v2823_v5 = vadd.f32 %v2822_v46, %v2668_v61 }
 0x2a7   :  { %v2754_v49 = vadd.f32 %v2753_v13, %v2668_v61  ;;  %v2825_v60 = vadd.f32 %v2824_v19, %v2668_v61 }
 0x2a9   :  { %v2903_v26 = vpop.f32.mrb[58].mxu0  ;;  %v2974_v12 = vpop.f32.mrb[58].mxu1  ;;  %2979 = vmatprep.subr.mxu0 %v2754_v49  ;;  %3050 = vmatprep.subr.mxu1 %v2825_v60 }
 0x2aa   :  { %v2905_v29 = vpop.f32.mrb[59].mxu0  ;;  %v2976_v2 = vpop.f32.mrb[59].mxu1  ;;  %2980 = vmatpush1.xpose.msra.mxu0 %v2752_v57  ;;  %3051 = vmatpush1.xpose.msra.mxu1 %v2823_v5  ;;  %v2904_v6 = vadd.f32 %v2903_v26, %v2832_v50  ;;  %v2975_v54 = vadd.f32 %v2974_v12, %v2832_v50 }
 0x2ab   :  { %v2906_v47 = vadd.f32 %v2905_v29, %v2832_v50  ;;  %v2977_v24 = vadd.f32 %v2976_v2, %v2832_v50 }
 0x2ad   :  { %3044 = vmatmul.mubr.f32.vlgmr.msra.gmra.mrb[60].mxu0 %v2588_v48  ;;  %3115 = vmatmul.mubr.f32.vlgmr.msra.gmra.mrb[60].mxu1 %v2659_v7  ;;  %v2336_v48 = vsel %vm118_vm1, %v14285_v33, 0.0  ;;  %v2337_v7 = vsel %vm118_vm1, %v14289_v31, 0.0 }
 0x2ae   :  { %12987 = vmatprep.subr.msk.mxu0 %vm118_vm1, %v2906_v47  ;;  %12990 = vmatprep.subr.msk.mxu1 %vm118_vm1, %v2977_v24 }
 0x2af   :  { %12988 = vmatpush1.msk.msra.mxu0 %vm118_vm1, %v2904_v6  ;;  %12991 = vmatpush1.msk.msra.mxu1 %vm118_vm1, %v2975_v54 }
 0x2b0   :  { %3204 = vmatprep.mubr.f32.mxu0 %v16196_v53  ;;  %3285 = vmatprep.mubr.f32.mxu1 %v16196_v53 }
 0x380   :  { %v3045_v29 = vpop.f32.mrb[60].mxu0  ;;  %v3116_v2 = vpop.f32.mrb[60].mxu1 }
 0x381   :  { %v3049_v61 = vmul.f32 0.06250001, %v3045_v29  ;;  %v3120_v41 = vmul.f32 0.06250001, %v3116_v2  ;;  %v3047_v32 = vpop.f32.mrb[61].mxu0  ;;  %v3118_v56 = vpop.f32.mrb[61].mxu1  ;;  %v2338_v29 = vadd.f32 %v2337_v7, %v2336_v48 }
 0x382   :  { %v2339_v2 = vsel %vm118_vm1, %v14287_v55, 0.0  ;;  %v2320_v56 = vld [vmem:[%s16123_s5 + $0x8] sm:$0xff] }
 0x383   :  { %v3121_v25 = vmax.f32 %v3049_v61, %v3120_v41 }
 0x385   :  { %v3122_v46 = vsub.f32 %v3049_v61, %v3121_v25  ;;  %v3125_v13 = vsub.f32 %v3120_v41, %v3121_v25  ;;  %v2340_v61 = vadd.f32 %v2339_v2, %v2338_v29  ;;  %v2341_v41 = vsel %vm118_vm1, %v14291_v42, 0.0 }
 0x387   :  { %v3123_v19 = vmul.f32 1.442695, %v3122_v46  ;;  %v3126_v49 = vmul.f32 1.442695, %v3125_v13  ;;  %v2342_v32 = vadd.f32 %v2341_v41, %v2340_v61  ;;  %v4882_v13 = vld [vmem:[%s16124_s13] sm:$0xf] }
 0x389   :  { %13488 = vpow2.f32 %v3123_v19 }
 0x38a   :  { %13490 = vpow2.f32 %v3126_v49 }
 0x393   :  { %v13489_v6 = vpop.eup %13488 }
 0x394   :  { %v13491_v60 = vpop.eup %13490 }
 0x395   :  { %v3128_v54 = vadd.f32 %v13491_v60, %v13489_v6 }
 0x397   :  { %13492 = vrcp.f32 %v3128_v54 }
 0x3a1   :  { %v13493_v50 = vpop.eup %13492 }
 0x3a2   :  { %v3130_v57 = vmul.f32 %v13493_v50, %v13489_v6  ;;  %v3211_v5 = vmul.f32 %v13493_v50, %v13491_v60 }
 0x3a4   :  { %12989 = vmatmul.mubr.msk.f32.vlgmr.msra.gmra.mrb[62].mxu0 %vm108_vm2, %v3130_v57  ;;  %12992 = vmatmul.mubr.msk.f32.vlgmr.msra.gmra.mrb[62].mxu1 %vm108_vm2, %v3211_v5 }
 0x3a5   :  { %3384 = vmatprep.mubr.f32.mxu0 %v16196_v53  ;;  %3455 = vmatprep.mubr.f32.mxu1 %v16196_v53 }
 0x477   :  { %v14338_v26 = vpop.f32.mrb[62].mxu0  ;;  %v14340_v12 = vpop.f32.mrb[62].mxu1 }
 0x478   :  { %3297 = vrot.lane.b32.xlu0 %v14340_v12, %s13505_s2  ;;  %v14344_v47 = vpop.f32.mrb[63].mxu1  ;;  %3293 = vrot.lane.b32.xlu1 %v14338_v26, %s13505_s2  ;;  %v14348_v24 = vpop.f32.mrb[63].mxu0 }
 0x47c   :  { %3472 = vrot.lane.b32.xlu0 %v14340_v12, %s13506_s26  ;;  %3468 = vrot.lane.b32.xlu1 %v14338_v26, %s13506_s26 }
 0x480   :  { %3651 = vrot.lane.b32.xlu0 %v14340_v12, %s13507_s3  ;;  %3647 = vrot.lane.b32.xlu1 %v14338_v26, %s13507_s3 }
 0x484   :  { %3830 = vrot.lane.b32.xlu0 %v14340_v12, %s13508_s8  ;;  %3826 = vrot.lane.b32.xlu1 %v14338_v26, %s13508_s8 }
 0x488   :  { %4172 = vrot.lane.b32.xlu0 %v14340_v12, %s13509_s27  ;;  %4168 = vrot.lane.b32.xlu1 %v14338_v26, %s13509_s27 }
 0x48c   :  { %4351 = vrot.lane.b32.xlu0 %v14340_v12, %s13510_s9  ;;  %4347 = vrot.lane.b32.xlu1 %v14338_v26, %s13510_s9 }
 0x490   :  { %3299 = vrot.lane.b32.xlu1 %v14344_v47, %s13505_s2  ;;  %3295 = vrot.lane.b32.xlu0 %v14348_v24, %s13505_s2 }
 0x494   :  { %3474 = vrot.lane.b32.xlu1 %v14344_v47, %s13506_s26  ;;  %3470 = vrot.lane.b32.xlu0 %v14348_v24, %s13506_s26 }
 0x498   :  { %3653 = vrot.lane.b32.xlu1 %v14344_v47, %s13507_s3  ;;  %3649 = vrot.lane.b32.xlu0 %v14348_v24, %s13507_s3 }
 0x49c   :  { %4526 = vrot.lane.b32.xlu1 %v14338_v26, %s13511_s28  ;;  %3828 = vrot.lane.b32.xlu0 %v14348_v24, %s13508_s8 }
 0x4a0   :  { %3832 = vrot.lane.b32.xlu1 %v14344_v47, %s13508_s8  ;;  %4530 = vrot.lane.b32.xlu0 %v14340_v12, %s13511_s28 }
 0x4a4   :  { %4170 = vrot.lane.b32.xlu1 %v14348_v24, %s13509_s27  ;;  %4709 = vrot.lane.b32.xlu0 %v14340_v12, %s16198_s29 }
 0x4a8   :  { %4349 = vrot.lane.b32.xlu1 %v14348_v24, %s13510_s9  ;;  %4174 = vrot.lane.b32.xlu0 %v14344_v47, %s13509_s27 }
 0x4ac   :  { %4528 = vrot.lane.b32.xlu1 %v14348_v24, %s13511_s28  ;;  %4353 = vrot.lane.b32.xlu0 %v14344_v47, %s13510_s9 }
 0x4b0   :  { %4707 = vrot.lane.b32.xlu1 %v14348_v24, %s16198_s29  ;;  %4532 = vrot.lane.b32.xlu0 %v14344_v47, %s13511_s28 }
 0x4b4   :  { %4705 = vrot.lane.b32.xlu1 %v14338_v26, %s16198_s29  ;;  %4711 = vrot.lane.b32.xlu0 %v14344_v47, %s16198_s29 }
 0x4d8   :  { %2343 = vadd.xlane.f32.xlu1 %v2342_v32 }
 0x4e9   :  { %2449 = vperm.xlu1 %13485, %v2320_v56  }
 0x4ea   :  { %v3298_v25 = vpop.permute.xlu0 %3297  ;;  %v3294_v46 = vpop.permute.xlu1 %3293 }
 0x4ed   :  { %4920 = vperm.xlu1 %13485, %v4882_v13   ;;  %v3292_v13 = vld [vmem:[%s16125_s12] sm:$0xf] }
 0x4ee   :  { %v3473_v19 = vpop.permute.xlu0 %3472  ;;  %v3469_v49 = vpop.permute.xlu1 %3468 }
 0x4f2   :  { %v3652_v6 = vpop.permute.xlu0 %3651  ;;  %v3648_v60 = vpop.permute.xlu1 %3647 }
 0x4f6   :  { %v3831_v54 = vpop.permute.xlu0 %3830  ;;  %v3827_v50 = vpop.permute.xlu1 %3826 }
 0x4fa   :  { %v14424_v57 = vpop.permute.xlu0 %4172  ;;  %v14426_v5 = vpop.permute.xlu1 %4168 }
 0x4fe   :  { %v14428_v48 = vpop.permute.xlu0 %4351  ;;  %v14430_v7 = vpop.permute.xlu1 %4347 }
 0x502   :  { %v3300_v29 = vpop.permute.xlu1 %3299  ;;  %v3296_v2 = vpop.permute.xlu0 %3295 }
 0x503   :  { %v3304_v61 = vsel %vm103_vm0, %v3300_v29, %v3294_v46  ;;  %v3302_v41 = vsel %vm103_vm0, %v3296_v2, %v3298_v25  ;;  %v3303_v32 = vsel %vm103_vm0, %v3294_v46, %v3296_v2  ;;  %v3301_v56 = vsel %vm103_vm0, %v3298_v25, %v3300_v29 }
 0x504   :  { %12993 = vmatprep.subr.msk.mxu0 %vm118_vm1, %v3303_v32  ;;  %12996 = vmatprep.subr.msk.mxu1 %vm118_vm1, %v3301_v56  ;;  %v13006_v56 = vld [vmem:[%s16125_s12 + $0x8] sm:$0xf] }
 0x505   :  { %12994 = vmatpush1.msk.msra.mxu0 %vm118_vm1, %v3304_v61  ;;  %12997 = vmatpush1.msk.msra.mxu1 %vm118_vm1, %v3302_v41  ;;  %v12999_v61 = vld [vmem:[%s16125_s12 + $0x4] sm:$0xf] }
 0x506   :  { %v3475_v16 = vpop.permute.xlu1 %3474  ;;  %12995 = vmatmul.mubr.msk.f32.vlgmr.msra.gmra.mrb[64].mxu0 %vm108_vm2, %v3292_v13  ;;  %v3471_v27 = vpop.permute.xlu0 %3470  ;;  %12998 = vmatmul.mubr.msk.f32.vlgmr.msra.gmra.mrb[64].mxu1 %vm108_vm2, %v3292_v13 }
 0x507   :  { %v3479_v25 = vsel %vm343_vm3, %v3475_v16, %v3469_v49  ;;  %v3477_v46 = vsel %vm343_vm3, %v3471_v27, %v3473_v19  ;;  %v3478_v29 = vsel %vm343_vm3, %v3469_v49, %v3471_v27  ;;  %v3476_v2 = vsel %vm343_vm3, %v3473_v19, %v3475_v16  ;;  %3559 = vmatprep.mubr.f32.mxu0 %v16196_v53 }
 0x508   :  { %13000 = vmatprep.subr.msk.mxu0 %vm118_vm1, %v3478_v29  ;;  %13003 = vmatprep.subr.msk.mxu1 %vm118_vm1, %v3476_v2  ;;  %v13013_v29 = vld [vmem:[%s16125_s12 + $0xc] sm:$0xf] }
 0x509   :  { %13001 = vmatpush1.msk.msra.mxu0 %vm118_vm1, %v3479_v25  ;;  %13004 = vmatpush1.msk.msra.mxu1 %vm118_vm1, %v3477_v46 }
 0x50a   :  { %v3654_v41 = vpop.permute.xlu1 %3653  ;;  %13002 = vmatmul.mubr.msk.f32.vlgmr.msra.gmra.mrb[66].mxu0 %vm108_vm2, %v12999_v61  ;;  %v3650_v27 = vpop.permute.xlu0 %3649  ;;  %3630 = vmatprep.mubr.f32.mxu1 %v16196_v53 }
 0x50b   :  { %v3658_v16 = vsel %vm594_vm4, %v3654_v41, %v3648_v60  ;;  %v3656_v19 = vsel %vm594_vm4, %v3650_v27, %v3652_v6  ;;  %v3657_v49 = vsel %vm594_vm4, %v3648_v60, %v3650_v27  ;;  %v3655_v32 = vsel %vm594_vm4, %v3652_v6, %v3654_v41  ;;  %13005 = vmatmul.mubr.msk.f32.vlgmr.msra.gmra.mrb[66].mxu1 %vm108_vm2, %v12999_v61 }
 0x50c   :  { %13007 = vmatprep.subr.msk.mxu0 %vm118_vm1, %v3657_v49  ;;  %13010 = vmatprep.subr.msk.mxu1 %vm118_vm1, %v3655_v32 }
 0x50d   :  { %13008 = vmatpush1.msk.msra.mxu0 %vm118_vm1, %v3658_v16  ;;  %3738 = vmatprep.mubr.f32.mxu0 %v16196_v53  ;;  %v13020_v16 = vld [vmem:[%s16125_s12 + $0x10] sm:$0xf] }
 0x50e   :  { %13011 = vmatpush1.msk.msra.mxu1 %vm118_vm1, %v3656_v19  ;;  %v14484_v60 = vpop.permute.xlu1 %4526  ;;  %13009 = vmatmul.mubr.msk.f32.vlgmr.msra.gmra.mrb[68].mxu0 %vm108_vm2, %v13006_v56  ;;  %v3829_v6 = vpop.permute.xlu0 %3828 }
 0x50f   :  { %3809 = vmatprep.mubr.f32.mxu1 %v16196_v53  ;;  %v3836_v13 = vsel %vm845_vm5, %v3827_v50, %v3829_v6  ;;  %3917 = vmatprep.mubr.f32.mxu0 %v16196_v53  ;;  %v3835_v41 = vsel %vm845_vm5, %v3829_v6, %v3831_v54 }
 0x510   :  { %13014 = vmatprep.subr.msk.mxu0 %vm118_vm1, %v3836_v13  ;;  %13012 = vmatmul.mubr.msk.f32.vlgmr.msra.gmra.mrb[68].mxu1 %vm108_vm2, %v13006_v56 }
 0x511   :  { %3988 = vmatprep.mubr.f32.mxu1 %v16196_v53 }
 0x512   :  { %v3833_v25 = vpop.permute.xlu1 %3832  ;;  %v4531_v46 = vpop.permute.xlu0 %4530 }
 0x513   :  { %v3837_v2 = vsel %vm845_vm5, %v3833_v25, %v3827_v50  ;;  %v3834_v61 = vsel %vm845_vm5, %v3831_v54, %v3833_v25 }
 0x514   :  { %13015 = vmatpush1.msk.msra.mxu0 %vm118_vm1, %v3837_v2  ;;  %13017 = vmatprep.subr.msk.mxu1 %vm118_vm1, %v3834_v61 }
 0x515   :  { %13016 = vmatmul.mubr.msk.f32.vlgmr.msra.gmra.mrb[70].mxu0 %vm108_vm2, %v13013_v29  ;;  %13018 = vmatpush1.msk.msra.mxu1 %vm118_vm1, %v3835_v41 }
 0x516   :  { %13021 = vmatprep.subr.msk.mxu0 %vm118_vm1, %v14348_v24  ;;  %v4171_v27 = vpop.permute.xlu1 %4170  ;;  %13019 = vmatmul.mubr.msk.f32.vlgmr.msra.gmra.mrb[70].mxu1 %vm108_vm2, %v13013_v29  ;;  %v4710_v50 = vpop.permute.xlu0 %4709 }
 0x517   :  { %v4178_v54 = vsel %vm1295_vm6, %v14426_v5, %v4171_v27  ;;  %13022 = vmatpush1.msk.msra.mxu0 %vm118_vm1, %v14338_v26  ;;  %13024 = vmatprep.subr.msk.mxu1 %vm118_vm1, %v14344_v47  ;;  %v4177_v24 = vsel %vm1295_vm6, %v4171_v27, %v14424_v57  ;;  %v13027_v47 = vld [vmem:[%s16125_s12 + $0x14] sm:$0xf] }
 0x518   :  { %13025 = vmatpush1.msk.msra.mxu1 %vm118_vm1, %v14340_v12  ;;  %4084 = vmatprep.mubr.f32.mxu0 %v16196_v53 }
 0x519   :  { %13028 = vmatprep.subr.msk.mxu0 %vm118_vm1, %v4177_v24  ;;  %13023 = vmatmul.mubr.msk.f32.vlgmr.msra.gmra.mrb[72].mxu0 %vm108_vm2, %v13020_v16 }
 0x51a   :  { %4155 = vmatprep.mubr.f32.mxu1 %v16196_v53  ;;  %13029 = vmatpush1.msk.msra.mxu0 %vm118_vm1, %v4178_v54  ;;  %v4350_v26 = vpop.permute.xlu1 %4349  ;;  %v4175_v19 = vpop.permute.xlu0 %4174 }
 0x51b   :  { %v4357_v12 = vsel %vm1546_vm7, %v14430_v7, %v4350_v26  ;;  %13026 = vmatmul.mubr.msk.f32.vlgmr.msra.gmra.mrb[72].mxu1 %vm108_vm2, %v13020_v16  ;;  %v4176_v49 = vsel %vm1295_vm6, %v14424_v57, %v4175_v19  ;;  %4259 = vmatprep.mubr.f32.mxu0 %v16196_v53  ;;  %v4179_v32 = vsel %vm1295_vm6, %v4175_v19, %v14426_v5  ;;  %v13034_v5 = vld [vmem:[%s16125_s12 + $0x18] sm:$0xf] }
 0x51c   :  { %13031 = vmatprep.subr.msk.mxu1 %vm118_vm1, %v4179_v32  ;;  %v4356_v56 = vsel %vm1546_vm7, %v4350_v26, %v14428_v48  ;;  %4330 = vmatprep.mubr.f32.mxu1 %v16196_v53 }
 0x51d   :  { %13035 = vmatprep.subr.msk.mxu0 %vm118_vm1, %v4356_v56  ;;  %13030 = vmatmul.mubr.msk.f32.vlgmr.msra.gmra.mrb[74].mxu0 %vm108_vm2, %v13027_v47 }
 0x51e   :  { %13032 = vmatpush1.msk.msra.mxu1 %vm118_vm1, %v4176_v49  ;;  %13036 = vmatpush1.msk.msra.mxu0 %vm118_vm1, %v4357_v12  ;;  %v4529_v57 = vpop.permute.xlu1 %4528  ;;  %v4354_v6 = vpop.permute.xlu0 %4353 }
 0x51f   :  { %v4536_v13 = vsel %vm1797_vm8, %v14484_v60, %v4529_v57  ;;  %13033 = vmatmul.mubr.msk.f32.vlgmr.msra.gmra.mrb[74].mxu1 %vm108_vm2, %v13027_v47  ;;  %v4355_v25 = vsel %vm1546_vm7, %v14428_v48, %v4354_v6  ;;  %4438 = vmatprep.mubr.f32.mxu0 %v16196_v53  ;;  %v4358_v29 = vsel %vm1546_vm7, %v4354_v6, %v14430_v7  ;;  %v13041_v7 = vld [vmem:[%s16125_s12 + $0x1c] sm:$0xf] }
 0x520   :  { %13038 = vmatprep.subr.msk.mxu1 %vm118_vm1, %v4358_v29  ;;  %v4535_v2 = vsel %vm1797_vm8, %v4529_v57, %v4531_v46  ;;  %4509 = vmatprep.mubr.f32.mxu1 %v16196_v53 }
 0x521   :  { %13042 = vmatprep.subr.msk.mxu0 %vm118_vm1, %v4535_v2  ;;  %13037 = vmatmul.mubr.msk.f32.vlgmr.msra.gmra.mrb[76].mxu0 %vm108_vm2, %v13034_v5 }
 0x522   :  { %13039 = vmatpush1.msk.msra.mxu1 %vm118_vm1, %v4355_v25  ;;  %13043 = vmatpush1.msk.msra.mxu0 %vm118_vm1, %v4536_v13  ;;  %v4708_v48 = vpop.permute.xlu1 %4707  ;;  %v4533_v61 = vpop.permute.xlu0 %4532 }
 0x523   :  { %13040 = vmatmul.mubr.msk.f32.vlgmr.msra.gmra.mrb[76].mxu1 %vm108_vm2, %v13034_v5  ;;  %v4534_v41 = vsel %vm1797_vm8, %v4531_v46, %v4533_v61  ;;  %4617 = vmatprep.mubr.f32.mxu0 %v16196_v53  ;;  %v4537_v27 = vsel %vm1797_vm8, %v4533_v61, %v14484_v60  ;;  %v4714_v16 = vsel %vm2048_vm9, %v4708_v48, %v4710_v50  ;;  %v13048_v60 = vld [vmem:[%s16125_s12 + $0x20] sm:$0xf] }
 0x524   :  { %13045 = vmatprep.subr.msk.mxu1 %vm118_vm1, %v4537_v27  ;;  %13049 = vmatprep.subr.msk.mxu0 %vm118_vm1, %v4714_v16 }
 0x525   :  { %13044 = vmatmul.mubr.msk.f32.vlgmr.msra.gmra.mrb[78].mxu0 %vm108_vm2, %v13041_v7  ;;  %13046 = vmatpush1.msk.msra.mxu1 %vm118_vm1, %v4534_v41 }
 0x526   :  { %4688 = vmatprep.mubr.f32.mxu1 %v16196_v53  ;;  %v4706_v46 = vpop.permute.xlu1 %4705  ;;  %v4712_v54 = vpop.permute.xlu0 %4711  ;;  %4796 = vmatprep.mubr.f32.mxu0 %v16196_v53 }
 0x527   :  { %v4715_v24 = vsel %vm2048_vm9, %v4706_v46, %v4708_v48  ;;  %13047 = vmatmul.mubr.msk.f32.vlgmr.msra.gmra.mrb[78].mxu1 %vm108_vm2, %v13041_v7  ;;  %v4713_v26 = vsel %vm2048_vm9, %v4710_v50, %v4712_v54  ;;  %v4716_v19 = vsel %vm2048_vm9, %v4712_v54, %v4706_v46 }
 0x528   :  { %13050 = vmatpush1.msk.msra.mxu0 %vm118_vm1, %v4715_v24  ;;  %13052 = vmatprep.subr.msk.mxu1 %vm118_vm1, %v4716_v19 }
 0x529   :  { %13051 = vmatmul.mubr.msk.f32.vlgmr.msra.gmra.mrb[80].mxu0 %vm108_vm2, %v13048_v60  ;;  %13053 = vmatpush1.msk.msra.mxu1 %vm118_vm1, %v4713_v26 }
 0x52a   :  { %4867 = vmatprep.mubr.f32.mxu1 %v16196_v53  ;;  %5059 = vmatprep.mubr.f32.mxu0 %v16196_v53 }
 0x52b   :  { %13054 = vmatmul.mubr.msk.f32.vlgmr.msra.gmra.mrb[80].mxu1 %vm108_vm2, %v13048_v60 }
 0x52c   :  { %5130 = vmatprep.mubr.f32.mxu1 %v16196_v53 }
 0x5d9   :  { %v3386_v50 = vpop.f32.mrb[64].mxu0  ;;  %v3457_v47 = vpop.f32.mrb[64].mxu1 }
 0x5da   :  { %v3388_v12 = vpop.f32.mrb[65].mxu0  ;;  %v3459_v49 = vpop.f32.mrb[65].mxu1  ;;  %v3462_v32 = vmul.f32 %v3386_v50, %v14060_v58  ;;  %v3464_v57 = vmul.f32 %v3457_v47, %v14063_v59 }
 0x5db   :  { %v3465_v13 = vmul.f32 %v3459_v49, %v14075_v1  ;;  %v3463_v29 = vmul.f32 %v3388_v12, %v14072_v0 }
 0x5dd   :  { %v3561_v56 = vpop.f32.mrb[66].mxu0 }
 0x5de   :  { %v3637_v6 = vmul.f32 %v3561_v56, %v14066_v62  ;;  %v3563_v5 = vpop.f32.mrb[67].mxu0  ;;  %v3632_v25 = vpop.f32.mrb[66].mxu1 }
 0x5df   :  { %v3638_v2 = vmul.f32 %v3563_v5, %v14078_v3  ;;  %v3639_v48 = vmul.f32 %v3632_v25, %v14069_v63  ;;  %v3634_v61 = vpop.f32.mrb[67].mxu1 }
 0x5e0   :  { %v3641_v7 = vadd.f32 %v3637_v6, %v3462_v32  ;;  %v3640_v41 = vmul.f32 %v3634_v61, %v14081_v4 }
 0x5e1   :  { %v3642_v27 = vadd.f32 %v3638_v2, %v3463_v29  ;;  %v3740_v16 = vpop.f32.mrb[68].mxu0  ;;  %v3643_v46 = vadd.f32 %v3639_v48, %v3464_v57 }
 0x5e2   :  { %v3816_v54 = vmul.f32 %v3740_v16, %v14103_v38  ;;  %v3742_v60 = vpop.f32.mrb[69].mxu0  ;;  %v3644_v24 = vadd.f32 %v3640_v41, %v3465_v13 }
 0x5e3   :  { %v3817_v26 = vmul.f32 %v3742_v60, %v14109_v44  ;;  %v3811_v19 = vpop.f32.mrb[68].mxu1 }
 0x5e4   :  { %v3820_v50 = vadd.f32 %v3816_v54, %v3641_v7  ;;  %v3818_v47 = vmul.f32 %v3811_v19, %v14106_v39  ;;  %v3813_v12 = vpop.f32.mrb[69].mxu1 }
 0x5e5   :  { %v3821_v49 = vadd.f32 %v3817_v26, %v3642_v27  ;;  %v3819_v56 = vmul.f32 %v3813_v12, %v14112_v45 }
 0x5e6   :  { %v3822_v32 = vadd.f32 %v3818_v47, %v3643_v46 }
 0x5e7   :  { %v3823_v6 = vadd.f32 %v3819_v56, %v3644_v24 }
 0x5e8   :  { %v3919_v5 = vpop.f32.mrb[70].mxu0 }
 0x5e9   :  { %v3995_v25 = vmul.f32 %v3919_v5, %v14136_v51  ;;  %v3921_v57 = vpop.f32.mrb[71].mxu0  ;;  %v3990_v29 = vpop.f32.mrb[70].mxu1 }
 0x5ea   :  { %v3996_v2 = vmul.f32 %v3921_v57, %v14144_v37  ;;  %v3997_v13 = vmul.f32 %v3990_v29, %v14139_v52  ;;  %v3992_v48 = vpop.f32.mrb[71].mxu1  ;;  %v2344_v5 = vpop.xlane.xlu1 %2343 }
 0x5eb   :  { %v3998_v61 = vmul.f32 %v3992_v48, %v14147_v40  ;;  %v3999_v7 = vadd.f32 %v3995_v25, %v3820_v50  ;;  %v2348_v25 = vmul.f32 0.001953125, %v2344_v5 }
 0x5ec   :  { %v4086_v41 = vpop.f32.mrb[72].mxu0  ;;  %v4000_v16 = vadd.f32 %v3996_v2, %v3821_v49  ;;  %v4001_v27 = vadd.f32 %v3997_v13, %v3822_v32 }
 0x5ed   :  { %v4162_v54 = vadd.f32 %v4086_v41, %v3999_v7  ;;  %v4088_v60 = vpop.f32.mrb[73].mxu0  ;;  %v4002_v46 = vadd.f32 %v3998_v61, %v3823_v6 }
 0x5ee   :  { %v4163_v24 = vadd.f32 %v4088_v60, %v4000_v16  ;;  %v4157_v26 = vpop.f32.mrb[72].mxu1 }
 0x5ef   :  { %v4164_v19 = vadd.f32 %v4157_v26, %v4001_v27  ;;  %v4159_v47 = vpop.f32.mrb[73].mxu1 }
 0x5f0   :  { %v4165_v12 = vadd.f32 %v4159_v47, %v4002_v46  ;;  %v4261_v56 = vpop.f32.mrb[74].mxu0  ;;  %v14635_v47 = vsub.f32 %v14285_v33, %v2348_v25 }
 0x5f1   :  { %v4337_v57 = vmul.f32 %v4261_v56, %v14165_v10  ;;  %v4263_v29 = vpop.f32.mrb[75].mxu0  ;;  %v16199_v56 = vld [vmem:[#allocation12_spill] sm:$0xff] }
 0x5f2   :  { %v4338_v52 = vmul.f32 %v4263_v29, %v14171_v34  ;;  %v4332_v48 = vpop.f32.mrb[74].mxu1 }
 0x5f3   :  { %v4341_v50 = vadd.f32 %v4337_v57, %v4162_v54  ;;  %v4339_v49 = vmul.f32 %v4332_v48, %v14168_v11  ;;  %v4334_v32 = vpop.f32.mrb[75].mxu1 }
 0x5f4   :  { %v4342_v2 = vadd.f32 %v4338_v52, %v4163_v24  ;;  %v4340_v6 = vmul.f32 %v4334_v32, %v14174_v35  ;;  %v4440_v13 = vpop.f32.mrb[76].mxu0  ;;  %v14638_v52 = vsub.f32 %v14289_v31, %v2348_v25 }
 0x5f5   :  { %v4343_v61 = vadd.f32 %v4339_v49, %v4164_v19  ;;  %v4516_v7 = vmul.f32 %v4440_v13, %v14190_v18  ;;  %v4442_v41 = vpop.f32.mrb[77].mxu0 }
 0x5f6   :  { %v4344_v16 = vadd.f32 %v4340_v6, %v4165_v12  ;;  %v4517_v27 = vmul.f32 %v4442_v41, %v14198_v28  ;;  %v4511_v60 = vpop.f32.mrb[76].mxu1 }
 0x5f7   :  { %v4520_v46 = vadd.f32 %v4516_v7, %v4341_v50  ;;  %v4518_v26 = vmul.f32 %v4511_v60, %v14193_v23  ;;  %v4513_v54 = vpop.f32.mrb[77].mxu1 }
 0x5f8   :  { %v4521_v24 = vadd.f32 %v4517_v27, %v4342_v2  ;;  %v4519_v19 = vmul.f32 %v4513_v54, %v16199_v56  ;;  %v4619_v5 = vpop.f32.mrb[78].mxu0  ;;  %v2369_v2 = vmul.f32 %v14635_v47, %v14635_v47  ;;  %v2359_v54 = vsub.f32 %v14287_v55, %v2348_v25 }
 0x5f9   :  { %v4522_v57 = vadd.f32 %v4518_v26, %v4343_v61  ;;  %v4695_v12 = vmul.f32 %v4619_v5, %v14217_v22  ;;  %v4621_v29 = vpop.f32.mrb[79].mxu0  ;;  %v2370_v61 = vmul.f32 %v14638_v52, %v14638_v52 }
 0x5fa   :  { %v4523_v48 = vadd.f32 %v4519_v19, %v4344_v16  ;;  %v4696_v50 = vmul.f32 %v4621_v29, %v14225_v14  ;;  %v4690_v49 = vpop.f32.mrb[78].mxu1  ;;  %v2371_v55 = vmul.f32 %v2359_v54, %v2359_v54 }
 0x5fb   :  { %v4699_v32 = vadd.f32 %v4695_v12, %v4520_v46  ;;  %v4697_v6 = vmul.f32 %v4690_v49, %v14220_v17  ;;  %v4692_v33 = vpop.f32.mrb[79].mxu1 }
 0x5fc   :  { %v4700_v13 = vadd.f32 %v4696_v50, %v4521_v24  ;;  %v4698_v31 = vmul.f32 %v4692_v33, %v14228_v15  ;;  %v4798_v7 = vpop.f32.mrb[80].mxu0  ;;  %v2387_v50 = vsel %vm118_vm1, %v2369_v2, 0.0  ;;  %v2390_v2 = vsel %vm118_vm1, %v2371_v55, 0.0 }
 0x5fd   :  { %v4701_v41 = vadd.f32 %v4697_v6, %v4522_v57  ;;  %v4874_v16 = vmul.f32 %v4798_v7, %v14244_v20  ;;  %v4800_v27 = vpop.f32.mrb[81].mxu0  ;;  %v2388_v57 = vsel %vm118_vm1, %v2370_v61, 0.0 }
 0x5fe   :  { %v4702_v60 = vadd.f32 %v4698_v31, %v4523_v48  ;;  %v4875_v46 = vmul.f32 %v4800_v27, %v14252_v8  ;;  %v4869_v26 = vpop.f32.mrb[80].mxu1  ;;  %v2360_v31 = vsub.f32 %v14291_v42, %v2348_v25  ;;  %v2389_v7 = vadd.f32 %v2388_v57, %v2387_v50  ;;  %v2318_v42 = vld [vmem:[%s16126_s4 + $0x8] sm:$0xff]  ;;  %v4883_v25 = vld [vmem:[%s16127_s14] sm:$0xf] }
 0x5ff   :  { %v4878_v24 = vadd.f32 %v4874_v16, %v4699_v32  ;;  %v4876_v19 = vmul.f32 %v4869_v26, %v14247_v30  ;;  %v4871_v5 = vpop.f32.mrb[81].mxu1 }
 0x600   :  { %v4879_v12 = vadd.f32 %v4875_v46, %v4700_v13  ;;  %v4877_v29 = vmul.f32 %v4871_v5, %v14255_v36  ;;  %v2372_v46 = vmul.f32 %v2360_v31, %v2360_v31  ;;  %v2391_v26 = vadd.f32 %v2390_v2, %v2389_v7 }
 0x601   :  { %v4884_v49 = vsel %vm118_vm1, %v4878_v24, 0.0  ;;  %v4880_v6 = vadd.f32 %v4876_v19, %v4701_v41 }
 0x602   :  { %v4885_v48 = vsel %vm118_vm1, %v4879_v12, 0.0  ;;  %v4881_v33 = vadd.f32 %v4877_v29, %v4702_v60  ;;  %v2392_v41 = vsel %vm118_vm1, %v2372_v46, 0.0  ;;  %v30_v60 = vstv %s16128_s15 }
 0x603   :  { %v4886_v32 = vadd.f32 %v4885_v48, %v4884_v49  ;;  %v4887_v16 = vsel %vm118_vm1, %v4880_v6, 0.0  ;;  %v2393_v19 = vadd.f32 %v2392_v41, %v2391_v26  ;;  %31 = vst [vmem:[#allocation2] sm:$0x1] %v30_v60 }
 0x604   :  { %v4889_v27 = vsel %vm118_vm1, %v4881_v33, 0.0 }
 0x605   :  { %v4888_v13 = vadd.f32 %v4887_v16, %v4886_v32 }
 0x607   :  { %v4890_v61 = vadd.f32 %v4889_v27, %v4888_v13 }
 0x609   :  { %4891 = vadd.xlane.f32.xlu0 %v4890_v61 }
 0x60d   :  { %2394 = vadd.xlane.f32.xlu0 %v2393_v19 }
 0x623   :  { %2423 = vperm.xlu0 %13484, %v2318_v42   ;;  %v2450_v42 = vpop.permute.xlu1 %2449 }
 0x627   :  { %4929 = vperm.xlu0 %13484, %v4883_v25  }
 0x696   :  { %v4892_v5 = vpop.xlane.xlu0 %4891 }
 0x697   :  { %v4893_v29 = vmul.f32 0.001953125, %v4892_v5 }
 0x699   :  { %v14672_v50 = vsub.f32 %v4878_v24, %v4893_v29  ;;  %v14674_v57 = vsub.f32 %v4879_v12, %v4893_v29  ;;  %v14676_v49 = vsub.f32 %v4880_v6, %v4893_v29  ;;  %v14678_v48 = vsub.f32 %v4881_v33, %v4893_v29 }
 0x69a   :  { %v2395_v55 = vpop.xlane.xlu0 %2394  ;;  %v14695_v29 = vrot.slane %v2450_v42, 4 }
 0x69b   :  { %v2398_v32 = vmul.f32 0.001953125, %v2395_v55  ;;  %v4898_v7 = vmul.f32 %v14672_v50, %v14672_v50  ;;  %v4899_v16 = vmul.f32 %v14674_v57, %v14674_v57  ;;  %v4900_v13 = vmul.f32 %v14676_v49, %v14676_v49 }
 0x69c   :  { %v4901_v24 = vmul.f32 %v14678_v48, %v14678_v48 }
 0x69d   :  { %v2401_v27 = vadd.f32 1e-05, %v2398_v32  ;;  %v4902_v12 = vsel %vm118_vm1, %v4898_v7, 0.0  ;;  %v4903_v6 = vsel %vm118_vm1, %v4899_v16, 0.0  ;;  %v4905_v46 = vsel %vm118_vm1, %v4900_v13, 0.0 }
 0x69e   :  { %v4904_v33 = vadd.f32 %v4903_v6, %v4902_v12  ;;  %v4907_v61 = vsel %vm118_vm1, %v4901_v24, 0.0 }
 0x69f   :  { %13494 = vrsqrt.f32 %v2401_v27 }
 0x6a0   :  { %v4906_v2 = vadd.f32 %v4905_v46, %v4904_v33 }
 0x6a2   :  { %v4908_v26 = vadd.f32 %v4907_v61, %v4906_v2  ;;  %v2424_v41 = vpop.permute.xlu0 %2423 }
 0x6a3   :  { %v14693_v5 = vrot.slane %v2424_v41, 4 }
 0x6a4   :  { %4909 = vadd.xlane.f32.xlu1 %v4908_v26 }
 0x6a6   :  { %v4930_v46 = vpop.permute.xlu0 %4929 }
 0x6a9   :  { %v13495_v19 = vpop.eup %13494 }
 0x6aa   :  { %v2413_v25 = vmul.f32 %v13495_v19, %v14635_v47  ;;  %v2415_v60 = vmul.f32 %v13495_v19, %v2359_v54  ;;  %v2414_v16 = vmul.f32 %v13495_v19, %v14638_v52  ;;  %v13055_v47 = vld [vmem:[#allocation2] ss:$0 sm:$0xff]  ;;  %v2416_v54 = vmul.f32 %v13495_v19, %v2360_v31  ;;  %v4921_v31 = vpop.permute.xlu1 %4920 }
 0x6ac   :  { %v2439_v55 = vmul.f32 %v14693_v5, %v2413_v25  ;;  %v2441_v32 = vmul.f32 %v14693_v5, %v2415_v60  ;;  %v2440_v27 = vmul.f32 %v14693_v5, %v2414_v16  ;;  %v2442_v24 = vmul.f32 %v14693_v5, %v2416_v54  ;;  %v4967_v60 = vld [vmem:[%s16129_s17] sm:$0xf] }
 0x6ae   :  { %v14700_v7 = vadd.f32 %v14695_v29, %v2439_v55  ;;  %v14706_v13 = vadd.f32 %v14695_v29, %v2441_v32  ;;  %v14713_v12 = vadd.f32 %v14695_v29, %v2440_v27  ;;  %v14720_v52 = vadd.f32 %v14695_v29, %v2442_v24 }
 0x6b0   :  { %4968 = vrot.lane.b32.xlu0 %v14700_v7, %s13505_s2 }
 0x6b4   :  { %4972 = vrot.lane.b32.xlu0 %v14706_v13, %s13505_s2 }
 0x6b5   :  { %4943 = vperm.xlu1 %13485, %v13055_v47  }
 0x6b8   :  { %5314 = vrot.lane.b32.xlu0 %v14700_v7, %s13506_s26 }
 0x6b9   :  { %4970 = vrot.lane.b32.xlu1 %v14713_v12, %s13505_s2 }
 0x6bc   :  { %5318 = vrot.lane.b32.xlu0 %v14706_v13, %s13506_s26 }
 0x6bd   :  { %4974 = vrot.lane.b32.xlu1 %v14720_v52, %s13505_s2 }
 0x6c0   :  { %5664 = vrot.lane.b32.xlu0 %v14700_v7, %s13507_s3 }
 0x6c1   :  { %5316 = vrot.lane.b32.xlu1 %v14713_v12, %s13506_s26 }
 0x6c4   :  { %5668 = vrot.lane.b32.xlu0 %v14706_v13, %s13507_s3 }
 0x6c5   :  { %5320 = vrot.lane.b32.xlu1 %v14720_v52, %s13506_s26 }
 0x6c9   :  { %5666 = vrot.lane.b32.xlu1 %v14713_v12, %s13507_s3 }
 0x6cd   :  { %5670 = vrot.lane.b32.xlu1 %v14720_v52, %s13507_s3 }
 0x722   :  { %v4969_v26 = vpop.permute.xlu0 %4968 }
 0x726   :  { %v4973_v42 = vpop.permute.xlu0 %4972 }
 0x731   :  { %v4910_v6 = vpop.xlane.xlu1 %4909 }
 0x732   :  { %v4911_v33 = vmul.f32 0.001953125, %v4910_v6 }
 0x734   :  { %v4912_v2 = vadd.f32 1e-05, %v4911_v33 }
 0x735   :  { %v4944_v61 = vpop.permute.xlu1 %4943 }
 0x736   :  { %13496 = vrsqrt.f32 %v4912_v2 }
 0x739   :  { %v4971_v41 = vpop.permute.xlu1 %4970 }
 0x73a   :  { %v4978_v19 = vsel %vm103_vm0, %v4969_v26, %v4971_v41  ;;  %v4977_v16 = vsel %vm103_vm0, %v4971_v41, %v4973_v42 }
 0x73b   :  { %13056 = vmatprep.subr.msk.mxu0 %vm118_vm1, %v4978_v19 }
 0x73d   :  { %v4975_v25 = vpop.permute.xlu1 %4974 }
 0x73e   :  { %v4979_v55 = vsel %vm103_vm0, %v4975_v25, %v4969_v26  ;;  %v4976_v32 = vsel %vm103_vm0, %v4973_v42, %v4975_v25 }
 0x73f   :  { %13057 = vmatpush1.msk.msra.mxu0 %vm118_vm1, %v4979_v55  ;;  %13059 = vmatprep.subr.msk.mxu1 %vm118_vm1, %v4976_v32 }
 0x740   :  { %v13497_v47 = vpop.eup %13496  ;;  %13060 = vmatpush1.msk.msra.mxu1 %vm118_vm1, %v4977_v16  ;;  %13058 = vmatmul.mubr.msk.f32.vlgmr.msra.gmra.mrb[82].mxu0 %vm108_vm2, %v4967_v60 }
 0x741   :  { %v4914_v54 = vmul.f32 %v13497_v47, %v14672_v50  ;;  %v4915_v27 = vmul.f32 %v13497_v47, %v14674_v57  ;;  %v4916_v24 = vmul.f32 %v13497_v47, %v14676_v49  ;;  %v4917_v6 = vmul.f32 %v13497_v47, %v14678_v48  ;;  %13061 = vmatmul.mubr.msk.f32.vlgmr.msra.gmra.mrb[82].mxu1 %vm108_vm2, %v4967_v60  ;;  %v5317_v16 = vpop.permute.xlu1 %5316 }
 0x742   :  { %5216 = vmatprep.mubr.f32.mxu0 %v16196_v53  ;;  %5287 = vmatprep.mubr.f32.mxu1 %v16196_v53 }
 0x743   :  { %v4923_v33 = vmul.f32 %v4921_v31, %v4914_v54  ;;  %v4924_v2 = vmul.f32 %v4921_v31, %v4915_v27  ;;  %v4925_v26 = vmul.f32 %v4921_v31, %v4916_v24  ;;  %v4926_v41 = vmul.f32 %v4921_v31, %v4917_v6  ;;  %v2288_v27 = vld [vmem:[%s16171_s1 + $0x8] sm:$0xff]  ;;  %v2287_v24 = vld [vmem:[%s16171_s1] sm:$0xff] }
 0x745   :  { %v4932_v19 = vadd.f32 %v4930_v46, %v4923_v33  ;;  %v4933_v42 = vadd.f32 %v4930_v46, %v4924_v2  ;;  %v4934_v25 = vadd.f32 %v4930_v46, %v4925_v26  ;;  %v4935_v50 = vadd.f32 %v4930_v46, %v4926_v41  ;;  %v5321_v54 = vpop.permute.xlu1 %5320 }
 0x747   :  { %v4946_v55 = vmul.f32 %v4944_v61, %v4932_v19  ;;  %v4947_v57 = vmul.f32 %v4944_v61, %v4933_v42  ;;  %v4948_v32 = vmul.f32 %v4944_v61, %v4934_v25  ;;  %v4949_v49 = vmul.f32 %v4944_v61, %v4935_v50  ;;  %v5315_v61 = vpop.permute.xlu0 %5314 }
 0x749   :  { %v14762_v48 = vadd.f32 %v4946_v55, %v14700_v7  ;;  %v14765_v60 = vadd.f32 %v4947_v57, %v14713_v12  ;;  %v14772_v31 = vadd.f32 %v4948_v32, %v14706_v13  ;;  %v14775_v46 = vadd.f32 %v4949_v49, %v14720_v52  ;;  %v5667_v33 = vpop.permute.xlu1 %5666  ;;  %v4954_v55 = vld [vmem:[%s16130_s16] sm:$0xf] }
 0x74b   :  { %4957 = vrot.lane.b32.xlu1 %v14765_v60, %s13505_s2  ;;  %4955 = vrot.lane.b32.xlu0 %v14762_v48, %s13505_s2  ;;  %v5319_v47 = vpop.permute.xlu0 %5318 }
 0x74d   :  { %v5671_v26 = vpop.permute.xlu1 %5670 }
 0x74f   :  { %4961 = vrot.lane.b32.xlu1 %v14775_v46, %s13505_s2  ;;  %4959 = vrot.lane.b32.xlu0 %v14772_v31, %s13505_s2  ;;  %v5665_v6 = vpop.permute.xlu0 %5664 }
 0x753   :  { %6016 = vrot.lane.b32.xlu1 %v14713_v12, %s13508_s8  ;;  %6014 = vrot.lane.b32.xlu0 %v14700_v7, %s13508_s8  ;;  %v5669_v2 = vpop.permute.xlu0 %5668 }
 0x757   :  { %5302 = vrot.lane.b32.xlu1 %v14765_v60, %s13506_s26  ;;  %5300 = vrot.lane.b32.xlu0 %v14762_v48, %s13506_s26 }
 0x75b   :  { %5306 = vrot.lane.b32.xlu1 %v14775_v46, %s13506_s26  ;;  %5304 = vrot.lane.b32.xlu0 %v14772_v31, %s13506_s26 }
 0x75f   :  { %6020 = vrot.lane.b32.xlu1 %v14720_v52, %s13508_s8  ;;  %6018 = vrot.lane.b32.xlu0 %v14706_v13, %s13508_s8 }
 0x763   :  { %5652 = vrot.lane.b32.xlu1 %v14765_v60, %s13507_s3  ;;  %5650 = vrot.lane.b32.xlu0 %v14762_v48, %s13507_s3 }
 0x767   :  { %5656 = vrot.lane.b32.xlu1 %v14775_v46, %s13507_s3  ;;  %5654 = vrot.lane.b32.xlu0 %v14772_v31, %s13507_s3 }
 0x76b   :  { %6690 = vrot.lane.b32.xlu1 %v14706_v13, %s13509_s27  ;;  %6688 = vrot.lane.b32.xlu0 %v14713_v12, %s13509_s27 }
 0x76f   :  { %6002 = vrot.lane.b32.xlu1 %v14765_v60, %s13508_s8  ;;  %6000 = vrot.lane.b32.xlu0 %v14762_v48, %s13508_s8 }
 0x773   :  { %6006 = vrot.lane.b32.xlu1 %v14775_v46, %s13508_s8  ;;  %6004 = vrot.lane.b32.xlu0 %v14772_v31, %s13508_s8 }
 0x777   :  { %6692 = vrot.lane.b32.xlu1 %v14720_v52, %s13509_s27  ;;  %6686 = vrot.lane.b32.xlu0 %v14700_v7, %s13509_s27 }
 0x77b   :  { %7040 = vrot.lane.b32.xlu1 %v14706_v13, %s13510_s9  ;;  %7038 = vrot.lane.b32.xlu0 %v14713_v12, %s13510_s9 }
 0x77f   :  { %7042 = vrot.lane.b32.xlu1 %v14720_v52, %s13510_s9  ;;  %7036 = vrot.lane.b32.xlu0 %v14700_v7, %s13510_s9 }
 0x783   :  { %7390 = vrot.lane.b32.xlu1 %v14706_v13, %s13511_s28  ;;  %7388 = vrot.lane.b32.xlu0 %v14713_v12, %s13511_s28 }
 0x787   :  { %6676 = vrot.lane.b32.xlu1 %v14772_v31, %s13509_s27  ;;  %6674 = vrot.lane.b32.xlu0 %v14765_v60, %s13509_s27 }
 0x78b   :  { %6678 = vrot.lane.b32.xlu1 %v14775_v46, %s13509_s27  ;;  %6672 = vrot.lane.b32.xlu0 %v14762_v48, %s13509_s27 }
 0x78f   :  { %7392 = vrot.lane.b32.xlu1 %v14720_v52, %s13511_s28  ;;  %7386 = vrot.lane.b32.xlu0 %v14700_v7, %s13511_s28 }
 0x793   :  { %7026 = vrot.lane.b32.xlu1 %v14772_v31, %s13510_s9  ;;  %7024 = vrot.lane.b32.xlu0 %v14765_v60, %s13510_s9 }
 0x797   :  { %7028 = vrot.lane.b32.xlu1 %v14775_v46, %s13510_s9  ;;  %7022 = vrot.lane.b32.xlu0 %v14762_v48, %s13510_s9 }
 0x79b   :  { %7740 = vrot.lane.b32.xlu1 %v14706_v13, %s16198_s29  ;;  %7738 = vrot.lane.b32.xlu0 %v14713_v12, %s16198_s29 }
 0x79f   :  { %7376 = vrot.lane.b32.xlu1 %v14772_v31, %s13511_s28  ;;  %7374 = vrot.lane.b32.xlu0 %v14765_v60, %s13511_s28 }
 0x7a3   :  { %7378 = vrot.lane.b32.xlu1 %v14775_v46, %s13511_s28  ;;  %7372 = vrot.lane.b32.xlu0 %v14762_v48, %s13511_s28 }
 0x7a7   :  { %7742 = vrot.lane.b32.xlu1 %v14720_v52, %s16198_s29  ;;  %7736 = vrot.lane.b32.xlu0 %v14700_v7, %s16198_s29 }
 0x7ab   :  { %7726 = vrot.lane.b32.xlu1 %v14772_v31, %s16198_s29  ;;  %7724 = vrot.lane.b32.xlu0 %v14765_v60, %s16198_s29 }
 0x7af   :  { %7728 = vrot.lane.b32.xlu1 %v14775_v46, %s16198_s29  ;;  %7722 = vrot.lane.b32.xlu0 %v14762_v48, %s16198_s29 }
 0x7b3   :  { %2297 = vperm.xlu1 %13485, %v2288_v27   ;;  %2292 = vperm.xlu0 %13484, %v2287_v24   ;;  %v5324_v27 = vsel %vm343_vm3, %v5315_v61, %v5317_v16  ;;  %v5325_v24 = vsel %vm343_vm3, %v5321_v54, %v5315_v61 }
 0x7bd   :  { %v4958_v41 = vpop.permute.xlu1 %4957  ;;  %v4956_v19 = vpop.permute.xlu0 %4955 }
 0x7be   :  { %v4965_v42 = vsel %vm103_vm0, %v4956_v19, %v4958_v41 }
 0x7bf   :  { %13062 = vmatprep.subr.msk.mxu0 %vm118_vm1, %v4965_v42 }
 0x7c1   :  { %v4962_v25 = vpop.permute.xlu1 %4961  ;;  %v4960_v50 = vpop.permute.xlu0 %4959 }
 0x7c2   :  { %v4966_v57 = vsel %vm103_vm0, %v4962_v25, %v4956_v19  ;;  %v4964_v32 = vsel %vm103_vm0, %v4958_v41, %v4960_v50  ;;  %v4963_v49 = vsel %vm103_vm0, %v4960_v50, %v4962_v25  ;;  %v5322_v19 = vsel %vm343_vm3, %v5319_v47, %v5321_v54  ;;  %v13069_v25 = vld [vmem:[%s16129_s17 + $0x4] sm:$0xf] }
 0x7c3   :  { %13063 = vmatpush1.msk.msra.mxu0 %vm118_vm1, %v4966_v57  ;;  %13065 = vmatprep.subr.msk.mxu1 %vm118_vm1, %v4963_v49  ;;  %v5323_v50 = vsel %vm343_vm3, %v5317_v16, %v5319_v47  ;;  %v13068_v57 = vld [vmem:[%s16130_s16 + $0x4] sm:$0xf] }
 0x7c4   :  { %13064 = vmatmul.mubr.msk.f32.vlgmr.msra.gmra.mrb[82].mxu0 %vm108_vm2, %v4954_v55  ;;  %13066 = vmatpush1.msk.msra.mxu1 %vm118_vm1, %v4964_v32 }
 0x7c5   :  { %13070 = vmatprep.subr.msk.mxu0 %vm118_vm1, %v5324_v27  ;;  %v14904_v41 = vpop.permute.xlu1 %6016  ;;  %13067 = vmatmul.mubr.msk.f32.vlgmr.msra.gmra.mrb[82].mxu1 %vm108_vm2, %v4954_v55  ;;  %v6015_v42 = vpop.permute.xlu0 %6014 }
 0x7c6   :  { %13071 = vmatpush1.msk.msra.mxu0 %vm118_vm1, %v5325_v24  ;;  %13073 = vmatprep.subr.msk.mxu1 %vm118_vm1, %v5322_v19  ;;  %v5674_v24 = vsel %vm594_vm4, %v5665_v6, %v5667_v33  ;;  %v5675_v19 = vsel %vm594_vm4, %v5671_v26, %v5665_v6 }
 0x7c7   :  { %13074 = vmatpush1.msk.msra.mxu1 %vm118_vm1, %v5323_v50  ;;  %5405 = vmatprep.mubr.f32.mxu0 %v16196_v53  ;;  %v5672_v50 = vsel %vm594_vm4, %v5669_v2, %v5671_v26 }
 0x7c8   :  { %13072 = vmatmul.mubr.msk.f32.vlgmr.msra.gmra.mrb[84].mxu0 %vm108_vm2, %v13069_v25  ;;  %5476 = vmatprep.mubr.f32.mxu1 %v16196_v53 }
 0x7c9   :  { %v5303_v61 = vpop.permute.xlu1 %5302  ;;  %13075 = vmatmul.mubr.msk.f32.vlgmr.msra.gmra.mrb[84].mxu1 %vm108_vm2, %v13069_v25  ;;  %v5301_v54 = vpop.permute.xlu0 %5300  ;;  %5562 = vmatprep.mubr.f32.mxu0 %v16196_v53 }
 0x7ca   :  { %v5310_v16 = vsel %vm343_vm3, %v5301_v54, %v5303_v61  ;;  %5633 = vmatprep.mubr.f32.mxu1 %v16196_v53 }
 0x7cb   :  { %13076 = vmatprep.subr.msk.mxu0 %vm118_vm1, %v5310_v16  ;;  %v5673_v16 = vsel %vm594_vm4, %v5667_v33, %v5669_v2 }
 0x7cd   :  { %v5307_v47 = vpop.permute.xlu1 %5306  ;;  %v5305_v55 = vpop.permute.xlu0 %5304 }
 0x7ce   :  { %v5311_v32 = vsel %vm343_vm3, %v5307_v47, %v5301_v54  ;;  %v5309_v49 = vsel %vm343_vm3, %v5303_v61, %v5305_v55  ;;  %v5308_v27 = vsel %vm343_vm3, %v5305_v55, %v5307_v47  ;;  %v13083_v54 = vld [vmem:[%s16129_s17 + $0x8] sm:$0xf] }
 0x7cf   :  { %13077 = vmatpush1.msk.msra.mxu0 %vm118_vm1, %v5311_v32  ;;  %13079 = vmatprep.subr.msk.mxu1 %vm118_vm1, %v5308_v27  ;;  %v13082_v55 = vld [vmem:[%s16130_s16 + $0x8] sm:$0xf]  ;;  %v6024_v27 = vsel %vm845_vm5, %v6015_v42, %v14904_v41 }
 0x7d0   :  { %13078 = vmatmul.mubr.msk.f32.vlgmr.msra.gmra.mrb[84].mxu0 %vm108_vm2, %v13068_v57  ;;  %13080 = vmatpush1.msk.msra.mxu1 %vm118_vm1, %v5309_v49 }
 0x7d1   :  { %13084 = vmatprep.subr.msk.mxu0 %vm118_vm1, %v5674_v24  ;;  %v6021_v25 = vpop.permute.xlu1 %6020  ;;  %13081 = vmatmul.mubr.msk.f32.vlgmr.msra.gmra.mrb[84].mxu1 %vm108_vm2, %v13068_v57  ;;  %v6019_v61 = vpop.permute.xlu0 %6018 }
 0x7d2   :  { %13085 = vmatpush1.msk.msra.mxu0 %vm118_vm1, %v5675_v19  ;;  %13087 = vmatprep.subr.msk.mxu1 %vm118_vm1, %v5672_v50  ;;  %v6025_v24 = vsel %vm845_vm5, %v6021_v25, %v6015_v42  ;;  %v6022_v50 = vsel %vm845_vm5, %v6019_v61, %v6021_v25 }
 0x7d3   :  { %13088 = vmatpush1.msk.msra.mxu1 %vm118_vm1, %v5673_v16  ;;  %5755 = vmatprep.mubr.f32.mxu0 %v16196_v53  ;;  %v13097_v16 = vld [vmem:[%s16129_s17 + $0xc] sm:$0xf] }
 0x7d4   :  { %13086 = vmatmul.mubr.msk.f32.vlgmr.msra.gmra.mrb[86].mxu0 %vm108_vm2, %v13083_v54  ;;  %5826 = vmatprep.mubr.f32.mxu1 %v16196_v53 }
 0x7d5   :  { %v5653_v6 = vpop.permute.xlu1 %5652  ;;  %13089 = vmatmul.mubr.msk.f32.vlgmr.msra.gmra.mrb[86].mxu1 %vm108_vm2, %v13083_v54  ;;  %v5651_v26 = vpop.permute.xlu0 %5650  ;;  %5912 = vmatprep.mubr.f32.mxu0 %v16196_v53 }
 0x7d6   :  { %v5660_v33 = vsel %vm594_vm4, %v5651_v26, %v5653_v6  ;;  %5983 = vmatprep.mubr.f32.mxu1 %v16196_v53 }
 0x7d7   :  { %13090 = vmatprep.subr.msk.mxu0 %vm118_vm1, %v5660_v33  ;;  %v13096_v33 = vld [vmem:[%s16130_s16 + $0xc] sm:$0xf] }
 0x7d9   :  { %v5657_v2 = vpop.permute.xlu1 %5656  ;;  %v5655_v47 = vpop.permute.xlu0 %5654 }
 0x7da   :  { %v5661_v57 = vsel %vm594_vm4, %v5657_v2, %v5651_v26  ;;  %v5659_v32 = vsel %vm594_vm4, %v5653_v6, %v5655_v47  ;;  %v5658_v49 = vsel %vm594_vm4, %v5655_v47, %v5657_v2  ;;  %v6023_v6 = vsel %vm845_vm5, %v14904_v41, %v6019_v61 }
 0x7db   :  { %13091 = vmatpush1.msk.msra.mxu0 %vm118_vm1, %v5661_v57  ;;  %13093 = vmatprep.subr.msk.mxu1 %vm118_vm1, %v5658_v49  ;;  %v13111_v49 = vld [vmem:[%s16129_s17 + $0x10] sm:$0xf] }
 0x7dc   :  { %13092 = vmatmul.mubr.msk.f32.vlgmr.msra.gmra.mrb[86].mxu0 %vm108_vm2, %v13082_v55  ;;  %13094 = vmatpush1.msk.msra.mxu1 %vm118_vm1, %v5659_v32 }
 0x7dd   :  { %13098 = vmatprep.subr.msk.mxu0 %vm118_vm1, %v6024_v27  ;;  %v6691_v19 = vpop.permute.xlu1 %6690  ;;  %13095 = vmatmul.mubr.msk.f32.vlgmr.msra.gmra.mrb[86].mxu1 %vm108_vm2, %v13082_v55  ;;  %v6689_v54 = vpop.permute.xlu0 %6688 }
 0x7de   :  { %13099 = vmatpush1.msk.msra.mxu0 %vm118_vm1, %v6025_v24  ;;  %13101 = vmatprep.subr.msk.mxu1 %vm118_vm1, %v6022_v50 }
 0x7df   :  { %13102 = vmatpush1.msk.msra.mxu1 %vm118_vm1, %v6023_v6  ;;  %6105 = vmatprep.mubr.f32.mxu0 %v16196_v53 }
 0x7e0   :  { %13100 = vmatmul.mubr.msk.f32.vlgmr.msra.gmra.mrb[88].mxu0 %vm108_vm2, %v13097_v16  ;;  %6176 = vmatprep.mubr.f32.mxu1 %v16196_v53 }
 0x7e1   :  { %v6003_v42 = vpop.permute.xlu1 %6002  ;;  %13103 = vmatmul.mubr.msk.f32.vlgmr.msra.gmra.mrb[88].mxu1 %vm108_vm2, %v13097_v16  ;;  %v6001_v25 = vpop.permute.xlu0 %6000  ;;  %6262 = vmatprep.mubr.f32.mxu0 %v16196_v53  ;;  %v13125_v16 = vld [vmem:[%s16129_s17 + $0x14] sm:$0xf] }
 0x7e2   :  { %v6010_v41 = vsel %vm845_vm5, %v6001_v25, %v6003_v42  ;;  %6333 = vmatprep.mubr.f32.mxu1 %v16196_v53 }
 0x7e3   :  { %13104 = vmatprep.subr.msk.mxu0 %vm118_vm1, %v6010_v41 }
 0x7e5   :  { %v6007_v61 = vpop.permute.xlu1 %6006  ;;  %v6005_v26 = vpop.permute.xlu0 %6004 }
 0x7e6   :  { %v6011_v2 = vsel %vm845_vm5, %v6007_v61, %v6001_v25  ;;  %v6009_v47 = vsel %vm845_vm5, %v6003_v42, %v6005_v26  ;;  %v6008_v55 = vsel %vm845_vm5, %v6005_v26, %v6007_v61 }
 0x7e7   :  { %13105 = vmatpush1.msk.msra.mxu0 %vm118_vm1, %v6011_v2  ;;  %13107 = vmatprep.subr.msk.mxu1 %vm118_vm1, %v6008_v55 }
 0x7e8   :  { %13106 = vmatmul.mubr.msk.f32.vlgmr.msra.gmra.mrb[88].mxu0 %vm108_vm2, %v13096_v33  ;;  %13108 = vmatpush1.msk.msra.mxu1 %vm118_vm1, %v6009_v47 }
 0x7e9   :  { %13112 = vmatprep.subr.msk.mxu0 %vm118_vm1, %v14713_v12  ;;  %v6693_v57 = vpop.permute.xlu1 %6692  ;;  %13109 = vmatmul.mubr.msk.f32.vlgmr.msra.gmra.mrb[88].mxu1 %vm108_vm2, %v13096_v33  ;;  %v6687_v32 = vpop.permute.xlu0 %6686  ;;  %v13124_v33 = vld [vmem:[%s16130_s16 + $0x14] sm:$0xf] }
 0x7ea   :  { %13113 = vmatpush1.msk.msra.mxu0 %vm118_vm1, %v14700_v7  ;;  %13115 = vmatprep.subr.msk.mxu1 %vm118_vm1, %v14720_v52  ;;  %v6697_v52 = vsel %vm1295_vm6, %v6693_v57, %v6687_v32  ;;  %v6694_v50 = vsel %vm1295_vm6, %v6691_v19, %v6693_v57 }
 0x7eb   :  { %13116 = vmatpush1.msk.msra.mxu1 %vm118_vm1, %v14706_v13  ;;  %13118 = vmatprep.subr.msk.mxu0 %vm118_vm1, %v14765_v60  ;;  %v6695_v13 = vsel %vm1295_vm6, %v6689_v54, %v6691_v19 }
 0x7ec   :  { %6431 = vmatprep.mubr.f32.mxu0 %v16196_v53  ;;  %13121 = vmatprep.subr.msk.mxu1 %vm118_vm1, %v14775_v46 }
 0x7ed   :  { %13114 = vmatmul.mubr.msk.f32.vlgmr.msra.gmra.mrb[90].mxu0 %vm108_vm2, %v13111_v49  ;;  %6502 = vmatprep.mubr.f32.mxu1 %v16196_v53  ;;  %v7041_v7 = vpop.permute.xlu1 %7040  ;;  %v7039_v12 = vpop.permute.xlu0 %7038 }
 0x7ee   :  { %13119 = vmatpush1.msk.msra.mxu0 %vm118_vm1, %v14762_v48  ;;  %13117 = vmatmul.mubr.msk.f32.vlgmr.msra.gmra.mrb[90].mxu1 %vm108_vm2, %v13111_v49  ;;  %v13110_v48 = vld [vmem:[%s16130_s16 + $0x10] sm:$0xf]  ;;  %v7045_v2 = vsel %vm1546_vm7, %v7039_v12, %v7041_v7 }
 0x7ef   :  { %13122 = vmatpush1.msk.msra.mxu1 %vm118_vm1, %v14772_v31  ;;  %13126 = vmatprep.subr.msk.mxu0 %vm118_vm1, %v6695_v13  ;;  %v6696_v31 = vsel %vm1295_vm6, %v6687_v32, %v6689_v54  ;;  %v13139_v13 = vld [vmem:[%s16129_s17 + $0x18] sm:$0xf] }
 0x7f0   :  { %13129 = vmatprep.subr.msk.mxu1 %vm118_vm1, %v6697_v52  ;;  %6588 = vmatprep.mubr.f32.mxu0 %v16196_v53 }
 0x7f1   :  { %v7043_v60 = vpop.permute.xlu1 %7042  ;;  %v7037_v46 = vpop.permute.xlu0 %7036  ;;  %6659 = vmatprep.mubr.f32.mxu1 %v16196_v53 }
 0x7f2   :  { %v7047_v47 = vsel %vm1546_vm7, %v7043_v60, %v7037_v46  ;;  %v7046_v55 = vsel %vm1546_vm7, %v7037_v46, %v7039_v12  ;;  %v7044_v49 = vsel %vm1546_vm7, %v7041_v7, %v7043_v60 }
 0x7f5   :  { %13120 = vmatmul.mubr.msk.f32.vlgmr.msra.gmra.mrb[90].mxu0 %vm108_vm2, %v13110_v48  ;;  %v15055_v27 = vpop.permute.xlu1 %7390  ;;  %v7389_v24 = vpop.permute.xlu0 %7388 }
 0x7f6   :  { %13127 = vmatpush1.msk.msra.mxu0 %vm118_vm1, %v6696_v31  ;;  %13123 = vmatmul.mubr.msk.f32.vlgmr.msra.gmra.mrb[90].mxu1 %vm108_vm2, %v13110_v48 }
 0x7f7   :  { %13130 = vmatpush1.msk.msra.mxu1 %vm118_vm1, %v6694_v50  ;;  %6777 = vmatprep.mubr.f32.mxu0 %v16196_v53 }
 0x7f8   :  { %6848 = vmatprep.mubr.f32.mxu1 %v16196_v53 }
 0x7f9   :  { %13128 = vmatmul.mubr.msk.f32.vlgmr.msra.gmra.mrb[92].mxu0 %vm108_vm2, %v13125_v16  ;;  %v6677_v54 = vpop.permute.xlu1 %6676  ;;  %v6675_v6 = vpop.permute.xlu0 %6674 }
 0x7fa   :  { %13131 = vmatmul.mubr.msk.f32.vlgmr.msra.gmra.mrb[92].mxu1 %vm108_vm2, %v13125_v16  ;;  %v6681_v19 = vsel %vm1295_vm6, %v6675_v6, %v6677_v54  ;;  %6934 = vmatprep.mubr.f32.mxu0 %v16196_v53  ;;  %v13138_v16 = vld [vmem:[%s16130_s16 + $0x18] sm:$0xf] }
 0x7fb   :  { %13132 = vmatprep.subr.msk.mxu0 %vm118_vm1, %v6681_v19  ;;  %7005 = vmatprep.mubr.f32.mxu1 %v16196_v53 }
 0x7fd   :  { %v6679_v42 = vpop.permute.xlu1 %6678  ;;  %v6673_v25 = vpop.permute.xlu0 %6672 }
 0x7fe   :  { %v6680_v41 = vsel %vm1295_vm6, %v6677_v54, %v6679_v42  ;;  %v6682_v61 = vsel %vm1295_vm6, %v6673_v25, %v6675_v6  ;;  %v6683_v26 = vsel %vm1295_vm6, %v6679_v42, %v6673_v25  ;;  %v7395_v54 = vsel %vm1797_vm8, %v7389_v24, %v15055_v27 }
 0x7ff   :  { %13133 = vmatpush1.msk.msra.mxu0 %vm118_vm1, %v6682_v61  ;;  %13135 = vmatprep.subr.msk.mxu1 %vm118_vm1, %v6683_v26  ;;  %v13153_v61 = vld [vmem:[%s16129_s17 + $0x1c] sm:$0xf] }
 0x800   :  { %13136 = vmatpush1.msk.msra.mxu1 %vm118_vm1, %v6680_v41  ;;  %13140 = vmatprep.subr.msk.mxu0 %vm118_vm1, %v7045_v2 }
 0x801   :  { %13134 = vmatmul.mubr.msk.f32.vlgmr.msra.gmra.mrb[92].mxu0 %vm108_vm2, %v13124_v33  ;;  %v7393_v57 = vpop.permute.xlu1 %7392  ;;  %13143 = vmatprep.subr.msk.mxu1 %vm118_vm1, %v7047_v47  ;;  %v7387_v32 = vpop.permute.xlu0 %7386 }
 0x802   :  { %13137 = vmatmul.mubr.msk.f32.vlgmr.msra.gmra.mrb[92].mxu1 %vm108_vm2, %v13124_v33  ;;  %13141 = vmatpush1.msk.msra.mxu0 %vm118_vm1, %v7046_v55  ;;  %v7397_v6 = vsel %vm1797_vm8, %v7393_v57, %v7387_v32  ;;  %v7396_v19 = vsel %vm1797_vm8, %v7387_v32, %v7389_v24  ;;  %v7394_v41 = vsel %vm1797_vm8, %v15055_v27, %v7393_v57  ;;  %v13152_v32 = vld [vmem:[%s16130_s16 + $0x1c] sm:$0xf] }
 0x803   :  { %13144 = vmatpush1.msk.msra.mxu1 %vm118_vm1, %v7044_v49  ;;  %7127 = vmatprep.mubr.f32.mxu0 %v16196_v53 }
 0x804   :  { %7198 = vmatprep.mubr.f32.mxu1 %v16196_v53 }
 0x805   :  { %13142 = vmatmul.mubr.msk.f32.vlgmr.msra.gmra.mrb[94].mxu0 %vm108_vm2, %v13139_v13  ;;  %v7027_v12 = vpop.permute.xlu1 %7026  ;;  %v7025_v52 = vpop.permute.xlu0 %7024 }
 0x806   :  { %13145 = vmatmul.mubr.msk.f32.vlgmr.msra.gmra.mrb[94].mxu1 %vm108_vm2, %v13139_v13  ;;  %v7031_v7 = vsel %vm1546_vm7, %v7025_v52, %v7027_v12  ;;  %7284 = vmatprep.mubr.f32.mxu0 %v16196_v53 }
 0x807   :  { %13146 = vmatprep.subr.msk.mxu0 %vm118_vm1, %v7031_v7  ;;  %7355 = vmatprep.mubr.f32.mxu1 %v16196_v53 }
 0x809   :  { %v7029_v60 = vpop.permute.xlu1 %7028  ;;  %v7023_v46 = vpop.permute.xlu0 %7022 }
 0x80a   :  { %v7030_v48 = vsel %vm1546_vm7, %v7027_v12, %v7029_v60  ;;  %v7032_v31 = vsel %vm1546_vm7, %v7023_v46, %v7025_v52  ;;  %v7033_v50 = vsel %vm1546_vm7, %v7029_v60, %v7023_v46  ;;  %v13167_v46 = vld [vmem:[%s16129_s17 + $0x20] sm:$0xf] }
 0x80b   :  { %13147 = vmatpush1.msk.msra.mxu0 %vm118_vm1, %v7032_v31  ;;  %13149 = vmatprep.subr.msk.mxu1 %vm118_vm1, %v7033_v50 }
 0x80c   :  { %13150 = vmatpush1.msk.msra.mxu1 %vm118_vm1, %v7030_v48  ;;  %13154 = vmatprep.subr.msk.mxu0 %vm118_vm1, %v7395_v54 }
 0x80d   :  { %13148 = vmatmul.mubr.msk.f32.vlgmr.msra.gmra.mrb[94].mxu0 %vm108_vm2, %v13138_v16  ;;  %v7741_v42 = vpop.permute.xlu1 %7740  ;;  %13157 = vmatprep.subr.msk.mxu1 %vm118_vm1, %v7397_v6  ;;  %v7739_v25 = vpop.permute.xlu0 %7738 }
 0x80e   :  { %13151 = vmatmul.mubr.msk.f32.vlgmr.msra.gmra.mrb[94].mxu1 %vm108_vm2, %v13138_v16  ;;  %13155 = vmatpush1.msk.msra.mxu0 %vm118_vm1, %v7396_v19  ;;  %v7745_v49 = vsel %vm2048_vm9, %v7739_v25, %v7741_v42 }
 0x80f   :  { %13158 = vmatpush1.msk.msra.mxu1 %vm118_vm1, %v7394_v41  ;;  %7477 = vmatprep.mubr.f32.mxu0 %v16196_v53 }
 0x810   :  { %7548 = vmatprep.mubr.f32.mxu1 %v16196_v53 }
 0x811   :  { %13156 = vmatmul.mubr.msk.f32.vlgmr.msra.gmra.mrb[96].mxu0 %vm108_vm2, %v13153_v61  ;;  %v7377_v24 = vpop.permute.xlu1 %7376  ;;  %v7375_v26 = vpop.permute.xlu0 %7374 }
 0x812   :  { %13159 = vmatmul.mubr.msk.f32.vlgmr.msra.gmra.mrb[96].mxu1 %vm108_vm2, %v13153_v61  ;;  %v7381_v27 = vsel %vm1797_vm8, %v7375_v26, %v7377_v24  ;;  %7634 = vmatprep.mubr.f32.mxu0 %v16196_v53 }
 0x813   :  { %13160 = vmatprep.subr.msk.mxu0 %vm118_vm1, %v7381_v27  ;;  %7705 = vmatprep.mubr.f32.mxu1 %v16196_v53  ;;  %v16200_v27 = vld [vmem:[#allocation14_spill] sm:$0xff] }
 0x815   :  { %v7379_v33 = vpop.permute.xlu1 %7378  ;;  %v7373_v2 = vpop.permute.xlu0 %7372 }
 0x816   :  { %v7380_v47 = vsel %vm1797_vm8, %v7377_v24, %v7379_v33  ;;  %v7382_v55 = vsel %vm1797_vm8, %v7373_v2, %v7375_v26  ;;  %v7383_v57 = vsel %vm1797_vm8, %v7379_v33, %v7373_v2  ;;  %v16201_v2 = vld [vmem:[#allocation16_spill] sm:$0xff] }
 0x817   :  { %13161 = vmatpush1.msk.msra.mxu0 %vm118_vm1, %v7382_v55  ;;  %13163 = vmatprep.subr.msk.mxu1 %vm118_vm1, %v7383_v57  ;;  %v16202_v55 = vld [vmem:[#allocation15_spill] sm:$0xff] }
 0x818   :  { %13164 = vmatpush1.msk.msra.mxu1 %vm118_vm1, %v7380_v47  ;;  %13168 = vmatprep.subr.msk.mxu0 %vm118_vm1, %v7745_v49 }
 0x819   :  { %13162 = vmatmul.mubr.msk.f32.vlgmr.msra.gmra.mrb[96].mxu0 %vm108_vm2, %v13152_v32  ;;  %v7743_v13 = vpop.permute.xlu1 %7742  ;;  %v7737_v12 = vpop.permute.xlu0 %7736 }
 0x81a   :  { %v7744_v52 = vsel %vm2048_vm9, %v7741_v42, %v7743_v13  ;;  %13165 = vmatmul.mubr.msk.f32.vlgmr.msra.gmra.mrb[96].mxu1 %vm108_vm2, %v13152_v32  ;;  %v7746_v7 = vsel %vm2048_vm9, %v7737_v12, %v7739_v25  ;;  %7827 = vmatprep.mubr.f32.mxu0 %v16196_v53  ;;  %v7747_v60 = vsel %vm2048_vm9, %v7743_v13, %v7737_v12  ;;  %v13166_v25 = vld [vmem:[%s16130_s16 + $0x20] sm:$0xf]  ;;  %v16203_v32 = vld [vmem:[#allocation17_spill] sm:$0xff] }
 0x81b   :  { %13169 = vmatpush1.msk.msra.mxu0 %vm118_vm1, %v7746_v7  ;;  %13171 = vmatprep.subr.msk.mxu1 %vm118_vm1, %v7747_v60  ;;  %v16204_v13 = vld [vmem:[#allocation18_spill] sm:$0xff]  ;;  %v16205_v60 = vld [vmem:[#allocation19_spill] sm:$0xff] }
 0x81c   :  { %13172 = vmatpush1.msk.msra.mxu1 %vm118_vm1, %v7744_v52  ;;  %7898 = vmatprep.mubr.f32.mxu1 %v16196_v53 }
 0x81d   :  { %13170 = vmatmul.mubr.msk.f32.vlgmr.msra.gmra.mrb[98].mxu0 %vm108_vm2, %v13167_v46  ;;  %v7727_v48 = vpop.permute.xlu1 %7726  ;;  %v7725_v31 = vpop.permute.xlu0 %7724 }
 0x81e   :  { %13173 = vmatmul.mubr.msk.f32.vlgmr.msra.gmra.mrb[98].mxu1 %vm108_vm2, %v13167_v46  ;;  %v7731_v50 = vsel %vm2048_vm9, %v7725_v31, %v7727_v48  ;;  %7984 = vmatprep.mubr.f32.mxu0 %v16196_v53 }
 0x81f   :  { %13174 = vmatprep.subr.msk.mxu0 %vm118_vm1, %v7731_v50  ;;  %8055 = vmatprep.mubr.f32.mxu1 %v16196_v53 }
 0x821   :  { %v7729_v16 = vpop.permute.xlu1 %7728  ;;  %v7723_v54 = vpop.permute.xlu0 %7722 }
 0x822   :  { %v7730_v6 = vsel %vm2048_vm9, %v7727_v48, %v7729_v16  ;;  %v7732_v19 = vsel %vm2048_vm9, %v7723_v54, %v7725_v31  ;;  %v7733_v42 = vsel %vm2048_vm9, %v7729_v16, %v7723_v54 }
 0x823   :  { %13175 = vmatpush1.msk.msra.mxu0 %vm118_vm1, %v7732_v19  ;;  %13177 = vmatprep.subr.msk.mxu1 %vm118_vm1, %v7733_v42  ;;  %v2317_v19 = vld [vmem:[%s16126_s4] sm:$0xff] }
 0x824   :  { %13178 = vmatpush1.msk.msra.mxu1 %vm118_vm1, %v7730_v6  ;;  %v8070_v42 = vld [vmem:[%s16131_s18] sm:$0xf] }
 0x825   :  { %13176 = vmatmul.mubr.msk.f32.vlgmr.msra.gmra.mrb[98].mxu0 %vm108_vm2, %v13166_v25 }
 0x826   :  { %13179 = vmatmul.mubr.msk.f32.vlgmr.msra.gmra.mrb[98].mxu1 %vm108_vm2, %v13166_v25  ;;  %8197 = vmatprep.mubr.f32.mxu0 %v16196_v53 }
 0x827   :  { %8268 = vmatprep.mubr.f32.mxu1 %v16196_v53 }
 0x832   :  { %v2298_v41 = vpop.permute.xlu1 %2297  ;;  %v2293_v61 = vpop.permute.xlu0 %2292 }
 0x833   :  { %v15207_v24 = vadd.f32 %v2298_v41, %v14273_v21  ;;  %v15210_v26 = vadd.f32 %v2298_v41, %v14277_v43  ;;  %v15213_v33 = vadd.f32 %v2293_v61, %v16200_v27  ;;  %v15216_v47 = vadd.f32 %v2293_v61, %v16201_v2 }
 0x834   :  { %v15219_v57 = vadd.f32 %v2293_v61, %v16202_v55  ;;  %v15222_v49 = vadd.f32 %v2293_v61, %v16203_v32  ;;  %v15225_v12 = vadd.f32 %v2298_v41, %v16204_v13  ;;  %v15234_v46 = vadd.f32 %v2298_v41, %v16205_v60 }
 0x835   :  { %v2331_v21 = vadd.f32 %v15210_v26, %v15207_v24  ;;  %v2322_v43 = vsel %vm2321_vm12, %v15213_v33, 0.0  ;;  %v2323_v52 = vsel %vm2321_vm12, %v15216_v47, 0.0 }
 0x836   :  { %v2324_v7 = vadd.f32 %v2323_v52, %v2322_v43  ;;  %v2325_v31 = vsel %vm2321_vm12, %v15219_v57, 0.0  ;;  %v2327_v54 = vsel %vm2321_vm12, %v15222_v49, 0.0 }
 0x837   :  { %v2332_v48 = vadd.f32 %v2331_v21, %v15225_v12 }
 0x838   :  { %v2326_v50 = vadd.f32 %v2325_v31, %v2324_v7 }
 0x839   :  { %v2333_v16 = vadd.f32 %v2332_v48, %v15234_v46 }
 0x83a   :  { %v2328_v6 = vadd.f32 %v2327_v54, %v2326_v50 }
 0x83b   :  { %2334 = vadd.xlane.f32.xlu0 %v2333_v16 }
 0x83c   :  { %2329 = vadd.xlane.f32.xlu1 %v2328_v6 }
 0x84d   :  { %2419 = vperm.xlu1 %13485, %v2317_v19  }
 0x851   :  { %8073 = vperm.xlu1 %13485, %v8070_v42  }
 0x897   :  { %v5218_v25 = vpop.f32.mrb[82].mxu0 }
 0x898   :  { %v5220_v41 = vpop.f32.mrb[83].mxu0  ;;  %v5289_v61 = vpop.f32.mrb[82].mxu1  ;;  %v5294_v2 = vmul.f32 %v5218_v25, %v14060_v58 }
 0x899   :  { %v5291_v27 = vpop.f32.mrb[83].mxu1  ;;  %v5295_v55 = vmul.f32 %v5220_v41, %v14072_v0  ;;  %v5296_v32 = vmul.f32 %v5289_v61, %v14063_v59 }
 0x89a   :  { %v5297_v21 = vmul.f32 %v5291_v27, %v14075_v1 }
 0x8a3   :  { %v5564_v13 = vpop.f32.mrb[84].mxu0 }
 0x8a4   :  { %v5640_v43 = vmul.f32 %v5564_v13, %v14066_v62  ;;  %v5566_v52 = vpop.f32.mrb[85].mxu0  ;;  %v5635_v7 = vpop.f32.mrb[84].mxu1 }
 0x8a5   :  { %v5641_v60 = vmul.f32 %v5566_v52, %v14078_v3  ;;  %v5642_v48 = vmul.f32 %v5635_v7, %v14069_v63  ;;  %v5637_v31 = vpop.f32.mrb[85].mxu1 }
 0x8a6   :  { %v5644_v50 = vadd.f32 %v5640_v43, %v5294_v2  ;;  %v5643_v16 = vmul.f32 %v5637_v31, %v14081_v4 }
 0x8a7   :  { %v5645_v54 = vadd.f32 %v5641_v60, %v5295_v55  ;;  %v5646_v6 = vadd.f32 %v5642_v48, %v5296_v32  ;;  %v16206_v48 = vld [vmem:[#allocation9_spill] sm:$0xff] }
 0x8a8   :  { %v5647_v19 = vadd.f32 %v5643_v16, %v5297_v21 }
 0x8af   :  { %v5914_v42 = vpop.f32.mrb[86].mxu0 }
 0x8b0   :  { %v5990_v25 = vmul.f32 %v5914_v42, %v14103_v38  ;;  %v5916_v41 = vpop.f32.mrb[87].mxu0  ;;  %v5985_v61 = vpop.f32.mrb[86].mxu1 }
 0x8b1   :  { %v5991_v27 = vmul.f32 %v5916_v41, %v14109_v44  ;;  %v5992_v13 = vmul.f32 %v5985_v61, %v14106_v39  ;;  %v5987_v1 = vpop.f32.mrb[87].mxu1 }
 0x8b2   :  { %v5994_v52 = vadd.f32 %v5990_v25, %v5644_v50  ;;  %v5993_v7 = vmul.f32 %v5987_v1, %v14112_v45 }
 0x8b3   :  { %v5995_v63 = vadd.f32 %v5991_v27, %v5645_v54  ;;  %v5996_v2 = vadd.f32 %v5992_v13, %v5646_v6 }
 0x8b4   :  { %v5997_v43 = vadd.f32 %v5993_v7, %v5647_v19 }
 0x8bb   :  { %v6264_v31 = vpop.f32.mrb[88].mxu0 }
 0x8bc   :  { %v6340_v55 = vmul.f32 %v6264_v31, %v14136_v51  ;;  %v6266_v32 = vpop.f32.mrb[89].mxu0  ;;  %v6335_v21 = vpop.f32.mrb[88].mxu1 }
 0x8bd   :  { %v6341_v60 = vmul.f32 %v6266_v32, %v14144_v37  ;;  %v6342_v16 = vmul.f32 %v6335_v21, %v16206_v48  ;;  %v6337_v42 = vpop.f32.mrb[89].mxu1 }
 0x8be   :  { %v6343_v41 = vmul.f32 %v6337_v42, %v14147_v40  ;;  %v6344_v61 = vadd.f32 %v6340_v55, %v5994_v52 }
 0x8bf   :  { %v6345_v39 = vadd.f32 %v6341_v60, %v5995_v63  ;;  %v6346_v50 = vadd.f32 %v6342_v16, %v5996_v2 }
 0x8c0   :  { %v6347_v25 = vadd.f32 %v6343_v41, %v5997_v43 }
 0x8c8   :  { %v2335_v1 = vpop.xlane.xlu0 %2334  ;;  %v6590_v54 = vpop.f32.mrb[90].mxu0 }
 0x8c9   :  { %v2347_v6 = vmul.f32 0.001953125, %v2335_v1  ;;  %v2330_v19 = vpop.xlane.xlu1 %2329  ;;  %v6666_v27 = vadd.f32 %v6590_v54, %v6344_v61  ;;  %v6592_v13 = vpop.f32.mrb[91].mxu0 }
 0x8ca   :  { %v2346_v7 = vmul.f32 0.001953125, %v2330_v19  ;;  %v6667_v31 = vadd.f32 %v6592_v13, %v6345_v39  ;;  %v6661_v51 = vpop.f32.mrb[90].mxu1 }
 0x8cb   :  { %v15265_v32 = vsub.f32 %v15207_v24, %v2347_v6  ;;  %v15268_v21 = vsub.f32 %v15210_v26, %v2347_v6  ;;  %v15271_v52 = vsub.f32 %v15225_v12, %v2347_v6  ;;  %v6663_v63 = vpop.f32.mrb[91].mxu1  ;;  %v15283_v39 = vsub.f32 %v15234_v46, %v2347_v6 }
 0x8cc   :  { %v15274_v2 = vsub.f32 %v15213_v33, %v2346_v7  ;;  %v15277_v43 = vsub.f32 %v15216_v47, %v2346_v7  ;;  %v15280_v55 = vsub.f32 %v15219_v57, %v2346_v7  ;;  %v15290_v12 = vsub.f32 %v15222_v49, %v2346_v7 }
 0x8cd   :  { %v2365_v24 = vmul.f32 %v15265_v32, %v15265_v32  ;;  %v2366_v26 = vmul.f32 %v15268_v21, %v15268_v21  ;;  %v2367_v46 = vmul.f32 %v15271_v52, %v15271_v52  ;;  %v6668_v61 = vadd.f32 %v6661_v51, %v6346_v50 }
 0x8ce   :  { %v2361_v60 = vmul.f32 %v15274_v2, %v15274_v2  ;;  %v2362_v16 = vmul.f32 %v15277_v43, %v15277_v43  ;;  %v2363_v42 = vmul.f32 %v15280_v55, %v15280_v55  ;;  %v6669_v1 = vadd.f32 %v6663_v63, %v6347_v25 }
 0x8cf   :  { %v2382_v41 = vadd.f32 %v2366_v26, %v2365_v24  ;;  %v2368_v19 = vmul.f32 %v15283_v39, %v15283_v39  ;;  %v2364_v40 = vmul.f32 %v15290_v12, %v15290_v12 }
 0x8d0   :  { %v2373_v54 = vsel %vm2321_vm12, %v2361_v60, 0.0  ;;  %v2374_v6 = vsel %vm2321_vm12, %v2362_v16, 0.0  ;;  %v2376_v48 = vsel %vm2321_vm12, %v2363_v42, 0.0 }
 0x8d1   :  { %v2383_v13 = vadd.f32 %v2382_v41, %v2367_v46  ;;  %v2375_v7 = vadd.f32 %v2374_v6, %v2373_v54  ;;  %v2378_v63 = vsel %vm2321_vm12, %v2364_v40, 0.0 }
 0x8d3   :  { %v2384_v37 = vadd.f32 %v2383_v13, %v2368_v19  ;;  %v2377_v45 = vadd.f32 %v2376_v48, %v2375_v7 }
 0x8d4   :  { %v6936_v44 = vpop.f32.mrb[92].mxu0 }
 0x8d5   :  { %2385 = vadd.xlane.f32.xlu0 %v2384_v37  ;;  %v7012_v51 = vmul.f32 %v6936_v44, %v14165_v10  ;;  %v6938_v50 = vpop.f32.mrb[93].mxu0  ;;  %v7007_v25 = vpop.f32.mrb[92].mxu1  ;;  %v2379_v16 = vadd.f32 %v2378_v63, %v2377_v45 }
 0x8d6   :  { %v7013_v24 = vmul.f32 %v6938_v50, %v14171_v34  ;;  %v7014_v26 = vmul.f32 %v7007_v25, %v14168_v11  ;;  %v7009_v60 = vpop.f32.mrb[93].mxu1 }
 0x8d7   :  { %v7016_v46 = vadd.f32 %v7012_v51, %v6666_v27  ;;  %v7015_v41 = vmul.f32 %v7009_v60, %v14174_v35 }
 0x8d8   :  { %v7017_v42 = vadd.f32 %v7013_v24, %v6667_v31  ;;  %v7018_v54 = vadd.f32 %v7014_v26, %v6668_v61  ;;  %v2319_v31 = vld [vmem:[%s16123_s5] sm:$0xff] }
 0x8d9   :  { %2380 = vadd.xlane.f32.xlu0 %v2379_v16  ;;  %v7019_v48 = vadd.f32 %v7015_v41, %v6669_v1 }
 0x8e0   :  { %v7286_v37 = vpop.f32.mrb[94].mxu0 }
 0x8e1   :  { %v7362_v44 = vmul.f32 %v7286_v37, %v14190_v18  ;;  %v7288_v6 = vpop.f32.mrb[95].mxu0  ;;  %v7357_v19 = vpop.f32.mrb[94].mxu1 }
 0x8e2   :  { %v7363_v40 = vmul.f32 %v7288_v6, %v14198_v28  ;;  %v7364_v13 = vmul.f32 %v7357_v19, %v14193_v23  ;;  %v7359_v7 = vpop.f32.mrb[95].mxu1 }
 0x8e3   :  { %v7366_v50 = vadd.f32 %v7362_v44, %v7016_v46  ;;  %v7365_v45 = vmul.f32 %v7359_v7, %v16199_v56 }
 0x8e4   :  { %v7367_v27 = vadd.f32 %v7363_v40, %v7017_v42  ;;  %v7368_v51 = vadd.f32 %v7364_v13, %v7018_v54 }
 0x8e5   :  { %v7369_v25 = vadd.f32 %v7365_v45, %v7019_v48 }
 0x8ec   :  { %v7636_v61 = vpop.f32.mrb[96].mxu0 }
 0x8ed   :  { %v7712_v1 = vmul.f32 %v7636_v61, %v14217_v22  ;;  %v7638_v63 = vpop.f32.mrb[97].mxu0  ;;  %v7707_v24 = vpop.f32.mrb[96].mxu1 }
 0x8ee   :  { %v7713_v26 = vmul.f32 %v7638_v63, %v14225_v14  ;;  %v7714_v60 = vmul.f32 %v7707_v24, %v14220_v17  ;;  %v7709_v16 = vpop.f32.mrb[97].mxu1 }
 0x8ef   :  { %2445 = vperm.xlu0 %13484, %v2319_v31   ;;  %v7716_v46 = vadd.f32 %v7712_v1, %v7366_v50  ;;  %v7715_v41 = vmul.f32 %v7709_v16, %v14228_v15 }
 0x8f0   :  { %v7717_v42 = vadd.f32 %v7713_v26, %v7367_v27  ;;  %v7718_v54 = vadd.f32 %v7714_v60, %v7368_v51  ;;  %v2420_v60 = vpop.permute.xlu1 %2419 }
 0x8f1   :  { %v7719_v48 = vadd.f32 %v7715_v41, %v7369_v25 }
 0x8f8   :  { %v7986_v37 = vpop.f32.mrb[98].mxu0 }
 0x8f9   :  { %v8062_v44 = vmul.f32 %v7986_v37, %v14244_v20  ;;  %v7988_v6 = vpop.f32.mrb[99].mxu0  ;;  %v8057_v19 = vpop.f32.mrb[98].mxu1 }
 0x8fa   :  { %v8063_v40 = vmul.f32 %v7988_v6, %v14252_v8  ;;  %v8064_v13 = vmul.f32 %v8057_v19, %v14247_v30  ;;  %v8059_v7 = vpop.f32.mrb[99].mxu1 }
 0x8fb   :  { %v15326_v45 = vadd.f32 %v8062_v44, %v7716_v46  ;;  %v8065_v31 = vmul.f32 %v8059_v7, %v14255_v36  ;;  %v2425_v46 = vrot.slane %v2420_v60, 4 }
 0x8fc   :  { %v15329_v50 = vadd.f32 %v8063_v40, %v7717_v42  ;;  %v15331_v61 = vadd.f32 %v8064_v13, %v7718_v54 }
 0x8fd   :  { %v15333_v27 = vadd.f32 %v8065_v31, %v7719_v48  ;;  %v2427_v6 = vsel %vm118_vm1, %v2425_v46, %v14693_v5 }
 0x962   :  { %v2386_v51 = vpop.xlane.xlu0 %2385 }
 0x963   :  { %v2397_v25 = vmul.f32 0.001953125, %v2386_v51 }
 0x965   :  { %v2400_v1 = vadd.f32 1e-05, %v2397_v25 }
 0x966   :  { %v2381_v63 = vpop.xlane.xlu0 %2380 }
 0x967   :  { %13498 = vrsqrt.f32 %v2400_v1  ;;  %v2396_v24 = vmul.f32 0.001953125, %v2381_v63 }
 0x969   :  { %v2399_v26 = vadd.f32 1e-05, %v2396_v24 }
 0x96b   :  { %13500 = vrsqrt.f32 %v2399_v26 }
 0x96e   :  { %v2446_v16 = vpop.permute.xlu0 %2445 }
 0x96f   :  { %v2451_v37 = vrot.slane %v2446_v16, 4 }
 0x971   :  { %v13499_v41 = vpop.eup %13498  ;;  %v2453_v51 = vsel %vm118_vm1, %v2451_v37, %v14695_v29 }
 0x972   :  { %v2409_v42 = vmul.f32 %v13499_v41, %v15265_v32  ;;  %v2410_v54 = vmul.f32 %v13499_v41, %v15268_v21  ;;  %v2411_v48 = vmul.f32 %v13499_v41, %v15271_v52  ;;  %v2412_v44 = vmul.f32 %v13499_v41, %v15283_v39 }
 0x974   :  { %v2435_v19 = vmul.f32 %v2427_v6, %v2409_v42  ;;  %v2436_v40 = vmul.f32 %v2427_v6, %v2410_v54  ;;  %v2437_v13 = vmul.f32 %v2427_v6, %v2411_v48  ;;  %v2438_v7 = vmul.f32 %v2427_v6, %v2412_v44 }
 0x975   :  { %v13501_v31 = vpop.eup %13500 }
 0x976   :  { %v2405_v25 = vmul.f32 %v13501_v31, %v15274_v2  ;;  %v2406_v32 = vmul.f32 %v13501_v31, %v15277_v43  ;;  %v2407_v21 = vmul.f32 %v13501_v31, %v15280_v55  ;;  %v2408_v52 = vmul.f32 %v13501_v31, %v15290_v12 }
 0x977   :  { %v2461_v39 = vadd.f32 %v2453_v51, %v2435_v19  ;;  %v2462_v1 = vadd.f32 %v2453_v51, %v2436_v40  ;;  %v2463_v63 = vadd.f32 %v2453_v51, %v2437_v13  ;;  %v2464_v5 = vadd.f32 %v2453_v51, %v2438_v7 }
 0x978   :  { %v2431_v24 = vmul.f32 %v2425_v46, %v2405_v25  ;;  %v2432_v26 = vmul.f32 %v2425_v46, %v2406_v32  ;;  %v2433_v60 = vmul.f32 %v2425_v46, %v2407_v21  ;;  %v2434_v16 = vmul.f32 %v2425_v46, %v2408_v52 }
 0x979   :  { %v2473_v41 = vrot.slane %v2461_v39, 4  ;;  %v2474_v42 = vrot.slane %v2462_v1, 4  ;;  %v2475_v54 = vrot.slane %v2463_v63, 4  ;;  %v2476_v29 = vrot.slane %v2464_v5, 4 }
 0x97a   :  { %v2457_v48 = vadd.f32 %v2451_v37, %v2431_v24  ;;  %v2458_v2 = vadd.f32 %v2451_v37, %v2432_v26  ;;  %v2459_v44 = vadd.f32 %v2451_v37, %v2433_v60  ;;  %v2460_v43 = vadd.f32 %v2451_v37, %v2434_v16  ;;  %v8093_v24 = vld [vmem:[%s16132_s20] sm:$0xf] }
 0x97c   :  { %v2481_v6 = vadd.f32 %v2473_v41, %v2457_v48  ;;  %v2482_v55 = vadd.f32 %v2474_v42, %v2458_v2  ;;  %v2483_v36 = vadd.f32 %v2475_v54, %v2459_v44  ;;  %v2484_v12 = vadd.f32 %v2476_v29, %v2460_v43  ;;  %v8080_v2 = vld [vmem:[%s16133_s19] sm:$0xf] }
 0x97e   :  { %v2485_v19 = vadd.f32 %v2481_v6, %v2461_v39  ;;  %v2486_v40 = vadd.f32 %v2482_v55, %v2462_v1  ;;  %v2487_v13 = vadd.f32 %v2483_v36, %v2463_v63  ;;  %v2488_v7 = vadd.f32 %v2484_v12, %v2464_v5  ;;  %v8074_v36 = vpop.permute.xlu1 %8073 }
 0x97f   :  { %v15380_v25 = vadd.f32 %v8074_v36, %v15331_v61  ;;  %v15387_v32 = vadd.f32 %v8074_v36, %v15326_v45  ;;  %v15390_v21 = vadd.f32 %v8074_v36, %v15329_v50  ;;  %v15397_v61 = vadd.f32 %v8074_v36, %v15333_v27 }
 0x980   :  { %v15347_v31 = vrot.slane %v2485_v19, 4  ;;  %v15349_v51 = vrot.slane %v2486_v40, 4  ;;  %v15355_v46 = vrot.slane %v2487_v13, 4  ;;  %v15357_v37 = vrot.slane %v2488_v7, 4 }
 0x982   :  { %8108 = vrot.lane.b32.xlu0 %v15349_v51, %s13505_s2  ;;  %8106 = vrot.lane.b32.xlu1 %v15347_v31, %s13505_s2 }
 0x986   :  { %8110 = vrot.lane.b32.xlu0 %v15355_v46, %s13505_s2  ;;  %8112 = vrot.lane.b32.xlu1 %v15357_v37, %s13505_s2 }
 0x98a   :  { %8083 = vrot.lane.b32.xlu0 %v15216_v47, %s13505_s2  ;;  %8081 = vrot.lane.b32.xlu1 %v15213_v33, %s13505_s2 }
 0x98e   :  { %8085 = vrot.lane.b32.xlu0 %v15219_v57, %s13505_s2  ;;  %8087 = vrot.lane.b32.xlu1 %v15222_v49, %s13505_s2 }
 0x992   :  { %8628 = vrot.lane.b32.xlu0 %v15349_v51, %s13506_s26  ;;  %8626 = vrot.lane.b32.xlu1 %v15347_v31, %s13506_s26 }
 0x996   :  { %8630 = vrot.lane.b32.xlu0 %v15355_v46, %s13506_s26  ;;  %8632 = vrot.lane.b32.xlu1 %v15357_v37, %s13506_s26 }
 0x99a   :  { %8437 = vrot.lane.b32.xlu0 %v15380_v25, %s13505_s2  ;;  %8612 = vrot.lane.b32.xlu1 %v15213_v33, %s13506_s26 }
 0x99e   :  { %8435 = vrot.lane.b32.xlu0 %v15390_v21, %s13505_s2  ;;  %8433 = vrot.lane.b32.xlu1 %v15387_v32, %s13505_s2 }
 0x9a2   :  { %8614 = vrot.lane.b32.xlu0 %v15216_v47, %s13506_s26  ;;  %8439 = vrot.lane.b32.xlu1 %v15397_v61, %s13505_s2 }
 0x9a6   :  { %8616 = vrot.lane.b32.xlu0 %v15219_v57, %s13506_s26  ;;  %8618 = vrot.lane.b32.xlu1 %v15222_v49, %s13506_s26 }
 0x9aa   :  { %8958 = vrot.lane.b32.xlu0 %v15380_v25, %s13506_s26  ;;  %8954 = vrot.lane.b32.xlu1 %v15387_v32, %s13506_s26 }
 0x9ae   :  { %9153 = vrot.lane.b32.xlu0 %v15349_v51, %s13507_s3  ;;  %9151 = vrot.lane.b32.xlu1 %v15347_v31, %s13507_s3 }
 0x9b2   :  { %8956 = vrot.lane.b32.xlu0 %v15390_v21, %s13506_s26  ;;  %9157 = vrot.lane.b32.xlu1 %v15357_v37, %s13507_s3 }
 0x9b6   :  { %9155 = vrot.lane.b32.xlu0 %v15355_v46, %s13507_s3  ;;  %8960 = vrot.lane.b32.xlu1 %v15397_v61, %s13506_s26 }
 0x9ba   :  { %9139 = vrot.lane.b32.xlu0 %v15216_v47, %s13507_s3  ;;  %9137 = vrot.lane.b32.xlu1 %v15213_v33, %s13507_s3 }
 0x9be   :  { %9141 = vrot.lane.b32.xlu0 %v15219_v57, %s13507_s3  ;;  %9143 = vrot.lane.b32.xlu1 %v15222_v49, %s13507_s3 }
 0x9c2   :  { %9483 = vrot.lane.b32.xlu0 %v15380_v25, %s13507_s3  ;;  %9479 = vrot.lane.b32.xlu1 %v15387_v32, %s13507_s3 }
 0x9c6   :  { %9481 = vrot.lane.b32.xlu0 %v15390_v21, %s13507_s3  ;;  %9676 = vrot.lane.b32.xlu1 %v15347_v31, %s13508_s8 }
 0x9ca   :  { %9678 = vrot.lane.b32.xlu0 %v15349_v51, %s13508_s8  ;;  %9485 = vrot.lane.b32.xlu1 %v15397_v61, %s13507_s3 }
 0x9ce   :  { %9680 = vrot.lane.b32.xlu0 %v15355_v46, %s13508_s8  ;;  %9682 = vrot.lane.b32.xlu1 %v15357_v37, %s13508_s8 }
 0x9d2   :  { %9664 = vrot.lane.b32.xlu0 %v15216_v47, %s13508_s8  ;;  %9662 = vrot.lane.b32.xlu1 %v15213_v33, %s13508_s8 }
 0x9d6   :  { %9666 = vrot.lane.b32.xlu0 %v15219_v57, %s13508_s8  ;;  %9668 = vrot.lane.b32.xlu1 %v15222_v49, %s13508_s8 }
 0x9da   :  { %10006 = vrot.lane.b32.xlu0 %v15390_v21, %s13508_s8  ;;  %10004 = vrot.lane.b32.xlu1 %v15387_v32, %s13508_s8 }
 0x9de   :  { %10008 = vrot.lane.b32.xlu0 %v15380_v25, %s13508_s8  ;;  %10010 = vrot.lane.b32.xlu1 %v15397_v61, %s13508_s8 }
 0x9e2   :  { %10686 = vrot.lane.b32.xlu0 %v15355_v46, %s13509_s27  ;;  %10684 = vrot.lane.b32.xlu1 %v15349_v51, %s13509_s27 }
 0x9e6   :  { %10688 = vrot.lane.b32.xlu0 %v15357_v37, %s13509_s27  ;;  %10682 = vrot.lane.b32.xlu1 %v15347_v31, %s13509_s27 }
 0x9ea   :  { %10672 = vrot.lane.b32.xlu0 %v15219_v57, %s13509_s27  ;;  %10670 = vrot.lane.b32.xlu1 %v15216_v47, %s13509_s27 }
 0x9ee   :  { %10674 = vrot.lane.b32.xlu0 %v15222_v49, %s13509_s27  ;;  %10668 = vrot.lane.b32.xlu1 %v15213_v33, %s13509_s27 }
 0x9f2   :  { %11014 = vrot.lane.b32.xlu0 %v15380_v25, %s13509_s27  ;;  %11010 = vrot.lane.b32.xlu1 %v15387_v32, %s13509_s27 }
 0x9f4   :  { %v8109_v45 = vpop.permute.xlu0 %8108  ;;  %v8107_v50 = vpop.permute.xlu1 %8106 }
 0x9f5   :  { %v8116_v27 = vsel %vm103_vm0, %v8107_v50, %v8109_v45 }
 0x9f6   :  { %11211 = vrot.lane.b32.xlu0 %v15355_v46, %s13510_s9  ;;  %11209 = vrot.lane.b32.xlu1 %v15349_v51, %s13510_s9 }
 0x9f7   :  { %13180 = vmatprep.subr.msk.mxu0 %vm118_vm1, %v8116_v27 }
 0x9f8   :  { %v8111_v52 = vpop.permute.xlu0 %8110  ;;  %v8113_v39 = vpop.permute.xlu1 %8112 }
 0x9f9   :  { %v8115_v1 = vsel %vm103_vm0, %v8109_v45, %v8111_v52  ;;  %v8117_v63 = vsel %vm103_vm0, %v8113_v39, %v8107_v50  ;;  %v8114_v5 = vsel %vm103_vm0, %v8111_v52, %v8113_v39  ;;  %v8432_v52 = vld [vmem:[%s16134_s21] sm:$0xf] }
 0x9fa   :  { %11213 = vrot.lane.b32.xlu0 %v15357_v37, %s13510_s9  ;;  %11207 = vrot.lane.b32.xlu1 %v15347_v31, %s13510_s9 }
 0x9fb   :  { %13181 = vmatpush1.msk.msra.mxu0 %vm118_vm1, %v8117_v63  ;;  %13183 = vmatprep.subr.msk.mxu1 %vm118_vm1, %v8114_v5 }
 0x9fc   :  { %13184 = vmatpush1.msk.msra.mxu1 %vm118_vm1, %v8115_v1  ;;  %v8084_v26 = vpop.permute.xlu0 %8083  ;;  %v8082_v60 = vpop.permute.xlu1 %8081  ;;  %13182 = vmatmul.mubr.msk.f32.vlgmr.msra.gmra.mrb[100].mxu0 %vm108_vm2, %v8093_v24 }
 0x9fd   :  { %v8091_v16 = vsel %vm103_vm0, %v8082_v60, %v8084_v26  ;;  %13185 = vmatmul.mubr.msk.f32.vlgmr.msra.gmra.mrb[100].mxu1 %vm108_vm2, %v8093_v24  ;;  %8354 = vmatprep.mubr.f32.mxu0 %v16196_v53 }
 0x9fe   :  { %11197 = vrot.lane.b32.xlu0 %v15219_v57, %s13510_s9  ;;  %11012 = vrot.lane.b32.xlu1 %v15390_v21, %s13509_s27 }
 0x9ff   :  { %13186 = vmatprep.subr.msk.mxu0 %vm118_vm1, %v8091_v16  ;;  %8425 = vmatprep.mubr.f32.mxu1 %v16196_v53 }
 0xa00   :  { %v8086_v41 = vpop.permute.xlu0 %8085  ;;  %v8088_v42 = vpop.permute.xlu1 %8087 }
 0xa01   :  { %v8090_v54 = vsel %vm103_vm0, %v8084_v26, %v8086_v41  ;;  %v8089_v29 = vsel %vm103_vm0, %v8086_v41, %v8088_v42  ;;  %v8092_v48 = vsel %vm103_vm0, %v8088_v42, %v8082_v60  ;;  %v13199_v42 = vld [vmem:[%s16132_s20 + $0x4] sm:$0xf] }
 0xa02   :  { %11016 = vrot.lane.b32.xlu0 %v15397_v61, %s13509_s27  ;;  %11195 = vrot.lane.b32.xlu1 %v15216_v47, %s13510_s9 }
 0xa03   :  { %13187 = vmatpush1.msk.msra.mxu0 %vm118_vm1, %v8092_v48  ;;  %13189 = vmatprep.subr.msk.mxu1 %vm118_vm1, %v8089_v29 }
 0xa04   :  { %13190 = vmatpush1.msk.msra.mxu1 %vm118_vm1, %v8090_v54  ;;  %v8629_v44 = vpop.permute.xlu0 %8628  ;;  %v8627_v43 = vpop.permute.xlu1 %8626  ;;  %13188 = vmatmul.mubr.msk.f32.vlgmr.msra.gmra.mrb[100].mxu0 %vm108_vm2, %v8080_v2 }
 0xa05   :  { %13191 = vmatmul.mubr.msk.f32.vlgmr.msra.gmra.mrb[100].mxu1 %vm108_vm2, %v8080_v2  ;;  %8524 = vmatprep.mubr.f32.mxu0 %v16196_v53  ;;  %v8636_v1 = vsel %vm343_vm3, %v8627_v43, %v8629_v44 }
 0xa06   :  { %11199 = vrot.lane.b32.xlu0 %v15222_v49, %s13510_s9  ;;  %11193 = vrot.lane.b32.xlu1 %v15213_v33, %s13510_s9 }
 0xa07   :  { %8595 = vmatprep.mubr.f32.mxu1 %v16196_v53 }
 0xa08   :  { %v8631_v6 = vpop.permute.xlu0 %8630  ;;  %v8633_v55 = vpop.permute.xlu1 %8632 }
 0xa09   :  { %v8634_v24 = vsel %vm343_vm3, %v8631_v6, %v8633_v55  ;;  %v8637_v26 = vsel %vm343_vm3, %v8633_v55, %v8627_v43  ;;  %v8635_v60 = vsel %vm343_vm3, %v8629_v44, %v8631_v6  ;;  %v13198_v6 = vld [vmem:[%s16133_s19 + $0x4] sm:$0xf] }
 0xa0a   :  { %11539 = vrot.lane.b32.xlu0 %v15380_v25, %s13510_s9  ;;  %11535 = vrot.lane.b32.xlu1 %v15387_v32, %s13510_s9 }
 0xa0c   :  { %v8438_v12 = vpop.permute.xlu0 %8437  ;;  %v8613_v19 = vpop.permute.xlu1 %8612 }
 0xa0e   :  { %11736 = vrot.lane.b32.xlu0 %v15355_v46, %s13511_s28  ;;  %11734 = vrot.lane.b32.xlu1 %v15349_v51, %s13511_s28 }
 0xa10   :  { %v8436_v40 = vpop.permute.xlu0 %8435  ;;  %v8434_v13 = vpop.permute.xlu1 %8433 }
 0xa11   :  { %v8443_v7 = vsel %vm103_vm0, %v8434_v13, %v8436_v40  ;;  %v8442_v39 = vsel %vm103_vm0, %v8436_v40, %v8438_v12 }
 0xa12   :  { %11738 = vrot.lane.b32.xlu0 %v15357_v37, %s13511_s28  ;;  %11537 = vrot.lane.b32.xlu1 %v15390_v21, %s13510_s9 }
 0xa13   :  { %13192 = vmatprep.subr.msk.mxu0 %vm118_vm1, %v8443_v7 }
 0xa14   :  { %v8615_v36 = vpop.permute.xlu0 %8614  ;;  %v8440_v45 = vpop.permute.xlu1 %8439 }
 0xa15   :  { %v8441_v50 = vsel %vm103_vm0, %v8438_v12, %v8440_v45  ;;  %v8444_v27 = vsel %vm103_vm0, %v8440_v45, %v8434_v13  ;;  %v8622_v16 = vsel %vm343_vm3, %v8613_v19, %v8615_v36 }
 0xa16   :  { %11541 = vrot.lane.b32.xlu0 %v15397_v61, %s13510_s9  ;;  %11732 = vrot.lane.b32.xlu1 %v15347_v31, %s13511_s28 }
 0xa17   :  { %13193 = vmatpush1.msk.msra.mxu0 %vm118_vm1, %v8444_v27  ;;  %13195 = vmatprep.subr.msk.mxu1 %vm118_vm1, %v8441_v50 }
 0xa18   :  { %13194 = vmatmul.mubr.msk.f32.vlgmr.msra.gmra.mrb[100].mxu0 %vm108_vm2, %v8432_v52  ;;  %13196 = vmatpush1.msk.msra.mxu1 %vm118_vm1, %v8442_v39  ;;  %v8617_v63 = vpop.permute.xlu0 %8616  ;;  %v8619_v5 = vpop.permute.xlu1 %8618 }
 0xa19   :  { %13200 = vmatprep.subr.msk.mxu0 %vm118_vm1, %v8636_v1  ;;  %13197 = vmatmul.mubr.msk.f32.vlgmr.msra.gmra.mrb[100].mxu1 %vm108_vm2, %v8432_v52  ;;  %v8620_v41 = vsel %vm343_vm3, %v8617_v63, %v8619_v5  ;;  %v8623_v54 = vsel %vm343_vm3, %v8619_v5, %v8613_v19  ;;  %v8621_v2 = vsel %vm343_vm3, %v8615_v36, %v8617_v63  ;;  %v13212_v52 = vld [vmem:[%s16134_s21 + $0x4] sm:$0xf] }
 0xa1a   :  { %13201 = vmatpush1.msk.msra.mxu0 %vm118_vm1, %v8637_v26  ;;  %13203 = vmatprep.subr.msk.mxu1 %vm118_vm1, %v8634_v24  ;;  %v13220_v26 = vld [vmem:[%s16132_s20 + $0x8] sm:$0xf] }
 0xa1b   :  { %13204 = vmatpush1.msk.msra.mxu1 %vm118_vm1, %v8635_v60  ;;  %13206 = vmatprep.subr.msk.mxu0 %vm118_vm1, %v8622_v16 }
 0xa1c   :  { %11722 = vrot.lane.b32.xlu0 %v15219_v57, %s13511_s28  ;;  %11720 = vrot.lane.b32.xlu1 %v15216_v47, %s13511_s28  ;;  %v8959_v29 = vpop.permute.xlu0 %8958  ;;  %v8955_v48 = vpop.permute.xlu1 %8954 }
 0xa1d   :  { %8717 = vmatprep.mubr.f32.mxu0 %v16196_v53  ;;  %13209 = vmatprep.subr.msk.mxu1 %vm118_vm1, %v8620_v41 }
 0xa1e   :  { %13202 = vmatmul.mubr.msk.f32.vlgmr.msra.gmra.mrb[102].mxu0 %vm108_vm2, %v13199_v42  ;;  %8788 = vmatprep.mubr.f32.mxu1 %v16196_v53 }
 0xa1f   :  { %13207 = vmatpush1.msk.msra.mxu0 %vm118_vm1, %v8623_v54  ;;  %13205 = vmatmul.mubr.msk.f32.vlgmr.msra.gmra.mrb[102].mxu1 %vm108_vm2, %v13199_v42 }
 0xa20   :  { %13210 = vmatpush1.msk.msra.mxu1 %vm118_vm1, %v8621_v2  ;;  %11724 = vrot.lane.b32.xlu0 %v15222_v49, %s13511_s28  ;;  %v9154_v44 = vpop.permute.xlu0 %9153  ;;  %v9152_v43 = vpop.permute.xlu1 %9151  ;;  %v13219_v2 = vld [vmem:[%s16133_s19 + $0x8] sm:$0xf] }
 0xa21   :  { %11718 = vrot.lane.b32.xlu1 %v15213_v33, %s13511_s28  ;;  %8874 = vmatprep.mubr.f32.mxu0 %v16196_v53  ;;  %v9161_v45 = vsel %vm594_vm4, %v9152_v43, %v9154_v44 }
 0xa22   :  { %8945 = vmatprep.mubr.f32.mxu1 %v16196_v53 }
 0xa24   :  { %12064 = vrot.lane.b32.xlu0 %v15380_v25, %s13511_s28  ;;  %v8957_v55 = vpop.permute.xlu0 %8956  ;;  %v9158_v12 = vpop.permute.xlu1 %9157 }
 0xa25   :  { %12060 = vrot.lane.b32.xlu1 %v15387_v32, %s13511_s28  ;;  %v8964_v19 = vsel %vm343_vm3, %v8955_v48, %v8957_v55  ;;  %v8963_v50 = vsel %vm343_vm3, %v8957_v55, %v8959_v29  ;;  %v9162_v63 = vsel %vm594_vm4, %v9158_v12, %v9152_v43 }
 0xa26   :  { %13208 = vmatmul.mubr.msk.f32.vlgmr.msra.gmra.mrb[102].mxu0 %vm108_vm2, %v13198_v6  ;;  %13213 = vmatprep.subr.msk.mxu0 %vm118_vm1, %v8964_v19 }
 0xa27   :  { %13211 = vmatmul.mubr.msk.f32.vlgmr.msra.gmra.mrb[102].mxu1 %vm108_vm2, %v13198_v6  ;;  %9045 = vmatprep.mubr.f32.mxu0 %v16196_v53 }
 0xa28   :  { %12261 = vrot.lane.b32.xlu0 %v15355_v46, %s16198_s29  ;;  %v9156_v40 = vpop.permute.xlu0 %9155  ;;  %v8961_v13 = vpop.permute.xlu1 %8960  ;;  %9116 = vmatprep.mubr.f32.mxu1 %v16196_v53 }
 0xa29   :  { %12062 = vrot.lane.b32.xlu1 %v15390_v21, %s13511_s28  ;;  %v8962_v7 = vsel %vm343_vm3, %v8959_v29, %v8961_v13  ;;  %v8965_v36 = vsel %vm343_vm3, %v8961_v13, %v8955_v48  ;;  %v9159_v27 = vsel %vm594_vm4, %v9156_v40, %v9158_v12  ;;  %v9160_v5 = vsel %vm594_vm4, %v9154_v44, %v9156_v40 }
 0xa2a   :  { %13214 = vmatpush1.msk.msra.mxu0 %vm118_vm1, %v8965_v36  ;;  %13216 = vmatprep.subr.msk.mxu1 %vm118_vm1, %v8962_v7  ;;  %v13233_v36 = vld [vmem:[%s16134_s21 + $0x8] sm:$0xf] }
 0xa2b   :  { %13217 = vmatpush1.msk.msra.mxu1 %vm118_vm1, %v8963_v50  ;;  %13221 = vmatprep.subr.msk.mxu0 %vm118_vm1, %v9161_v45 }
 0xa2c   :  { %12066 = vrot.lane.b32.xlu0 %v15397_v61, %s13511_s28  ;;  %v9140_v39 = vpop.permute.xlu0 %9139  ;;  %13224 = vmatprep.subr.msk.mxu1 %vm118_vm1, %v9159_v27  ;;  %v9138_v1 = vpop.permute.xlu1 %9137 }
 0xa2d   :  { %12259 = vrot.lane.b32.xlu1 %v15349_v51, %s16198_s29  ;;  %v9147_v24 = vsel %vm594_vm4, %v9138_v1, %v9140_v39 }
 0xa2e   :  { %13215 = vmatmul.mubr.msk.f32.vlgmr.msra.gmra.mrb[102].mxu0 %vm108_vm2, %v13212_v52 }
 0xa2f   :  { %13218 = vmatmul.mubr.msk.f32.vlgmr.msra.gmra.mrb[102].mxu1 %vm108_vm2, %v13212_v52  ;;  %13222 = vmatpush1.msk.msra.mxu0 %vm118_vm1, %v9162_v63  ;;  %v13241_v63 = vld [vmem:[%s16132_s20 + $0xc] sm:$0xf] }
 0xa30   :  { %13225 = vmatpush1.msk.msra.mxu1 %vm118_vm1, %v9160_v5  ;;  %12263 = vrot.lane.b32.xlu0 %v15357_v37, %s16198_s29  ;;  %v9142_v60 = vpop.permute.xlu0 %9141  ;;  %v9144_v16 = vpop.permute.xlu1 %9143 }
 0xa31   :  { %12257 = vrot.lane.b32.xlu1 %v15347_v31, %s16198_s29  ;;  %9242 = vmatprep.mubr.f32.mxu0 %v16196_v53  ;;  %v9148_v41 = vsel %vm594_vm4, %v9144_v16, %v9138_v1  ;;  %v9145_v42 = vsel %vm594_vm4, %v9142_v60, %v9144_v16  ;;  %v9146_v54 = vsel %vm594_vm4, %v9140_v39, %v9142_v60  ;;  %v12766_v1 = vld [vmem:[%s16135_s22] sm:$0xf] }
 0xa32   :  { %13227 = vmatprep.subr.msk.mxu0 %vm118_vm1, %v9147_v24  ;;  %13223 = vmatmul.mubr.msk.f32.vlgmr.msra.gmra.mrb[104].mxu0 %vm108_vm2, %v13220_v26 }
 0xa33   :  { %9313 = vmatprep.mubr.f32.mxu1 %v16196_v53  ;;  %13228 = vmatpush1.msk.msra.mxu0 %vm118_vm1, %v9148_v41 }
 0xa34   :  { %13226 = vmatmul.mubr.msk.f32.vlgmr.msra.gmra.mrb[104].mxu1 %vm108_vm2, %v13220_v26  ;;  %12247 = vrot.lane.b32.xlu0 %v15219_v57, %s16198_s29  ;;  %v9484_v29 = vpop.permute.xlu0 %9483  ;;  %v9480_v48 = vpop.permute.xlu1 %9479 }
 0xa35   :  { %12245 = vrot.lane.b32.xlu1 %v15216_v47, %s16198_s29  ;;  %13230 = vmatprep.subr.msk.mxu1 %vm118_vm1, %v9145_v42 }
 0xa36   :  { %13231 = vmatpush1.msk.msra.mxu1 %vm118_vm1, %v9146_v54  ;;  %9399 = vmatprep.mubr.f32.mxu0 %v16196_v53 }
 0xa37   :  { %9470 = vmatprep.mubr.f32.mxu1 %v16196_v53 }
 0xa38   :  { %12249 = vrot.lane.b32.xlu0 %v15222_v49, %s16198_s29  ;;  %v9482_v44 = vpop.permute.xlu0 %9481  ;;  %v9677_v43 = vpop.permute.xlu1 %9676 }
 0xa39   :  { %12243 = vrot.lane.b32.xlu1 %v15213_v33, %s16198_s29  ;;  %v9489_v6 = vsel %vm594_vm4, %v9480_v48, %v9482_v44  ;;  %v9488_v7 = vsel %vm594_vm4, %v9482_v44, %v9484_v29 }
 0xa3a   :  { %13229 = vmatmul.mubr.msk.f32.vlgmr.msra.gmra.mrb[104].mxu0 %vm108_vm2, %v13219_v2  ;;  %13234 = vmatprep.subr.msk.mxu0 %vm118_vm1, %v9489_v6 }
 0xa3b   :  { %9570 = vmatprep.mubr.f32.mxu0 %v16196_v53 }
 0xa3c   :  { %13232 = vmatmul.mubr.msk.f32.vlgmr.msra.gmra.mrb[104].mxu1 %vm108_vm2, %v13219_v2  ;;  %12589 = vrot.lane.b32.xlu0 %v15380_v25, %s16198_s29  ;;  %v9679_v55 = vpop.permute.xlu0 %9678  ;;  %v9486_v12 = vpop.permute.xlu1 %9485 }
 0xa3d   :  { %12587 = vrot.lane.b32.xlu1 %v15390_v21, %s16198_s29  ;;  %v9686_v19 = vsel %vm845_vm5, %v9677_v43, %v9679_v55  ;;  %v9487_v40 = vsel %vm594_vm4, %v9484_v29, %v9486_v12  ;;  %v9490_v13 = vsel %vm594_vm4, %v9486_v12, %v9480_v48  ;;  %9641 = vmatprep.mubr.f32.mxu1 %v16196_v53  ;;  %v13240_v29 = vld [vmem:[%s16133_s19 + $0xc] sm:$0xf] }
 0xa3e   :  { %13235 = vmatpush1.msk.msra.mxu0 %vm118_vm1, %v9490_v13  ;;  %13237 = vmatprep.subr.msk.mxu1 %vm118_vm1, %v9487_v40  ;;  %v13254_v40 = vld [vmem:[%s16134_s21 + $0xc] sm:$0xf] }
 0xa3f   :  { %13238 = vmatpush1.msk.msra.mxu1 %vm118_vm1, %v9488_v7  ;;  %13242 = vmatprep.subr.msk.mxu0 %vm118_vm1, %v9686_v19 }
 0xa40   :  { %12591 = vrot.lane.b32.xlu0 %v15397_v61, %s16198_s29  ;;  %v9681_v45 = vpop.permute.xlu0 %9680  ;;  %v9683_v50 = vpop.permute.xlu1 %9682 }
 0xa41   :  { %12585 = vrot.lane.b32.xlu1 %v15387_v32, %s16198_s29  ;;  %v9684_v27 = vsel %vm845_vm5, %v9681_v45, %v9683_v50  ;;  %v9687_v52 = vsel %vm845_vm5, %v9683_v50, %v9677_v43  ;;  %v9685_v39 = vsel %vm845_vm5, %v9679_v55, %v9681_v45 }
 0xa42   :  { %13236 = vmatmul.mubr.msk.f32.vlgmr.msra.gmra.mrb[104].mxu0 %vm108_vm2, %v13233_v36  ;;  %13245 = vmatprep.subr.msk.mxu1 %vm118_vm1, %v9684_v27 }
 0xa43   :  { %13243 = vmatpush1.msk.msra.mxu0 %vm118_vm1, %v9687_v52  ;;  %9767 = vmatprep.mubr.f32.mxu0 %v16196_v53 }
 0xa44   :  { %13239 = vmatmul.mubr.msk.f32.vlgmr.msra.gmra.mrb[104].mxu1 %vm108_vm2, %v13233_v36  ;;  %v9665_v5 = vpop.permute.xlu0 %9664  ;;  %v9663_v24 = vpop.permute.xlu1 %9662  ;;  %v13262_v36 = vld [vmem:[%s16132_s20 + $0x10] sm:$0xf] }
 0xa45   :  { %12769 = vperm.xlu1 %13485, %v12766_v1   ;;  %13246 = vmatpush1.msk.msra.mxu1 %vm118_vm1, %v9685_v39  ;;  %v9672_v26 = vsel %vm845_vm5, %v9663_v24, %v9665_v5 }
 0xa46   :  { %13244 = vmatmul.mubr.msk.f32.vlgmr.msra.gmra.mrb[106].mxu0 %vm108_vm2, %v13241_v63  ;;  %9838 = vmatprep.mubr.f32.mxu1 %v16196_v53 }
 0xa47   :  { %13248 = vmatprep.subr.msk.mxu0 %vm118_vm1, %v9672_v26  ;;  %9924 = vmatprep.mubr.f32.mxu0 %v16196_v53 }
 0xa48   :  { %13247 = vmatmul.mubr.msk.f32.vlgmr.msra.gmra.mrb[106].mxu1 %vm108_vm2, %v13241_v63  ;;  %v9667_v60 = vpop.permute.xlu0 %9666  ;;  %v9669_v16 = vpop.permute.xlu1 %9668 }
 0xa49   :  { %v9671_v41 = vsel %vm845_vm5, %v9665_v5, %v9667_v60  ;;  %v9670_v42 = vsel %vm845_vm5, %v9667_v60, %v9669_v16  ;;  %v9673_v54 = vsel %vm845_vm5, %v9669_v16, %v9663_v24  ;;  %9995 = vmatprep.mubr.f32.mxu1 %v16196_v53 }
 0xa4a   :  { %13249 = vmatpush1.msk.msra.mxu0 %vm118_vm1, %v9673_v54  ;;  %13251 = vmatprep.subr.msk.mxu1 %vm118_vm1, %v9670_v42  ;;  %v13282_v54 = vld [vmem:[%s16133_s19 + $0x14] sm:$0xf] }
 0xa4b   :  { %13252 = vmatpush1.msk.msra.mxu1 %vm118_vm1, %v9671_v41 }
 0xa4c   :  { %v10007_v48 = vpop.permute.xlu0 %10006  ;;  %v10005_v2 = vpop.permute.xlu1 %10004 }
 0xa4d   :  { %v10014_v44 = vsel %vm845_vm5, %v10005_v2, %v10007_v48 }
 0xa4e   :  { %13250 = vmatmul.mubr.msk.f32.vlgmr.msra.gmra.mrb[106].mxu0 %vm108_vm2, %v13240_v29  ;;  %13255 = vmatprep.subr.msk.mxu0 %vm118_vm1, %v10014_v44 }
 0xa4f   :  { %10095 = vmatprep.mubr.f32.mxu0 %v16196_v53 }
 0xa50   :  { %13253 = vmatmul.mubr.msk.f32.vlgmr.msra.gmra.mrb[106].mxu1 %vm108_vm2, %v13240_v29  ;;  %v10009_v43 = vpop.permute.xlu0 %10008  ;;  %v10011_v6 = vpop.permute.xlu1 %10010 }
 0xa51   :  { %v10013_v55 = vsel %vm845_vm5, %v10007_v48, %v10009_v43  ;;  %v10012_v12 = vsel %vm845_vm5, %v10009_v43, %v10011_v6  ;;  %v10015_v19 = vsel %vm845_vm5, %v10011_v6, %v10005_v2  ;;  %10166 = vmatprep.mubr.f32.mxu1 %v16196_v53 }
 0xa52   :  { %13256 = vmatpush1.msk.msra.mxu0 %vm118_vm1, %v10015_v19  ;;  %13258 = vmatprep.subr.msk.mxu1 %vm118_vm1, %v10012_v12 }
 0xa53   :  { %13259 = vmatpush1.msk.msra.mxu1 %vm118_vm1, %v10013_v55  ;;  %13263 = vmatprep.subr.msk.mxu0 %vm118_vm1, %v15349_v51 }
 0xa54   :  { %v10687_v13 = vpop.permute.xlu0 %10686  ;;  %13266 = vmatprep.subr.msk.mxu1 %vm118_vm1, %v15357_v37  ;;  %v10685_v7 = vpop.permute.xlu1 %10684 }
 0xa55   :  { %v10691_v37 = vsel %vm1295_vm6, %v10685_v7, %v10687_v13 }
 0xa56   :  { %13257 = vmatmul.mubr.msk.f32.vlgmr.msra.gmra.mrb[106].mxu0 %vm108_vm2, %v13254_v40 }
 0xa57   :  { %13264 = vmatpush1.msk.msra.mxu0 %vm118_vm1, %v15347_v31  ;;  %10264 = vmatprep.mubr.f32.mxu0 %v16196_v53 }
 0xa58   :  { %13260 = vmatmul.mubr.msk.f32.vlgmr.msra.gmra.mrb[106].mxu1 %vm108_vm2, %v13254_v40  ;;  %13269 = vmatprep.subr.msk.mxu0 %vm118_vm1, %v15216_v47  ;;  %v10689_v51 = vpop.permute.xlu0 %10688  ;;  %v10683_v45 = vpop.permute.xlu1 %10682  ;;  %v13296_v40 = vld [vmem:[%s16134_s21 + $0x14] sm:$0xf] }
 0xa59   :  { %13267 = vmatpush1.msk.msra.mxu1 %vm118_vm1, %v15355_v46  ;;  %10335 = vmatprep.mubr.f32.mxu1 %v16196_v53  ;;  %v10692_v52 = vsel %vm1295_vm6, %v10683_v45, %v10685_v7  ;;  %v10690_v1 = vsel %vm1295_vm6, %v10687_v13, %v10689_v51 }
 0xa5a   :  { %13272 = vmatprep.subr.msk.mxu1 %vm118_vm1, %v15222_v49  ;;  %13265 = vmatmul.mubr.msk.f32.vlgmr.msra.gmra.mrb[108].mxu0 %vm108_vm2, %v13262_v36 }
 0xa5b   :  { %13270 = vmatpush1.msk.msra.mxu0 %vm118_vm1, %v15213_v33  ;;  %10421 = vmatprep.mubr.f32.mxu0 %v16196_v53  ;;  %v13261_v33 = vld [vmem:[%s16133_s19 + $0x10] sm:$0xf] }
 0xa5c   :  { %13268 = vmatmul.mubr.msk.f32.vlgmr.msra.gmra.mrb[108].mxu1 %vm108_vm2, %v13262_v36  ;;  %13276 = vmatprep.subr.msk.mxu0 %vm118_vm1, %v15390_v21  ;;  %v10673_v47 = vpop.permute.xlu0 %10672  ;;  %v10671_v31 = vpop.permute.xlu1 %10670 }
 0xa5d   :  { %13273 = vmatpush1.msk.msra.mxu1 %vm118_vm1, %v15219_v57  ;;  %10492 = vmatprep.mubr.f32.mxu1 %v16196_v53  ;;  %v10677_v39 = vsel %vm1295_vm6, %v10671_v31, %v10673_v47 }
 0xa5e   :  { %13279 = vmatprep.subr.msk.mxu1 %vm118_vm1, %v15397_v61  ;;  %v10693_v61 = vsel %vm1295_vm6, %v10689_v51, %v10683_v45  ;;  %v13304_v45 = vld [vmem:[%s16132_s20 + $0x18] sm:$0xf] }
 0xa60   :  { %v10675_v49 = vpop.permute.xlu0 %10674  ;;  %v10669_v46 = vpop.permute.xlu1 %10668 }
 0xa61   :  { %v10679_v24 = vsel %vm1295_vm6, %v10675_v49, %v10669_v46  ;;  %v10678_v26 = vsel %vm1295_vm6, %v10669_v46, %v10671_v31  ;;  %v10676_v60 = vsel %vm1295_vm6, %v10673_v47, %v10675_v49 }
 0xa62   :  { %13271 = vmatmul.mubr.msk.f32.vlgmr.msra.gmra.mrb[108].mxu0 %vm108_vm2, %v13261_v33 }
 0xa63   :  { %13277 = vmatpush1.msk.msra.mxu0 %vm118_vm1, %v15387_v32  ;;  %10580 = vmatprep.mubr.f32.mxu0 %v16196_v53  ;;  %v13275_v32 = vld [vmem:[%s16134_s21 + $0x10] sm:$0xf] }
 0xa64   :  { %13274 = vmatmul.mubr.msk.f32.vlgmr.msra.gmra.mrb[108].mxu1 %vm108_vm2, %v13261_v33  ;;  %13284 = vmatprep.subr.msk.mxu0 %vm118_vm1, %v10691_v37  ;;  %v11015_v57 = vpop.permute.xlu0 %11014  ;;  %v11011_v21 = vpop.permute.xlu1 %11010 }
 0xa65   :  { %13280 = vmatpush1.msk.msra.mxu1 %vm118_vm1, %v15380_v25  ;;  %10651 = vmatprep.mubr.f32.mxu1 %v16196_v53  ;;  %v13283_v25 = vld [vmem:[%s16132_s20 + $0x14] sm:$0xf] }
 0xa66   :  { %13287 = vmatprep.subr.msk.mxu1 %vm118_vm1, %v10693_v61 }
 0xa68   :  { %v11212_v50 = vpop.permute.xlu0 %11211  ;;  %v11210_v27 = vpop.permute.xlu1 %11209 }
 0xa69   :  { %v11216_v6 = vsel %vm1546_vm7, %v11210_v27, %v11212_v50 }
 0xa6a   :  { %13278 = vmatmul.mubr.msk.f32.vlgmr.msra.gmra.mrb[108].mxu0 %vm108_vm2, %v13275_v32 }
 0xa6b   :  { %13285 = vmatpush1.msk.msra.mxu0 %vm118_vm1, %v10692_v52  ;;  %10773 = vmatprep.mubr.f32.mxu0 %v16196_v53 }
 0xa6c   :  { %13281 = vmatmul.mubr.msk.f32.vlgmr.msra.gmra.mrb[108].mxu1 %vm108_vm2, %v13275_v32  ;;  %13290 = vmatprep.subr.msk.mxu0 %vm118_vm1, %v10677_v39  ;;  %v11214_v63 = vpop.permute.xlu0 %11213  ;;  %v11208_v5 = vpop.permute.xlu1 %11207  ;;  %v13303_v32 = vld [vmem:[%s16133_s19 + $0x18] sm:$0xf] }
 0xa6d   :  { %13288 = vmatpush1.msk.msra.mxu1 %vm118_vm1, %v10690_v1  ;;  %10844 = vmatprep.mubr.f32.mxu1 %v16196_v53  ;;  %v11218_v19 = vsel %vm1546_vm7, %v11214_v63, %v11208_v5  ;;  %v11217_v36 = vsel %vm1546_vm7, %v11208_v5, %v11210_v27  ;;  %v11215_v47 = vsel %vm1546_vm7, %v11212_v50, %v11214_v63 }
 0xa6e   :  { %13293 = vmatprep.subr.msk.mxu1 %vm118_vm1, %v10679_v24  ;;  %13286 = vmatmul.mubr.msk.f32.vlgmr.msra.gmra.mrb[110].mxu0 %vm108_vm2, %v13283_v25 }
 0xa6f   :  { %13291 = vmatpush1.msk.msra.mxu0 %vm118_vm1, %v10678_v26  ;;  %10930 = vmatprep.mubr.f32.mxu0 %v16196_v53  ;;  %v13317_v26 = vld [vmem:[%s16134_s21 + $0x18] sm:$0xf] }
 0xa70   :  { %13289 = vmatmul.mubr.msk.f32.vlgmr.msra.gmra.mrb[110].mxu1 %vm108_vm2, %v13283_v25  ;;  %v11198_v16 = vpop.permute.xlu0 %11197  ;;  %v11013_v41 = vpop.permute.xlu1 %11012 }
 0xa71   :  { %13294 = vmatpush1.msk.msra.mxu1 %vm118_vm1, %v10676_v60  ;;  %v11019_v42 = vsel %vm1295_vm6, %v11013_v41, %v11015_v57  ;;  %11001 = vmatprep.mubr.f32.mxu1 %v16196_v53  ;;  %v11020_v29 = vsel %vm1295_vm6, %v11011_v21, %v11013_v41 }
 0xa72   :  { %13297 = vmatprep.subr.msk.mxu0 %vm118_vm1, %v11019_v42 }
 0xa74   :  { %v11017_v48 = vpop.permute.xlu0 %11016  ;;  %v11196_v2 = vpop.permute.xlu1 %11195 }
 0xa75   :  { %v11021_v44 = vsel %vm1295_vm6, %v11017_v48, %v11011_v21  ;;  %v11018_v43 = vsel %vm1295_vm6, %v11015_v57, %v11017_v48  ;;  %v11202_v51 = vsel %vm1546_vm7, %v11196_v2, %v11198_v16 }
 0xa76   :  { %13292 = vmatmul.mubr.msk.f32.vlgmr.msra.gmra.mrb[110].mxu0 %vm108_vm2, %v13282_v54  ;;  %13300 = vmatprep.subr.msk.mxu1 %vm118_vm1, %v11021_v44 }
 0xa77   :  { %13298 = vmatpush1.msk.msra.mxu0 %vm118_vm1, %v11020_v29  ;;  %11101 = vmatprep.mubr.f32.mxu0 %v16196_v53 }
 0xa78   :  { %13295 = vmatmul.mubr.msk.f32.vlgmr.msra.gmra.mrb[110].mxu1 %vm108_vm2, %v13282_v54  ;;  %13305 = vmatprep.subr.msk.mxu0 %vm118_vm1, %v11216_v6  ;;  %v11200_v55 = vpop.permute.xlu0 %11199  ;;  %v11194_v12 = vpop.permute.xlu1 %11193  ;;  %v13325_v54 = vld [vmem:[%s16132_s20 + $0x1c] sm:$0xf] }
 0xa79   :  { %13301 = vmatpush1.msk.msra.mxu1 %vm118_vm1, %v11018_v43  ;;  %11172 = vmatprep.mubr.f32.mxu1 %v16196_v53  ;;  %v11204_v49 = vsel %vm1546_vm7, %v11200_v55, %v11194_v12  ;;  %v11203_v46 = vsel %vm1546_vm7, %v11194_v12, %v11196_v2  ;;  %v11201_v37 = vsel %vm1546_vm7, %v11198_v16, %v11200_v55 }
 0xa7a   :  { %13308 = vmatprep.subr.msk.mxu1 %vm118_vm1, %v11218_v19  ;;  %v13324_v19 = vld [vmem:[%s16133_s19 + $0x1c] sm:$0xf] }
 0xa7c   :  { %v11540_v13 = vpop.permute.xlu0 %11539  ;;  %v11536_v7 = vpop.permute.xlu1 %11535 }
 0xa7e   :  { %13299 = vmatmul.mubr.msk.f32.vlgmr.msra.gmra.mrb[110].mxu0 %vm108_vm2, %v13296_v40 }
 0xa7f   :  { %13306 = vmatpush1.msk.msra.mxu0 %vm118_vm1, %v11217_v36  ;;  %11298 = vmatprep.mubr.f32.mxu0 %v16196_v53 }
 0xa80   :  { %13302 = vmatmul.mubr.msk.f32.vlgmr.msra.gmra.mrb[110].mxu1 %vm108_vm2, %v13296_v40  ;;  %13311 = vmatprep.subr.msk.mxu0 %vm118_vm1, %v11202_v51  ;;  %v11737_v31 = vpop.permute.xlu0 %11736  ;;  %v11735_v33 = vpop.permute.xlu1 %11734 }
 0xa81   :  { %13309 = vmatpush1.msk.msra.mxu1 %vm118_vm1, %v11215_v47  ;;  %11369 = vmatprep.mubr.f32.mxu1 %v16196_v53  ;;  %v11741_v1 = vsel %vm1797_vm8, %v11735_v33, %v11737_v31 }
 0xa82   :  { %13314 = vmatprep.subr.msk.mxu1 %vm118_vm1, %v11204_v49  ;;  %13307 = vmatmul.mubr.msk.f32.vlgmr.msra.gmra.mrb[112].mxu0 %vm108_vm2, %v13304_v45  ;;  %v13338_v49 = vld [vmem:[%s16134_s21 + $0x1c] sm:$0xf] }
 0xa83   :  { %13312 = vmatpush1.msk.msra.mxu0 %vm118_vm1, %v11203_v46  ;;  %11455 = vmatprep.mubr.f32.mxu0 %v16196_v53 }
 0xa84   :  { %13310 = vmatmul.mubr.msk.f32.vlgmr.msra.gmra.mrb[112].mxu1 %vm108_vm2, %v13304_v45  ;;  %v11739_v57 = vpop.permute.xlu0 %11738  ;;  %v11538_v21 = vpop.permute.xlu1 %11537 }
 0xa85   :  { %13315 = vmatpush1.msk.msra.mxu1 %vm118_vm1, %v11201_v37  ;;  %v11544_v61 = vsel %vm1546_vm7, %v11538_v21, %v11540_v13  ;;  %11526 = vmatprep.mubr.f32.mxu1 %v16196_v53  ;;  %v11545_v50 = vsel %vm1546_vm7, %v11536_v7, %v11538_v21  ;;  %v11740_v29 = vsel %vm1797_vm8, %v11737_v31, %v11739_v57 }
 0xa86   :  { %13318 = vmatprep.subr.msk.mxu0 %vm118_vm1, %v11544_v61  ;;  %v13346_v61 = vld [vmem:[%s16132_s20 + $0x20] sm:$0xf] }
 0xa88   :  { %v11542_v27 = vpop.permute.xlu0 %11541  ;;  %v11733_v52 = vpop.permute.xlu1 %11732 }
 0xa89   :  { %v11546_v39 = vsel %vm1546_vm7, %v11542_v27, %v11536_v7  ;;  %v11543_v25 = vsel %vm1546_vm7, %v11540_v13, %v11542_v27  ;;  %v11743_v63 = vsel %vm1797_vm8, %v11739_v57, %v11733_v52  ;;  %v11742_v60 = vsel %vm1797_vm8, %v11733_v52, %v11735_v33 }
 0xa8a   :  { %13313 = vmatmul.mubr.msk.f32.vlgmr.msra.gmra.mrb[112].mxu0 %vm108_vm2, %v13303_v32  ;;  %13321 = vmatprep.subr.msk.mxu1 %vm118_vm1, %v11546_v39 }
 0xa8b   :  { %13319 = vmatpush1.msk.msra.mxu0 %vm118_vm1, %v11545_v50  ;;  %11626 = vmatprep.mubr.f32.mxu0 %v16196_v53 }
 0xa8c   :  { %13316 = vmatmul.mubr.msk.f32.vlgmr.msra.gmra.mrb[112].mxu1 %vm108_vm2, %v13303_v32  ;;  %13326 = vmatprep.subr.msk.mxu0 %vm118_vm1, %v11741_v1 }
 0xa8d   :  { %13322 = vmatpush1.msk.msra.mxu1 %vm118_vm1, %v11543_v25  ;;  %11697 = vmatprep.mubr.f32.mxu1 %v16196_v53 }
 0xa8e   :  { %v11723_v5 = vpop.permute.xlu0 %11722  ;;  %13329 = vmatprep.subr.msk.mxu1 %vm118_vm1, %v11743_v63  ;;  %v11721_v24 = vpop.permute.xlu1 %11720 }
 0xa8f   :  { %v11727_v41 = vsel %vm1797_vm8, %v11721_v24, %v11723_v5 }
 0xa92   :  { %13320 = vmatmul.mubr.msk.f32.vlgmr.msra.gmra.mrb[112].mxu0 %vm108_vm2, %v13317_v26  ;;  %v11725_v16 = vpop.permute.xlu0 %11724 }
 0xa93   :  { %13327 = vmatpush1.msk.msra.mxu0 %vm118_vm1, %v11742_v60  ;;  %v11719_v42 = vpop.permute.xlu1 %11718  ;;  %11823 = vmatprep.mubr.f32.mxu0 %v16196_v53  ;;  %v11726_v6 = vsel %vm1797_vm8, %v11723_v5, %v11725_v16 }
 0xa94   :  { %13323 = vmatmul.mubr.msk.f32.vlgmr.msra.gmra.mrb[112].mxu1 %vm108_vm2, %v13317_v26  ;;  %13332 = vmatprep.subr.msk.mxu0 %vm118_vm1, %v11727_v41  ;;  %v11728_v48 = vsel %vm1797_vm8, %v11719_v42, %v11721_v24  ;;  %v11729_v2 = vsel %vm1797_vm8, %v11725_v16, %v11719_v42  ;;  %v13345_v24 = vld [vmem:[%s16133_s19 + $0x20] sm:$0xf] }
 0xa95   :  { %13330 = vmatpush1.msk.msra.mxu1 %vm118_vm1, %v11740_v29  ;;  %11894 = vmatprep.mubr.f32.mxu1 %v16196_v53  ;;  %v13359_v29 = vld [vmem:[%s16134_s21 + $0x20] sm:$0xf] }
 0xa96   :  { %13335 = vmatprep.subr.msk.mxu1 %vm118_vm1, %v11729_v2  ;;  %13328 = vmatmul.mubr.msk.f32.vlgmr.msra.gmra.mrb[114].mxu0 %vm108_vm2, %v13325_v54  ;;  %v12065_v44 = vpop.permute.xlu0 %12064 }
 0xa97   :  { %13333 = vmatpush1.msk.msra.mxu0 %vm118_vm1, %v11728_v48  ;;  %v12061_v43 = vpop.permute.xlu1 %12060  ;;  %11980 = vmatprep.mubr.f32.mxu0 %v16196_v53 }
 0xa98   :  { %13331 = vmatmul.mubr.msk.f32.vlgmr.msra.gmra.mrb[114].mxu1 %vm108_vm2, %v13325_v54 }
 0xa99   :  { %13336 = vmatpush1.msk.msra.mxu1 %vm118_vm1, %v11726_v6  ;;  %12051 = vmatprep.mubr.f32.mxu1 %v16196_v53 }
 0xa9a   :  { %v12262_v55 = vpop.permute.xlu0 %12261 }
 0xa9b   :  { %v12063_v12 = vpop.permute.xlu1 %12062 }
 0xa9c   :  { %v12069_v40 = vsel %vm1797_vm8, %v12063_v12, %v12065_v44  ;;  %v12070_v13 = vsel %vm1797_vm8, %v12061_v43, %v12063_v12 }
 0xa9d   :  { %13339 = vmatprep.subr.msk.mxu0 %vm118_vm1, %v12069_v40 }
 0xa9e   :  { %13334 = vmatmul.mubr.msk.f32.vlgmr.msra.gmra.mrb[114].mxu0 %vm108_vm2, %v13324_v19  ;;  %v12067_v7 = vpop.permute.xlu0 %12066 }
 0xa9f   :  { %13340 = vmatpush1.msk.msra.mxu0 %vm118_vm1, %v12070_v13  ;;  %v12068_v36 = vsel %vm1797_vm8, %v12065_v44, %v12067_v7  ;;  %v12071_v51 = vsel %vm1797_vm8, %v12067_v7, %v12061_v43  ;;  %v12260_v45 = vpop.permute.xlu1 %12259  ;;  %12151 = vmatprep.mubr.f32.mxu0 %v16196_v53  ;;  %v16207_v7 = vld [vmem:[#allocation3_spill] sm:$0xff] }
 0xaa0   :  { %13337 = vmatmul.mubr.msk.f32.vlgmr.msra.gmra.mrb[114].mxu1 %vm108_vm2, %v13324_v19  ;;  %v12266_v47 = vsel %vm2048_vm9, %v12260_v45, %v12262_v55  ;;  %13342 = vmatprep.subr.msk.mxu1 %vm118_vm1, %v12071_v51 }
 0xaa1   :  { %13347 = vmatprep.subr.msk.mxu0 %vm118_vm1, %v12266_v47  ;;  %13343 = vmatpush1.msk.msra.mxu1 %vm118_vm1, %v12068_v36 }
 0xaa2   :  { %v12264_v31 = vpop.permute.xlu0 %12263  ;;  %12222 = vmatprep.mubr.f32.mxu1 %v16196_v53 }
 0xaa3   :  { %v12258_v33 = vpop.permute.xlu1 %12257  ;;  %v12265_v32 = vsel %vm2048_vm9, %v12262_v55, %v12264_v31 }
 0xaa4   :  { %v12267_v46 = vsel %vm2048_vm9, %v12258_v33, %v12260_v45  ;;  %v12268_v37 = vsel %vm2048_vm9, %v12264_v31, %v12258_v33  ;;  %v16208_v45 = vld [vmem:[#allocation4_spill] sm:$0xff] }
 0xaa5   :  { %13350 = vmatprep.subr.msk.mxu1 %vm118_vm1, %v12268_v37 }
 0xaa6   :  { %13341 = vmatmul.mubr.msk.f32.vlgmr.msra.gmra.mrb[114].mxu0 %vm108_vm2, %v13338_v49  ;;  %v12248_v57 = vpop.permute.xlu0 %12247 }
 0xaa7   :  { %13348 = vmatpush1.msk.msra.mxu0 %vm118_vm1, %v12267_v46  ;;  %v12246_v21 = vpop.permute.xlu1 %12245  ;;  %12348 = vmatprep.mubr.f32.mxu0 %v16196_v53 }
 0xaa8   :  { %13344 = vmatmul.mubr.msk.f32.vlgmr.msra.gmra.mrb[114].mxu1 %vm108_vm2, %v13338_v49  ;;  %v12252_v50 = vsel %vm2048_vm9, %v12246_v21, %v12248_v57 }
 0xaa9   :  { %13351 = vmatpush1.msk.msra.mxu1 %vm118_vm1, %v12265_v32  ;;  %13353 = vmatprep.subr.msk.mxu0 %vm118_vm1, %v12252_v50 }
 0xaaa   :  { %13349 = vmatmul.mubr.msk.f32.vlgmr.msra.gmra.mrb[116].mxu0 %vm108_vm2, %v13346_v61  ;;  %12419 = vmatprep.mubr.f32.mxu1 %v16196_v53  ;;  %v12250_v27 = vpop.permute.xlu0 %12249 }
 0xaab   :  { %v12251_v52 = vsel %vm2048_vm9, %v12248_v57, %v12250_v27  ;;  %v12244_v39 = vpop.permute.xlu1 %12243  ;;  %12505 = vmatprep.mubr.f32.mxu0 %v16196_v53 }
 0xaac   :  { %13352 = vmatmul.mubr.msk.f32.vlgmr.msra.gmra.mrb[116].mxu1 %vm108_vm2, %v13346_v61  ;;  %v12253_v25 = vsel %vm2048_vm9, %v12244_v39, %v12246_v21  ;;  %v12254_v1 = vsel %vm2048_vm9, %v12250_v27, %v12244_v39 }
 0xaad   :  { %13354 = vmatpush1.msk.msra.mxu0 %vm118_vm1, %v12253_v25  ;;  %13356 = vmatprep.subr.msk.mxu1 %vm118_vm1, %v12254_v1 }
 0xaae   :  { %13357 = vmatpush1.msk.msra.mxu1 %vm118_vm1, %v12251_v52  ;;  %v12590_v63 = vpop.permute.xlu0 %12589  ;;  %12576 = vmatprep.mubr.f32.mxu1 %v16196_v53  ;;  %v16211_v52 = vld [vmem:[#allocation7_spill] sm:$0xff] }
 0xaaf   :  { %v12588_v5 = vpop.permute.xlu1 %12587 }
 0xab0   :  { %v12594_v26 = vsel %vm2048_vm9, %v12588_v5, %v12590_v63 }
 0xab1   :  { %13360 = vmatprep.subr.msk.mxu0 %vm118_vm1, %v12594_v26  ;;  %v16213_v26 = vld [vmem:[#allocation10_spill] sm:$0xff] }
 0xab2   :  { %13355 = vmatmul.mubr.msk.f32.vlgmr.msra.gmra.mrb[116].mxu0 %vm108_vm2, %v13345_v24  ;;  %v12592_v60 = vpop.permute.xlu0 %12591 }
 0xab3   :  { %v12593_v16 = vsel %vm2048_vm9, %v12590_v63, %v12592_v60  ;;  %v12586_v41 = vpop.permute.xlu1 %12585  ;;  %12676 = vmatprep.mubr.f32.mxu0 %v16196_v53  ;;  %v16212_v63 = vld [vmem:[#allocation8_spill] sm:$0xff] }
 0xab4   :  { %13358 = vmatmul.mubr.msk.f32.vlgmr.msra.gmra.mrb[116].mxu1 %vm108_vm2, %v13345_v24  ;;  %v12595_v42 = vsel %vm2048_vm9, %v12586_v41, %v12588_v5  ;;  %v12596_v54 = vsel %vm2048_vm9, %v12592_v60, %v12586_v41 }
 0xab5   :  { %13361 = vmatpush1.msk.msra.mxu0 %vm118_vm1, %v12595_v42  ;;  %13363 = vmatprep.subr.msk.mxu1 %vm118_vm1, %v12596_v54 }
 0xab6   :  { %13364 = vmatpush1.msk.msra.mxu1 %vm118_vm1, %v12593_v16  ;;  %12747 = vmatprep.mubr.f32.mxu1 %v16196_v53  ;;  %v16214_v16 = vld [vmem:[#allocation9_spill] sm:$0xff] }
 0xaba   :  { %13362 = vmatmul.mubr.msk.f32.vlgmr.msra.gmra.mrb[116].mxu0 %vm108_vm2, %v13359_v29 }
 0xabc   :  { %13365 = vmatmul.mubr.msk.f32.vlgmr.msra.gmra.mrb[116].mxu1 %vm108_vm2, %v13359_v29  ;;  %v16215_v29 = vld [vmem:[#allocation11_spill] sm:$0xff] }
 0xaeb   :  { %v8526_v48 = vpop.f32.mrb[100].mxu0 }
 0xaec   :  { %v8528_v2 = vpop.f32.mrb[101].mxu0  ;;  %v8597_v9 = vpop.f32.mrb[100].mxu1  ;;  %v8606_v6 = vmul.f32 %v8526_v48, %v14060_v58 }
 0xaed   :  { %v8599_v44 = vpop.f32.mrb[101].mxu1  ;;  %v8607_v53 = vmul.f32 %v8528_v2, %v14072_v0  ;;  %v8608_v40 = vmul.f32 %v8597_v9, %v14063_v59  ;;  %v16209_v0 = vld [vmem:[#allocation6_spill] sm:$0xff] }
 0xaee   :  { %v8609_v47 = vmul.f32 %v8599_v44, %v16208_v45 }
 0xb01   :  { %v9047_v43 = vpop.f32.mrb[102].mxu0 }
 0xb02   :  { %v9127_v55 = vmul.f32 %v9047_v43, %v14066_v62  ;;  %v9049_v12 = vpop.f32.mrb[103].mxu0  ;;  %v9118_v19 = vpop.f32.mrb[102].mxu1 }
 0xb03   :  { %v9128_v13 = vmul.f32 %v9049_v12, %v14078_v3  ;;  %v9129_v36 = vmul.f32 %v9118_v19, %v16207_v7  ;;  %v9120_v51 = vpop.f32.mrb[103].mxu1  ;;  %v16210_v3 = vld [vmem:[#allocation5_spill] sm:$0xff] }
 0xb04   :  { %v9131_v31 = vadd.f32 %v9127_v55, %v8606_v6  ;;  %v9130_v33 = vmul.f32 %v9120_v51, %v14081_v4 }
 0xb05   :  { %v9132_v49 = vadd.f32 %v9128_v13, %v8607_v53  ;;  %v9133_v58 = vadd.f32 %v9129_v36, %v8608_v40 }
 0xb06   :  { %v9134_v46 = vadd.f32 %v9130_v33, %v8609_v47 }
 0xb15   :  { %v9572_v62 = vpop.f32.mrb[104].mxu0 }
 0xb16   :  { %v9652_v37 = vmul.f32 %v9572_v62, %v14103_v38  ;;  %v9574_v57 = vpop.f32.mrb[105].mxu0 }
 0xb17   :  { %v9653_v21 = vmul.f32 %v9574_v57, %v16209_v0  ;;  %v9643_v59 = vpop.f32.mrb[104].mxu1 }
 0xb18   :  { %v9656_v61 = vadd.f32 %v9652_v37, %v9131_v31  ;;  %v9654_v32 = vmul.f32 %v9643_v59, %v16210_v3  ;;  %v9645_v50 = vpop.f32.mrb[105].mxu1 }
 0xb19   :  { %v9657_v27 = vadd.f32 %v9653_v21, %v9132_v49  ;;  %v9655_v39 = vmul.f32 %v9645_v50, %v16211_v52 }
 0xb1a   :  { %v9658_v25 = vadd.f32 %v9654_v32, %v9133_v58 }
 0xb1b   :  { %v9659_v1 = vadd.f32 %v9655_v39, %v9134_v46 }
 0xb29   :  { %v10097_v4 = vpop.f32.mrb[106].mxu0 }
 0xb2a   :  { %v10177_v5 = vmul.f32 %v10097_v4, %v16212_v63  ;;  %v10099_v24 = vpop.f32.mrb[107].mxu0 }
 0xb2b   :  { %v10178_v60 = vmul.f32 %v10099_v24, %v16213_v26  ;;  %v10168_v38 = vpop.f32.mrb[106].mxu1 }
 0xb2c   :  { %v10179_v41 = vmul.f32 %v10168_v38, %v16214_v16  ;;  %v10170_v42 = vpop.f32.mrb[107].mxu1  ;;  %v10181_v54 = vadd.f32 %v10177_v5, %v9656_v61 }
 0xb2d   :  { %v10180_v48 = vmul.f32 %v10170_v42, %v16215_v29  ;;  %v10182_v2 = vadd.f32 %v10178_v60, %v9657_v27  ;;  %v12770_v42 = vpop.permute.xlu1 %12769 }
 0xb2e   :  { %v10183_v9 = vadd.f32 %v10179_v41, %v9658_v25 }
 0xb2f   :  { %v10184_v44 = vadd.f32 %v10180_v48, %v9659_v1 }
 0xb3d   :  { %v10582_v43 = vpop.f32.mrb[108].mxu0 }
 0xb3e   :  { %v10662_v6 = vadd.f32 %v10582_v43, %v10181_v54  ;;  %v10584_v55 = vpop.f32.mrb[109].mxu0 }
 0xb3f   :  { %v10663_v12 = vadd.f32 %v10584_v55, %v10182_v2  ;;  %v10653_v19 = vpop.f32.mrb[108].mxu1 }
 0xb40   :  { %v10664_v53 = vadd.f32 %v10653_v19, %v10183_v9  ;;  %v10655_v40 = vpop.f32.mrb[109].mxu1 }
 0xb41   :  { %v10665_v13 = vadd.f32 %v10655_v40, %v10184_v44 }
 0xb51   :  { %v11103_v7 = vpop.f32.mrb[110].mxu0 }
 0xb52   :  { %v11183_v36 = vmul.f32 %v11103_v7, %v14165_v10  ;;  %v11105_v51 = vpop.f32.mrb[111].mxu0 }
 0xb53   :  { %v11184_v45 = vmul.f32 %v11105_v51, %v14171_v34  ;;  %v11174_v47 = vpop.f32.mrb[110].mxu1 }
 0xb54   :  { %v11187_v31 = vadd.f32 %v11183_v36, %v10662_v6  ;;  %v11185_v33 = vmul.f32 %v11174_v47, %v14168_v11  ;;  %v11176_v49 = vpop.f32.mrb[111].mxu1 }
 0xb55   :  { %v11188_v58 = vadd.f32 %v11184_v45, %v10663_v12  ;;  %v11186_v46 = vmul.f32 %v11176_v49, %v14174_v35 }
 0xb56   :  { %v11189_v62 = vadd.f32 %v11185_v33, %v10664_v53  ;;  %v12776_v53 = vld [vmem:[%s16136_s23] sm:$0xf] }
 0xb57   :  { %v11190_v37 = vadd.f32 %v11186_v46, %v10665_v13 }
 0xb65   :  { %v11628_v57 = vpop.f32.mrb[112].mxu0 }
 0xb66   :  { %v11708_v0 = vmul.f32 %v11628_v57, %v14190_v18  ;;  %v11630_v21 = vpop.f32.mrb[113].mxu0 }
 0xb67   :  { %v11709_v59 = vmul.f32 %v11630_v21, %v14198_v28  ;;  %v11699_v10 = vpop.f32.mrb[112].mxu1 }
 0xb68   :  { %v11712_v61 = vadd.f32 %v11708_v0, %v11187_v31  ;;  %v11710_v34 = vmul.f32 %v11699_v10, %v14193_v23  ;;  %v11701_v3 = vpop.f32.mrb[113].mxu1 }
 0xb69   :  { %v11713_v32 = vadd.f32 %v11709_v59, %v11188_v58  ;;  %v11711_v11 = vmul.f32 %v11701_v3, %v16199_v56  ;;  %v12777_v59 = vld [vmem:[%s16137_s24] sm:$0xf] }
 0xb6a   :  { %v11714_v50 = vadd.f32 %v11710_v34, %v11189_v62 }
 0xb6b   :  { %v11715_v27 = vadd.f32 %v11711_v11, %v11190_v37 }
 0xb79   :  { %v12153_v52 = vpop.f32.mrb[114].mxu0 }
 0xb7a   :  { %v12233_v35 = vmul.f32 %v12153_v52, %v14217_v22  ;;  %v12155_v39 = vpop.f32.mrb[115].mxu0 }
 0xb7b   :  { %v12234_v25 = vmul.f32 %v12155_v39, %v14225_v14  ;;  %v12224_v18 = vpop.f32.mrb[114].mxu1 }
 0xb7c   :  { %v12237_v1 = vadd.f32 %v12233_v35, %v11712_v61  ;;  %v12235_v28 = vmul.f32 %v12224_v18, %v14220_v17  ;;  %v12226_v4 = vpop.f32.mrb[115].mxu1  ;;  %v16216_v17 = vld [vmem:[#allocation13_spill] sm:$0xff] }
 0xb7d   :  { %v12238_v63 = vadd.f32 %v12234_v25, %v11713_v32  ;;  %v12236_v23 = vmul.f32 %v12226_v4, %v14228_v15 }
 0xb7e   :  { %v12239_v5 = vadd.f32 %v12235_v28, %v11714_v50 }
 0xb7f   :  { %v12240_v24 = vadd.f32 %v12236_v23, %v11715_v27 }
 0xb8d   :  { %v12678_v26 = vpop.f32.mrb[116].mxu0 }
 0xb8e   :  { %v12758_v56 = vmul.f32 %v12678_v26, %v14244_v20  ;;  %v12680_v60 = vpop.f32.mrb[117].mxu0 }
 0xb8f   :  { %v12759_v38 = vmul.f32 %v12680_v60, %v14252_v8  ;;  %v12749_v22 = vpop.f32.mrb[116].mxu1 }
 0xb90   :  { %v12762_v16 = vadd.f32 %v12758_v56, %v12237_v1  ;;  %v12760_v14 = vmul.f32 %v12749_v22, %v14247_v30  ;;  %v12751_v41 = vpop.f32.mrb[117].mxu1 }
 0xb91   :  { %v12763_v54 = vadd.f32 %v12759_v38, %v12238_v63  ;;  %v12761_v29 = vmul.f32 %v12751_v41, %v16216_v17 }
 0xb92   :  { %v12772_v48 = vadd.f32 %v12770_v42, %v12762_v16  ;;  %v12764_v2 = vadd.f32 %v12760_v14, %v12239_v5 }
 0xb93   :  { %v12773_v15 = vadd.f32 %v12770_v42, %v12763_v54  ;;  %v12765_v9 = vadd.f32 %v12761_v29, %v12240_v24 }
 0xb94   :  { %v12778_v44 = vsel %vm118_vm1, %v12772_v48, 0.0  ;;  %v12774_v43 = vadd.f32 %v12770_v42, %v12764_v2 }
 0xb95   :  { %v12779_v20 = vsel %vm118_vm1, %v12773_v15, 0.0  ;;  %v12775_v6 = vadd.f32 %v12770_v42, %v12765_v9 }
 0xb96   :  { %v12780_v8 = vadd.f32 %v12779_v20, %v12778_v44  ;;  %v12781_v55 = vsel %vm118_vm1, %v12774_v43, 0.0 }
 0xb97   :  { %v12783_v30 = vsel %vm118_vm1, %v12775_v6, 0.0 }
 0xb98   :  { %v12782_v12 = vadd.f32 %v12781_v55, %v12780_v8 }
 0xb9a   :  { %v12784_v19 = vadd.f32 %v12783_v30, %v12782_v12 }
 0xb9c   :  { %12785 = vadd.xlane.f32.xlu0 %v12784_v19 }
 0xbb2   :  { %12814 = vperm.xlu0 %13484, %v12776_v53  }
 0xc29   :  { %v12786_v40 = vpop.xlane.xlu0 %12785 }
 0xc2a   :  { %v12787_v13 = vmul.f32 0.001953125, %v12786_v40 }
 0xc2c   :  { %v12788_v7 = vsub.f32 %v12772_v48, %v12787_v13  ;;  %v12789_v36 = vsub.f32 %v12773_v15, %v12787_v13  ;;  %v12790_v51 = vsub.f32 %v12774_v43, %v12787_v13  ;;  %v12791_v45 = vsub.f32 %v12775_v6, %v12787_v13 }
 0xc2e   :  { %v12792_v47 = vmul.f32 %v12788_v7, %v12788_v7  ;;  %v12793_v31 = vmul.f32 %v12789_v36, %v12789_v36  ;;  %v12794_v33 = vmul.f32 %v12790_v51, %v12790_v51  ;;  %v12795_v49 = vmul.f32 %v12791_v45, %v12791_v45 }
 0xc30   :  { %v12796_v58 = vsel %vm118_vm1, %v12792_v47, 0.0  ;;  %v12797_v46 = vsel %vm118_vm1, %v12793_v31, 0.0  ;;  %v12799_v37 = vsel %vm118_vm1, %v12794_v33, 0.0  ;;  %v12801_v0 = vsel %vm118_vm1, %v12795_v49, 0.0 }
 0xc31   :  { %v12798_v62 = vadd.f32 %v12797_v46, %v12796_v58  ;;  %v12815_v52 = vpop.permute.xlu0 %12814 }
 0xc33   :  { %v12800_v57 = vadd.f32 %v12799_v37, %v12798_v62 }
 0xc35   :  { %v12802_v21 = vadd.f32 %v12801_v0, %v12800_v57 }
 0xc37   :  { %12803 = vadd.xlane.f32.xlu1 %v12802_v21 }
 0xc48   :  { %12823 = vperm.xlu1 %13485, %v12777_v59  }
 0xcc4   :  { %v12804_v10 = vpop.xlane.xlu1 %12803 }
 0xcc5   :  { %v12805_v61 = vmul.f32 0.001953125, %v12804_v10 }
 0xcc7   :  { %v12806_v34 = vadd.f32 1e-05, %v12805_v61 }
 0xcc8   :  { %v12824_v1 = vpop.permute.xlu1 %12823 }
 0xcc9   :  { %13502 = vrsqrt.f32 %v12806_v34 }
 0xcd3   :  { %v13503_v3 = vpop.eup %13502 }
 0xcd4   :  { %v12808_v32 = vmul.f32 %v13503_v3, %v12788_v7  ;;  %v12809_v11 = vmul.f32 %v13503_v3, %v12789_v36  ;;  %v12810_v50 = vmul.f32 %v13503_v3, %v12790_v51  ;;  %v12811_v27 = vmul.f32 %v13503_v3, %v12791_v45 }
 0xcd6   :  { %v12817_v35 = vmul.f32 %v12815_v52, %v12808_v32  ;;  %v12818_v39 = vmul.f32 %v12815_v52, %v12809_v11  ;;  %v12819_v25 = vmul.f32 %v12815_v52, %v12810_v50  ;;  %v12820_v18 = vmul.f32 %v12815_v52, %v12811_v27 }
 0xcd8   :  { %v12826_v28 = vadd.f32 %v12824_v1, %v12817_v35  ;;  %v12827_v4 = vadd.f32 %v12824_v1, %v12818_v39  ;;  %v12828_v63 = vadd.f32 %v12824_v1, %v12819_v25  ;;  %v12829_v23 = vadd.f32 %v12824_v1, %v12820_v18 }
 0xcda   :  { %v12830_v5 = vmax.f32 %v12826_v28, 0.0  ;;  %v12831_v24 = vmax.f32 %v12827_v4, 0.0  ;;  %v12832_v26 = vmax.f32 %v12828_v63, 0.0  ;;  %v12833_v56 = vmax.f32 %v12829_v23, 0.0 }
 0xcdc   :  { %v12838_v60 = vcombine.low %v12830_v5, %v12831_v24  ;;  %v12839_v38 = vcombine.low %v12832_v26, %v12833_v56 }
 0xcde   :  { %12842 = vst [vmem:[%s16138_s25] sm:$0xff] %v12838_v60  ;;  %12843 = vst [vmem:[%s16138_s25 + $0x8] sm:$0xff] %v12839_v38 }

</bundles_post_ra>
